<compile_context>
chip_gen: v7x
topology: tpu7x:2x2x1
jax: 0.10.0
libtpu: 0.0.40
codegen_flags: <defaults>
</compile_context>

<pallas_src>
import functools

import numpy as np
import jax
import jax.numpy as jnp
from jax.experimental import pallas as pl
from jax.experimental.pallas import tpu as pltpu


# ------------------- trace-time constant builders (weights / shapes only) -------------------

def _row_scatter_maps(batch, h_in, h_out, k, stride, pad):
    """R[kh] (N*H_out, N*H_in) 0/1 matrices: R[kh][(n,oh),(n,ih)] = 1 iff oh = s*ih - p + kh."""
    rh = np.zeros((k, h_out, h_in), np.float32)
    for kh in range(k):
        for ih in range(h_in):
            oh = stride * ih - pad + kh
            if 0 <= oh < h_out:
                rh[kh, oh, ih] = 1.0
    eye = np.eye(batch, dtype=np.float32)
    r = np.einsum("khi,nm->knhmi", rh, eye)          # block-diagonal over batch
    return r.reshape(k, batch * h_out, batch * h_in)


def _col_weight_maps(w_pt, w_in, w_out, stride, pad):
    """M[kh] (W_in*C_in, W_out*C_out): width-axis taps/stride/pad folded into the weights.

    M[kh][(iw,ci),(ow,co)] = w_pt[ci,co,kh,kw]  with kw = ow - s*iw + p when that tap is valid.
    """
    cin, cout, k_h, k_w = w_pt.shape
    t = np.zeros((k_w, w_in, w_out), np.float32)
    for kw in range(k_w):
        for iw in range(w_in):
            ow = stride * iw - pad + kw
            if 0 <= ow < w_out:
                t[kw, iw, ow] = 1.0
    m = jnp.einsum("kio,cdhk->hicod", jnp.asarray(t), w_pt.astype(jnp.float32))
    return m.reshape(k_h, w_in * cin, w_out * cout)


# ----------------------------------- fused Pallas kernel -----------------------------------

def _fused_generator_kernel(*refs, conv_dims, bn_dims, eps):
    # refs = [x0, (R,M) x 4 layers, (G, G^T, gamma_tiled, beta_tiled) x 3 BN layers, out]
    z_ref = refs[0]
    conv_refs = refs[1:1 + 2 * len(conv_dims)]
    bn_refs = refs[1 + 2 * len(conv_dims):-1]
    out_ref = refs[-1]

    def tconv(x, r_ref, m_ref, k):
        # ConvTranspose2d:  Y = sum_kh R[kh] @ (X @ M[kh]).  bf16 MXU operands, f32 accumulate.
        xb = x.astype(jnp.bfloat16)
        out_rows, out_cols = r_ref.shape[1], m_ref.shape[2]
        acc = jnp.zeros((out_rows, out_cols), jnp.float32)
        for kh in range(k):                                  # static unroll (k = 3 or 4)
            t = jnp.dot(xb, m_ref[kh], preferred_element_type=jnp.float32)
            acc = acc + jnp.dot(r_ref[kh], t, preferred_element_type=jnp.float32)
        return acc

    def bn_relu(y, g_ref, gt_ref, gamma_t_ref, beta_t_ref, count):
        # Training-mode BatchNorm (batch stats, biased variance) + ReLU, all stats in f32.
        # Per-channel sums over the (N*H, W*C) layout via tiny 0/1 group-sum matmuls
        # (no lane-crossing reshapes inside the kernel).
        g, gt = g_ref[...], gt_ref[...]
        inv_n = jnp.float32(1.0 / count)
        mean_c = jnp.dot(jnp.sum(y, axis=0, keepdims=True), g,
                         preferred_element_type=jnp.float32) * inv_n        # (1, C)
        mean_t = jnp.dot(mean_c, gt, preferred_element_type=jnp.float32)    # tiled (1, W*C)
        cx = y - mean_t
        var_c = jnp.dot(jnp.sum(cx * cx, axis=0, keepdims=True), g,
                        preferred_element_type=jnp.float32) * inv_n
        inv_t = jnp.dot(jax.lax.rsqrt(var_c + eps), gt,
                        preferred_element_type=jnp.float32)
        return jnp.maximum(cx * inv_t * gamma_t_ref[...] + beta_t_ref[...], 0.0)

    y = z_ref[...]
    for li, cd in enumerate(conv_dims):
        y = tconv(y, conv_refs[2 * li], conv_refs[2 * li + 1], cd["k"])
        if li < len(bn_dims):
            g_ref, gt_ref, ga_ref, be_ref = bn_refs[4 * li:4 * li + 4]
            y = bn_relu(y, g_ref, gt_ref, ga_ref, be_ref, bn_dims[li]["count"])
    # Only value leaving VMEM: (N*28, 28) f32 = 6 KiB, so the narrow-lane store is negligible.
    out_ref[...] = jnp.tanh(y)


# --------------------------------------- wrapper ---------------------------------------

def conv_generator_forward(x_nchw, params):
    """NCHW in / NCHW out forward matching the PyTorch ConvGenerator (training-mode BN)."""
    n, cin0, h, w = (int(s) for s in x_nchw.shape)
    eps = 1e-5
    convs = [("w1", 4, 1, 0), ("w2", 3, 2, 1), ("w3", 4, 2, 1), ("w4", 4, 2, 1)]
    bns = [("g1", "b1"), ("g2", "b2"), ("g3", "b3")]

    # Activations live in a 2-D (N*H, W*C) layout inside the kernel.
    x0 = jnp.transpose(x_nchw.astype(jnp.float32), (0, 2, 3, 1)).reshape(n * h, w * cin0)

    conv_ops, conv_dims, spatial, chans = [], [], [], []
    for name, k, s, p in convs:
        w_pt = params[name]
        cin, cout = int(w_pt.shape[0]), int(w_pt.shape[1])
        h_out = (h - 1) * s - 2 * p + k
        w_out = (w - 1) * s - 2 * p + k
        conv_ops.append(jnp.asarray(_row_scatter_maps(n, h, h_out, k, s, p)))          # exact 0/1, f32
        conv_ops.append(_col_weight_maps(w_pt, w, w_out, s, p).astype(jnp.bfloat16))   # bf16 MXU operand
        conv_dims.append(dict(k=k, in_rows=n * h, in_cols=w * cin,
                              out_rows=n * h_out, out_cols=w_out * cout))
        spatial.append((h_out, w_out))
        chans.append(cout)
        h, w = h_out, w_out

    bn_ops, bn_dims = [], []
    for li, (gname, bname) in enumerate(bns):
        c, (h_o, w_o) = chans[li], spatial[li]
        g = np.tile(np.eye(c, dtype=np.float32), (w_o, 1))      # (W*C, C) channel group-sum matrix
        bn_ops += [jnp.asarray(g), jnp.asarray(np.ascontiguousarray(g.T)),
                   jnp.tile(params[gname].astype(jnp.float32), w_o).reshape(1, w_o * c),
                   jnp.tile(params[bname].astype(jnp.float32), w_o).reshape(1, w_o * c)]
        bn_dims.append(dict(count=float(n * h_o * w_o), channels=c))

    operands = [x0] + conv_ops + bn_ops
    out_rows, out_cols = conv_dims[-1]["out_rows"], conv_dims[-1]["out_cols"]

    def full_block(shape):                    # full-extent blocks (exempt from (8,128) rule)
        nd = len(shape)
        return pl.BlockSpec(tuple(shape), lambda i, _nd=nd: (0,) * _nd)

    flops = int(sum(2 * d["k"] * d["in_rows"] * d["out_cols"] * (d["in_cols"] + d["out_rows"])
                    for d in conv_dims))
    transcendentals = int(sum(d["channels"] for d in bn_dims) + out_rows * out_cols)
    bytes_accessed = int(sum(int(np.prod(op.shape)) * op.dtype.itemsize for op in operands)
                         + out_rows * out_cols * 4)

    out2d = pl.pallas_call(
        functools.partial(_fused_generator_kernel,
                          conv_dims=conv_dims, bn_dims=bn_dims, eps=eps),
        out_shape=jax.ShapeDtypeStruct((out_rows, out_cols), jnp.float32),
        grid=(1,),
        in_specs=[full_block(op.shape) for op in operands],
        out_specs=full_block((out_rows, out_cols)),
        compiler_params=pltpu.CompilerParams(
            dimension_semantics=("arbitrary",),
            vmem_limit_bytes=32 * 1024 * 1024),
        cost_estimate=pl.CostEstimate(flops=flops, transcendentals=transcendentals,
                                      bytes_accessed=bytes_accessed),
    )(*operands)

    h4, w4 = spatial[-1]
    c4 = chans[-1]
    out = out2d.reshape(n, h4, w4, c4)        # rows were (n, oh), cols (ow, c)
    return jnp.transpose(out, (0, 3, 1, 2))   # NHWC -> NCHW (6 KiB, trivial XLA op)


# ----------------------------- pure-JAX reference (for validation) -----------------------------

def _ref_conv_transpose(x_nchw, w_pt, stride, pad):
    kH, kW = w_pt.shape[2], w_pt.shape[3]
    wf = jnp.transpose(w_pt[:, :, ::-1, ::-1], (2, 3, 0, 1))  # HWIO
    x = jnp.transpose(x_nchw, (0, 2, 3, 1))
    out = jax.lax.conv_general_dilated(
        x, wf, window_strides=(1, 1),
        padding=[(kH - 1 - pad, kH - 1 - pad), (kW - 1 - pad, kW - 1 - pad)],
        lhs_dilation=(stride, stride),
        dimension_numbers=("NHWC", "HWIO", "NHWC"))
    return jnp.transpose(out, (0, 3, 1, 2))


def _ref_bn_relu(x_nchw, gamma, beta, eps=1e-5):
    mean = jnp.mean(x_nchw, axis=(0, 2, 3), keepdims=True)
    var = jnp.mean((x_nchw - mean) ** 2, axis=(0, 2, 3), keepdims=True)
    y = (x_nchw - mean) * jax.lax.rsqrt(var + eps)
    y = y * gamma[None, :, None, None] + beta[None, :, None, None]
    return jnp.maximum(y, 0.0)


def reference_forward(x, p):
    y = _ref_bn_relu(_ref_conv_transpose(x, p["w1"], 1, 0), p["g1"], p["b1"])
    y = _ref_bn_relu(_ref_conv_transpose(y, p["w2"], 2, 1), p["g2"], p["b2"])
    y = _ref_bn_relu(_ref_conv_transpose(y, p["w3"], 2, 1), p["g3"], p["b3"])
    return jnp.tanh(_ref_conv_transpose(y, p["w4"], 2, 1))


# ----------------------------------------- main -----------------------------------------

if __name__ == "__main__":
    batch, input_dim, gen_dim, out_ch = 2, 64, 16, 1   # small, shape-consistent config

    key = jax.random.PRNGKey(0)
    keys = jax.random.split(key, 12)

    def winit(k, shape):  # ConvTranspose2d-style init (only the shape matters here)
        fan = shape[0] * shape[2] * shape[3]
        bound = 1.0 / np.sqrt(fan)
        return jax.random.uniform(k, shape, jnp.float32, -bound, bound)

    params = {
        "w1": winit(keys[0], (input_dim, gen_dim * 4, 4, 4)),
        "g1": 1.0 + 0.1 * jax.random.normal(keys[1], (gen_dim * 4,), jnp.float32),
        "b1": 0.1 * jax.random.normal(keys[2], (gen_dim * 4,), jnp.float32),
        "w2": winit(keys[3], (gen_dim * 4, gen_dim * 2, 3, 3)),
        "g2": 1.0 + 0.1 * jax.random.normal(keys[4], (gen_dim * 2,), jnp.float32),
        "b2": 0.1 * jax.random.normal(keys[5], (gen_dim * 2,), jnp.float32),
        "w3": winit(keys[6], (gen_dim * 2, gen_dim, 4, 4)),
        "g3": 1.0 + 0.1 * jax.random.normal(keys[7], (gen_dim,), jnp.float32),
        "b3": 0.1 * jax.random.normal(keys[8], (gen_dim,), jnp.float32),
        "w4": winit(keys[9], (gen_dim, out_ch, 4, 4)),
    }
    x = jax.random.normal(keys[10], (batch, input_dim, 1, 1), jnp.float32)

    out = jax.block_until_ready(jax.jit(conv_generator_forward)(x, params))
    assert out.shape == (batch, out_ch, 28, 28), out.shape

    ref = jax.block_until_ready(reference_forward(x, params))
    # bf16 GEMM operands (f32 accumulation) -> compare against the f32 reference at bf16-level tol.
    np.testing.assert_allclose(np.asarray(out), np.asarray(ref), atol=2e-2, rtol=2e-2)

    print("KERNEL_OK")
</pallas_src>

<mosaic_0001>
module attributes {stable_mosaic.version = 11 : i64} {
  func.func @_fused_generator_kernel(%arg0: i32, %arg1: memref<2x64xf32, #tpu.memory_space<vmem>>, %arg2: memref<4x8x2xf32, #tpu.memory_space<vmem>>, %arg3: memref<4x64x256xbf16, #tpu.memory_space<vmem>>, %arg4: memref<3x14x8xf32, #tpu.memory_space<vmem>>, %arg5: memref<3x256x224xbf16, #tpu.memory_space<vmem>>, %arg6: memref<4x28x14xf32, #tpu.memory_space<vmem>>, %arg7: memref<4x224x224xbf16, #tpu.memory_space<vmem>>, %arg8: memref<4x56x28xf32, #tpu.memory_space<vmem>>, %arg9: memref<4x224x28xbf16, #tpu.memory_space<vmem>>, %arg10: memref<256x64xf32, #tpu.memory_space<vmem>>, %arg11: memref<64x256xf32, #tpu.memory_space<vmem>>, %arg12: memref<1x256xf32, #tpu.memory_space<vmem>>, %arg13: memref<1x256xf32, #tpu.memory_space<vmem>>, %arg14: memref<224x32xf32, #tpu.memory_space<vmem>>, %arg15: memref<32x224xf32, #tpu.memory_space<vmem>>, %arg16: memref<1x224xf32, #tpu.memory_space<vmem>>, %arg17: memref<1x224xf32, #tpu.memory_space<vmem>>, %arg18: memref<224x16xf32, #tpu.memory_space<vmem>>, %arg19: memref<16x224xf32, #tpu.memory_space<vmem>>, %arg20: memref<1x224xf32, #tpu.memory_space<vmem>>, %arg21: memref<1x224xf32, #tpu.memory_space<vmem>>, %arg22: memref<56x28xf32, #tpu.memory_space<vmem>>) attributes {dimension_semantics = [#tpu.dimension_semantics<arbitrary>], iteration_bounds = array<i64: 1>, scalar_prefetch = 0 : i64, scratch_operands = 0 : i64, tpu.core_type = #tpu.core_type<tc>, window_params = [{pipeline_mode = #tpu.pipeline_mode<synchronous>, transform_indices = @transform_0, window_bounds = array<i64: 2, 64>}, {pipeline_mode = #tpu.pipeline_mode<synchronous>, transform_indices = @transform_1, window_bounds = array<i64: 4, 8, 2>}, {pipeline_mode = #tpu.pipeline_mode<synchronous>, transform_indices = @transform_2, window_bounds = array<i64: 4, 64, 256>}, {pipeline_mode = #tpu.pipeline_mode<synchronous>, transform_indices = @transform_3, window_bounds = array<i64: 3, 14, 8>}, {pipeline_mode = #tpu.pipeline_mode<synchronous>, transform_indices = @transform_4, window_bounds = array<i64: 3, 256, 224>}, {pipeline_mode = #tpu.pipeline_mode<synchronous>, transform_indices = @transform_5, window_bounds = array<i64: 4, 28, 14>}, {pipeline_mode = #tpu.pipeline_mode<synchronous>, transform_indices = @transform_6, window_bounds = array<i64: 4, 224, 224>}, {pipeline_mode = #tpu.pipeline_mode<synchronous>, transform_indices = @transform_7, window_bounds = array<i64: 4, 56, 28>}, {pipeline_mode = #tpu.pipeline_mode<synchronous>, transform_indices = @transform_8, window_bounds = array<i64: 4, 224, 28>}, {pipeline_mode = #tpu.pipeline_mode<synchronous>, transform_indices = @transform_9, window_bounds = array<i64: 256, 64>}, {pipeline_mode = #tpu.pipeline_mode<synchronous>, transform_indices = @transform_10, window_bounds = array<i64: 64, 256>}, {pipeline_mode = #tpu.pipeline_mode<synchronous>, transform_indices = @transform_11, window_bounds = array<i64: 1, 256>}, {pipeline_mode = #tpu.pipeline_mode<synchronous>, transform_indices = @transform_12, window_bounds = array<i64: 1, 256>}, {pipeline_mode = #tpu.pipeline_mode<synchronous>, transform_indices = @transform_13, window_bounds = array<i64: 224, 32>}, {pipeline_mode = #tpu.pipeline_mode<synchronous>, transform_indices = @transform_14, window_bounds = array<i64: 32, 224>}, {pipeline_mode = #tpu.pipeline_mode<synchronous>, transform_indices = @transform_15, window_bounds = array<i64: 1, 224>}, {pipeline_mode = #tpu.pipeline_mode<synchronous>, transform_indices = @transform_16, window_bounds = array<i64: 1, 224>}, {pipeline_mode = #tpu.pipeline_mode<synchronous>, transform_indices = @transform_17, window_bounds = array<i64: 224, 16>}, {pipeline_mode = #tpu.pipeline_mode<synchronous>, transform_indices = @transform_18, window_bounds = array<i64: 16, 224>}, {pipeline_mode = #tpu.pipeline_mode<synchronous>, transform_indices = @transform_19, window_bounds = array<i64: 1, 224>}, {pipeline_mode = #tpu.pipeline_mode<synchronous>, transform_indices = @transform_20, window_bounds = array<i64: 1, 224>}, {pipeline_mode = #tpu.pipeline_mode<synchronous>, transform_indices = @transform_21, window_bounds = array<i64: 56, 28>}]} {
    %c0 = arith.constant 0 : index
    %c0_0 = arith.constant 0 : index
    %0 = vector.load %arg1[%c0, %c0_0] : memref<2x64xf32, #tpu.memory_space<vmem>>, vector<2x64xf32>
    %1 = arith.truncf %0 : vector<2x64xf32> to vector<2x64xbf16>
    %cst = arith.constant 0.000000e+00 : f32
    %2 = vector.broadcast %cst : f32 to vector<8x256xf32>
    %c0_1 = arith.constant 0 : index
    %c0_2 = arith.constant 0 : index
    %c0_3 = arith.constant 0 : index
    %3 = vector.load %arg3[%c0_1, %c0_2, %c0_3] : memref<4x64x256xbf16, #tpu.memory_space<vmem>>, vector<1x64x256xbf16>
    %4 = vector.shape_cast %3 : vector<1x64x256xbf16> to vector<64x256xbf16>
    %cst_4 = arith.constant dense<0.000000e+00> : vector<2x256xf32>
    %5 = tpu.matmul %1, %4, %cst_4 {dimension_numbers = #tpu.dot_dimension_numbers<[1], [0], [0], [1], [0, 0, 1, 1], [], []>} : vector<2x64xbf16>, vector<64x256xbf16>, vector<2x256xf32> -> vector<2x256xf32>
    %c0_5 = arith.constant 0 : index
    %c0_6 = arith.constant 0 : index
    %c0_7 = arith.constant 0 : index
    %6 = vector.load %arg2[%c0_5, %c0_6, %c0_7] : memref<4x8x2xf32, #tpu.memory_space<vmem>>, vector<1x8x2xf32>
    %7 = vector.shape_cast %6 : vector<1x8x2xf32> to vector<8x2xf32>
    %cst_8 = arith.constant dense<0.000000e+00> : vector<8x256xf32>
    %8 = tpu.matmul %7, %5, %cst_8 {dimension_numbers = #tpu.dot_dimension_numbers<[1], [0], [0], [1], [0, 0, 1, 1], [], []>} : vector<8x2xf32>, vector<2x256xf32>, vector<8x256xf32> -> vector<8x256xf32>
    %9 = arith.addf %2, %8 : vector<8x256xf32>
    %c1 = arith.constant 1 : index
    %c0_9 = arith.constant 0 : index
    %c0_10 = arith.constant 0 : index
    %10 = vector.load %arg3[%c1, %c0_9, %c0_10] : memref<4x64x256xbf16, #tpu.memory_space<vmem>>, vector<1x64x256xbf16>
    %11 = vector.shape_cast %10 : vector<1x64x256xbf16> to vector<64x256xbf16>
    %cst_11 = arith.constant dense<0.000000e+00> : vector<2x256xf32>
    %12 = tpu.matmul %1, %11, %cst_11 {dimension_numbers = #tpu.dot_dimension_numbers<[1], [0], [0], [1], [0, 0, 1, 1], [], []>} : vector<2x64xbf16>, vector<64x256xbf16>, vector<2x256xf32> -> vector<2x256xf32>
    %c1_12 = arith.constant 1 : index
    %c0_13 = arith.constant 0 : index
    %c0_14 = arith.constant 0 : index
    %13 = vector.load %arg2[%c1_12, %c0_13, %c0_14] : memref<4x8x2xf32, #tpu.memory_space<vmem>>, vector<1x8x2xf32>
    %14 = vector.shape_cast %13 : vector<1x8x2xf32> to vector<8x2xf32>
    %cst_15 = arith.constant dense<0.000000e+00> : vector<8x256xf32>
    %15 = tpu.matmul %14, %12, %cst_15 {dimension_numbers = #tpu.dot_dimension_numbers<[1], [0], [0], [1], [0, 0, 1, 1], [], []>} : vector<8x2xf32>, vector<2x256xf32>, vector<8x256xf32> -> vector<8x256xf32>
    %16 = arith.addf %9, %15 : vector<8x256xf32>
    %c2 = arith.constant 2 : index
    %c0_16 = arith.constant 0 : index
    %c0_17 = arith.constant 0 : index
    %17 = vector.load %arg3[%c2, %c0_16, %c0_17] : memref<4x64x256xbf16, #tpu.memory_space<vmem>>, vector<1x64x256xbf16>
    %18 = vector.shape_cast %17 : vector<1x64x256xbf16> to vector<64x256xbf16>
    %cst_18 = arith.constant dense<0.000000e+00> : vector<2x256xf32>
    %19 = tpu.matmul %1, %18, %cst_18 {dimension_numbers = #tpu.dot_dimension_numbers<[1], [0], [0], [1], [0, 0, 1, 1], [], []>} : vector<2x64xbf16>, vector<64x256xbf16>, vector<2x256xf32> -> vector<2x256xf32>
    %c2_19 = arith.constant 2 : index
    %c0_20 = arith.constant 0 : index
    %c0_21 = arith.constant 0 : index
    %20 = vector.load %arg2[%c2_19, %c0_20, %c0_21] : memref<4x8x2xf32, #tpu.memory_space<vmem>>, vector<1x8x2xf32>
    %21 = vector.shape_cast %20 : vector<1x8x2xf32> to vector<8x2xf32>
    %cst_22 = arith.constant dense<0.000000e+00> : vector<8x256xf32>
    %22 = tpu.matmul %21, %19, %cst_22 {dimension_numbers = #tpu.dot_dimension_numbers<[1], [0], [0], [1], [0, 0, 1, 1], [], []>} : vector<8x2xf32>, vector<2x256xf32>, vector<8x256xf32> -> vector<8x256xf32>
    %23 = arith.addf %16, %22 : vector<8x256xf32>
    %c3 = arith.constant 3 : index
    %c0_23 = arith.constant 0 : index
    %c0_24 = arith.constant 0 : index
    %24 = vector.load %arg3[%c3, %c0_23, %c0_24] : memref<4x64x256xbf16, #tpu.memory_space<vmem>>, vector<1x64x256xbf16>
    %25 = vector.shape_cast %24 : vector<1x64x256xbf16> to vector<64x256xbf16>
    %cst_25 = arith.constant dense<0.000000e+00> : vector<2x256xf32>
    %26 = tpu.matmul %1, %25, %cst_25 {dimension_numbers = #tpu.dot_dimension_numbers<[1], [0], [0], [1], [0, 0, 1, 1], [], []>} : vector<2x64xbf16>, vector<64x256xbf16>, vector<2x256xf32> -> vector<2x256xf32>
    %c3_26 = arith.constant 3 : index
    %c0_27 = arith.constant 0 : index
    %c0_28 = arith.constant 0 : index
    %27 = vector.load %arg2[%c3_26, %c0_27, %c0_28] : memref<4x8x2xf32, #tpu.memory_space<vmem>>, vector<1x8x2xf32>
    %28 = vector.shape_cast %27 : vector<1x8x2xf32> to vector<8x2xf32>
    %cst_29 = arith.constant dense<0.000000e+00> : vector<8x256xf32>
    %29 = tpu.matmul %28, %26, %cst_29 {dimension_numbers = #tpu.dot_dimension_numbers<[1], [0], [0], [1], [0, 0, 1, 1], [], []>} : vector<8x2xf32>, vector<2x256xf32>, vector<8x256xf32> -> vector<8x256xf32>
    %30 = arith.addf %23, %29 : vector<8x256xf32>
    %c0_30 = arith.constant 0 : index
    %c0_31 = arith.constant 0 : index
    %31 = vector.load %arg10[%c0_30, %c0_31] : memref<256x64xf32, #tpu.memory_space<vmem>>, vector<256x64xf32>
    %c0_32 = arith.constant 0 : index
    %c0_33 = arith.constant 0 : index
    %32 = vector.load %arg11[%c0_32, %c0_33] : memref<64x256xf32, #tpu.memory_space<vmem>>, vector<64x256xf32>
    %cst_34 = arith.constant dense<0.000000e+00> : vector<256xf32>
    %33 = vector.multi_reduction <add>, %30, %cst_34 [0] : vector<8x256xf32> to vector<256xf32>
    %34 = vector.shape_cast %33 : vector<256xf32> to vector<1x256xf32>
    %cst_35 = arith.constant dense<0.000000e+00> : vector<1x64xf32>
    %35 = tpu.matmul %34, %31, %cst_35 {dimension_numbers = #tpu.dot_dimension_numbers<[1], [0], [0], [1], [0, 0, 1, 1], [], []>} : vector<1x256xf32>, vector<256x64xf32>, vector<1x64xf32> -> vector<1x64xf32>
    %cst_36 = arith.constant 3.125000e-02 : f32
    %36 = vector.broadcast %cst_36 : f32 to vector<1x64xf32>
    %37 = arith.mulf %35, %36 : vector<1x64xf32>
    %cst_37 = arith.constant dense<0.000000e+00> : vector<1x256xf32>
    %38 = tpu.matmul %37, %32, %cst_37 {dimension_numbers = #tpu.dot_dimension_numbers<[1], [0], [0], [1], [0, 0, 1, 1], [], []>} : vector<1x64xf32>, vector<64x256xf32>, vector<1x256xf32> -> vector<1x256xf32>
    %39 = vector.broadcast %38 : vector<1x256xf32> to vector<8x256xf32>
    %40 = arith.subf %30, %39 : vector<8x256xf32>
    %41 = arith.mulf %40, %40 : vector<8x256xf32>
    %cst_38 = arith.constant dense<0.000000e+00> : vector<256xf32>
    %42 = vector.multi_reduction <add>, %41, %cst_38 [0] : vector<8x256xf32> to vector<256xf32>
    %43 = vector.shape_cast %42 : vector<256xf32> to vector<1x256xf32>
    %cst_39 = arith.constant dense<0.000000e+00> : vector<1x64xf32>
    %44 = tpu.matmul %43, %31, %cst_39 {dimension_numbers = #tpu.dot_dimension_numbers<[1], [0], [0], [1], [0, 0, 1, 1], [], []>} : vector<1x256xf32>, vector<256x64xf32>, vector<1x64xf32> -> vector<1x64xf32>
    %cst_40 = arith.constant 3.125000e-02 : f32
    %45 = vector.broadcast %cst_40 : f32 to vector<1x64xf32>
    %46 = arith.mulf %44, %45 : vector<1x64xf32>
    %cst_41 = arith.constant 9.99999974E-6 : f32
    %47 = vector.broadcast %cst_41 : f32 to vector<1x64xf32>
    %48 = arith.addf %46, %47 : vector<1x64xf32>
    %49 = math.rsqrt %48 : vector<1x64xf32>
    %cst_42 = arith.constant dense<0.000000e+00> : vector<1x256xf32>
    %50 = tpu.matmul %49, %32, %cst_42 {dimension_numbers = #tpu.dot_dimension_numbers<[1], [0], [0], [1], [0, 0, 1, 1], [], []>} : vector<1x64xf32>, vector<64x256xf32>, vector<1x256xf32> -> vector<1x256xf32>
    %51 = vector.broadcast %50 : vector<1x256xf32> to vector<8x256xf32>
    %52 = arith.mulf %40, %51 : vector<8x256xf32>
    %c0_43 = arith.constant 0 : index
    %c0_44 = arith.constant 0 : index
    %53 = vector.load %arg12[%c0_43, %c0_44] : memref<1x256xf32, #tpu.memory_space<vmem>>, vector<1x256xf32>
    %54 = vector.broadcast %53 : vector<1x256xf32> to vector<8x256xf32>
    %55 = arith.mulf %52, %54 : vector<8x256xf32>
    %c0_45 = arith.constant 0 : index
    %c0_46 = arith.constant 0 : index
    %56 = vector.load %arg13[%c0_45, %c0_46] : memref<1x256xf32, #tpu.memory_space<vmem>>, vector<1x256xf32>
    %57 = vector.broadcast %56 : vector<1x256xf32> to vector<8x256xf32>
    %58 = arith.addf %55, %57 : vector<8x256xf32>
    %cst_47 = arith.constant 0.000000e+00 : f32
    %59 = vector.broadcast %cst_47 : f32 to vector<8x256xf32>
    %60 = arith.maximumf %58, %59 : vector<8x256xf32>
    %61 = arith.truncf %60 : vector<8x256xf32> to vector<8x256xbf16>
    %cst_48 = arith.constant 0.000000e+00 : f32
    %62 = vector.broadcast %cst_48 : f32 to vector<14x224xf32>
    %c0_49 = arith.constant 0 : index
    %c0_50 = arith.constant 0 : index
    %c0_51 = arith.constant 0 : index
    %63 = vector.load %arg5[%c0_49, %c0_50, %c0_51] : memref<3x256x224xbf16, #tpu.memory_space<vmem>>, vector<1x256x224xbf16>
    %64 = vector.shape_cast %63 : vector<1x256x224xbf16> to vector<256x224xbf16>
    %cst_52 = arith.constant dense<0.000000e+00> : vector<8x224xf32>
    %65 = tpu.matmul %61, %64, %cst_52 {dimension_numbers = #tpu.dot_dimension_numbers<[1], [0], [0], [1], [0, 0, 1, 1], [], []>} : vector<8x256xbf16>, vector<256x224xbf16>, vector<8x224xf32> -> vector<8x224xf32>
    %c0_53 = arith.constant 0 : index
    %c0_54 = arith.constant 0 : index
    %c0_55 = arith.constant 0 : index
    %66 = vector.load %arg4[%c0_53, %c0_54, %c0_55] : memref<3x14x8xf32, #tpu.memory_space<vmem>>, vector<1x14x8xf32>
    %67 = vector.shape_cast %66 : vector<1x14x8xf32> to vector<14x8xf32>
    %cst_56 = arith.constant dense<0.000000e+00> : vector<14x224xf32>
    %68 = tpu.matmul %67, %65, %cst_56 {dimension_numbers = #tpu.dot_dimension_numbers<[1], [0], [0], [1], [0, 0, 1, 1], [], []>} : vector<14x8xf32>, vector<8x224xf32>, vector<14x224xf32> -> vector<14x224xf32>
    %69 = arith.addf %62, %68 : vector<14x224xf32>
    %c1_57 = arith.constant 1 : index
    %c0_58 = arith.constant 0 : index
    %c0_59 = arith.constant 0 : index
    %70 = vector.load %arg5[%c1_57, %c0_58, %c0_59] : memref<3x256x224xbf16, #tpu.memory_space<vmem>>, vector<1x256x224xbf16>
    %71 = vector.shape_cast %70 : vector<1x256x224xbf16> to vector<256x224xbf16>
    %cst_60 = arith.constant dense<0.000000e+00> : vector<8x224xf32>
    %72 = tpu.matmul %61, %71, %cst_60 {dimension_numbers = #tpu.dot_dimension_numbers<[1], [0], [0], [1], [0, 0, 1, 1], [], []>} : vector<8x256xbf16>, vector<256x224xbf16>, vector<8x224xf32> -> vector<8x224xf32>
    %c1_61 = arith.constant 1 : index
    %c0_62 = arith.constant 0 : index
    %c0_63 = arith.constant 0 : index
    %73 = vector.load %arg4[%c1_61, %c0_62, %c0_63] : memref<3x14x8xf32, #tpu.memory_space<vmem>>, vector<1x14x8xf32>
    %74 = vector.shape_cast %73 : vector<1x14x8xf32> to vector<14x8xf32>
    %cst_64 = arith.constant dense<0.000000e+00> : vector<14x224xf32>
    %75 = tpu.matmul %74, %72, %cst_64 {dimension_numbers = #tpu.dot_dimension_numbers<[1], [0], [0], [1], [0, 0, 1, 1], [], []>} : vector<14x8xf32>, vector<8x224xf32>, vector<14x224xf32> -> vector<14x224xf32>
    %76 = arith.addf %69, %75 : vector<14x224xf32>
    %c2_65 = arith.constant 2 : index
    %c0_66 = arith.constant 0 : index
    %c0_67 = arith.constant 0 : index
    %77 = vector.load %arg5[%c2_65, %c0_66, %c0_67] : memref<3x256x224xbf16, #tpu.memory_space<vmem>>, vector<1x256x224xbf16>
    %78 = vector.shape_cast %77 : vector<1x256x224xbf16> to vector<256x224xbf16>
    %cst_68 = arith.constant dense<0.000000e+00> : vector<8x224xf32>
    %79 = tpu.matmul %61, %78, %cst_68 {dimension_numbers = #tpu.dot_dimension_numbers<[1], [0], [0], [1], [0, 0, 1, 1], [], []>} : vector<8x256xbf16>, vector<256x224xbf16>, vector<8x224xf32> -> vector<8x224xf32>
    %c2_69 = arith.constant 2 : index
    %c0_70 = arith.constant 0 : index
    %c0_71 = arith.constant 0 : index
    %80 = vector.load %arg4[%c2_69, %c0_70, %c0_71] : memref<3x14x8xf32, #tpu.memory_space<vmem>>, vector<1x14x8xf32>
    %81 = vector.shape_cast %80 : vector<1x14x8xf32> to vector<14x8xf32>
    %cst_72 = arith.constant dense<0.000000e+00> : vector<14x224xf32>
    %82 = tpu.matmul %81, %79, %cst_72 {dimension_numbers = #tpu.dot_dimension_numbers<[1], [0], [0], [1], [0, 0, 1, 1], [], []>} : vector<14x8xf32>, vector<8x224xf32>, vector<14x224xf32> -> vector<14x224xf32>
    %83 = arith.addf %76, %82 : vector<14x224xf32>
    %c0_73 = arith.constant 0 : index
    %c0_74 = arith.constant 0 : index
    %84 = vector.load %arg14[%c0_73, %c0_74] : memref<224x32xf32, #tpu.memory_space<vmem>>, vector<224x32xf32>
    %c0_75 = arith.constant 0 : index
    %c0_76 = arith.constant 0 : index
    %85 = vector.load %arg15[%c0_75, %c0_76] : memref<32x224xf32, #tpu.memory_space<vmem>>, vector<32x224xf32>
    %cst_77 = arith.constant dense<0.000000e+00> : vector<224xf32>
    %86 = vector.multi_reduction <add>, %83, %cst_77 [0] : vector<14x224xf32> to vector<224xf32>
    %87 = vector.shape_cast %86 : vector<224xf32> to vector<1x224xf32>
    %cst_78 = arith.constant dense<0.000000e+00> : vector<1x32xf32>
    %88 = tpu.matmul %87, %84, %cst_78 {dimension_numbers = #tpu.dot_dimension_numbers<[1], [0], [0], [1], [0, 0, 1, 1], [], []>} : vector<1x224xf32>, vector<224x32xf32>, vector<1x32xf32> -> vector<1x32xf32>
    %cst_79 = arith.constant 0.0102040814 : f32
    %89 = vector.broadcast %cst_79 : f32 to vector<1x32xf32>
    %90 = arith.mulf %88, %89 : vector<1x32xf32>
    %cst_80 = arith.constant dense<0.000000e+00> : vector<1x224xf32>
    %91 = tpu.matmul %90, %85, %cst_80 {dimension_numbers = #tpu.dot_dimension_numbers<[1], [0], [0], [1], [0, 0, 1, 1], [], []>} : vector<1x32xf32>, vector<32x224xf32>, vector<1x224xf32> -> vector<1x224xf32>
    %92 = vector.broadcast %91 : vector<1x224xf32> to vector<14x224xf32>
    %93 = arith.subf %83, %92 : vector<14x224xf32>
    %94 = arith.mulf %93, %93 : vector<14x224xf32>
    %cst_81 = arith.constant dense<0.000000e+00> : vector<224xf32>
    %95 = vector.multi_reduction <add>, %94, %cst_81 [0] : vector<14x224xf32> to vector<224xf32>
    %96 = vector.shape_cast %95 : vector<224xf32> to vector<1x224xf32>
    %cst_82 = arith.constant dense<0.000000e+00> : vector<1x32xf32>
    %97 = tpu.matmul %96, %84, %cst_82 {dimension_numbers = #tpu.dot_dimension_numbers<[1], [0], [0], [1], [0, 0, 1, 1], [], []>} : vector<1x224xf32>, vector<224x32xf32>, vector<1x32xf32> -> vector<1x32xf32>
    %cst_83 = arith.constant 0.0102040814 : f32
    %98 = vector.broadcast %cst_83 : f32 to vector<1x32xf32>
    %99 = arith.mulf %97, %98 : vector<1x32xf32>
    %cst_84 = arith.constant 9.99999974E-6 : f32
    %100 = vector.broadcast %cst_84 : f32 to vector<1x32xf32>
    %101 = arith.addf %99, %100 : vector<1x32xf32>
    %102 = math.rsqrt %101 : vector<1x32xf32>
    %cst_85 = arith.constant dense<0.000000e+00> : vector<1x224xf32>
    %103 = tpu.matmul %102, %85, %cst_85 {dimension_numbers = #tpu.dot_dimension_numbers<[1], [0], [0], [1], [0, 0, 1, 1], [], []>} : vector<1x32xf32>, vector<32x224xf32>, vector<1x224xf32> -> vector<1x224xf32>
    %104 = vector.broadcast %103 : vector<1x224xf32> to vector<14x224xf32>
    %105 = arith.mulf %93, %104 : vector<14x224xf32>
    %c0_86 = arith.constant 0 : index
    %c0_87 = arith.constant 0 : index
    %106 = vector.load %arg16[%c0_86, %c0_87] : memref<1x224xf32, #tpu.memory_space<vmem>>, vector<1x224xf32>
    %107 = vector.broadcast %106 : vector<1x224xf32> to vector<14x224xf32>
    %108 = arith.mulf %105, %107 : vector<14x224xf32>
    %c0_88 = arith.constant 0 : index
    %c0_89 = arith.constant 0 : index
    %109 = vector.load %arg17[%c0_88, %c0_89] : memref<1x224xf32, #tpu.memory_space<vmem>>, vector<1x224xf32>
    %110 = vector.broadcast %109 : vector<1x224xf32> to vector<14x224xf32>
    %111 = arith.addf %108, %110 : vector<14x224xf32>
    %cst_90 = arith.constant 0.000000e+00 : f32
    %112 = vector.broadcast %cst_90 : f32 to vector<14x224xf32>
    %113 = arith.maximumf %111, %112 : vector<14x224xf32>
    %114 = arith.truncf %113 : vector<14x224xf32> to vector<14x224xbf16>
    %cst_91 = arith.constant 0.000000e+00 : f32
    %115 = vector.broadcast %cst_91 : f32 to vector<28x224xf32>
    %c0_92 = arith.constant 0 : index
    %c0_93 = arith.constant 0 : index
    %c0_94 = arith.constant 0 : index
    %116 = vector.load %arg7[%c0_92, %c0_93, %c0_94] : memref<4x224x224xbf16, #tpu.memory_space<vmem>>, vector<1x224x224xbf16>
    %117 = vector.shape_cast %116 : vector<1x224x224xbf16> to vector<224x224xbf16>
    %cst_95 = arith.constant dense<0.000000e+00> : vector<14x224xf32>
    %118 = tpu.matmul %114, %117, %cst_95 {dimension_numbers = #tpu.dot_dimension_numbers<[1], [0], [0], [1], [0, 0, 1, 1], [], []>} : vector<14x224xbf16>, vector<224x224xbf16>, vector<14x224xf32> -> vector<14x224xf32>
    %c0_96 = arith.constant 0 : index
    %c0_97 = arith.constant 0 : index
    %c0_98 = arith.constant 0 : index
    %119 = vector.load %arg6[%c0_96, %c0_97, %c0_98] : memref<4x28x14xf32, #tpu.memory_space<vmem>>, vector<1x28x14xf32>
    %120 = vector.shape_cast %119 : vector<1x28x14xf32> to vector<28x14xf32>
    %cst_99 = arith.constant dense<0.000000e+00> : vector<28x224xf32>
    %121 = tpu.matmul %120, %118, %cst_99 {dimension_numbers = #tpu.dot_dimension_numbers<[1], [0], [0], [1], [0, 0, 1, 1], [], []>} : vector<28x14xf32>, vector<14x224xf32>, vector<28x224xf32> -> vector<28x224xf32>
    %122 = arith.addf %115, %121 : vector<28x224xf32>
    %c1_100 = arith.constant 1 : index
    %c0_101 = arith.constant 0 : index
    %c0_102 = arith.constant 0 : index
    %123 = vector.load %arg7[%c1_100, %c0_101, %c0_102] : memref<4x224x224xbf16, #tpu.memory_space<vmem>>, vector<1x224x224xbf16>
    %124 = vector.shape_cast %123 : vector<1x224x224xbf16> to vector<224x224xbf16>
    %cst_103 = arith.constant dense<0.000000e+00> : vector<14x224xf32>
    %125 = tpu.matmul %114, %124, %cst_103 {dimension_numbers = #tpu.dot_dimension_numbers<[1], [0], [0], [1], [0, 0, 1, 1], [], []>} : vector<14x224xbf16>, vector<224x224xbf16>, vector<14x224xf32> -> vector<14x224xf32>
    %c1_104 = arith.constant 1 : index
    %c0_105 = arith.constant 0 : index
    %c0_106 = arith.constant 0 : index
    %126 = vector.load %arg6[%c1_104, %c0_105, %c0_106] : memref<4x28x14xf32, #tpu.memory_space<vmem>>, vector<1x28x14xf32>
    %127 = vector.shape_cast %126 : vector<1x28x14xf32> to vector<28x14xf32>
    %cst_107 = arith.constant dense<0.000000e+00> : vector<28x224xf32>
    %128 = tpu.matmul %127, %125, %cst_107 {dimension_numbers = #tpu.dot_dimension_numbers<[1], [0], [0], [1], [0, 0, 1, 1], [], []>} : vector<28x14xf32>, vector<14x224xf32>, vector<28x224xf32> -> vector<28x224xf32>
    %129 = arith.addf %122, %128 : vector<28x224xf32>
    %c2_108 = arith.constant 2 : index
    %c0_109 = arith.constant 0 : index
    %c0_110 = arith.constant 0 : index
    %130 = vector.load %arg7[%c2_108, %c0_109, %c0_110] : memref<4x224x224xbf16, #tpu.memory_space<vmem>>, vector<1x224x224xbf16>
    %131 = vector.shape_cast %130 : vector<1x224x224xbf16> to vector<224x224xbf16>
    %cst_111 = arith.constant dense<0.000000e+00> : vector<14x224xf32>
    %132 = tpu.matmul %114, %131, %cst_111 {dimension_numbers = #tpu.dot_dimension_numbers<[1], [0], [0], [1], [0, 0, 1, 1], [], []>} : vector<14x224xbf16>, vector<224x224xbf16>, vector<14x224xf32> -> vector<14x224xf32>
    %c2_112 = arith.constant 2 : index
    %c0_113 = arith.constant 0 : index
    %c0_114 = arith.constant 0 : index
    %133 = vector.load %arg6[%c2_112, %c0_113, %c0_114] : memref<4x28x14xf32, #tpu.memory_space<vmem>>, vector<1x28x14xf32>
    %134 = vector.shape_cast %133 : vector<1x28x14xf32> to vector<28x14xf32>
    %cst_115 = arith.constant dense<0.000000e+00> : vector<28x224xf32>
    %135 = tpu.matmul %134, %132, %cst_115 {dimension_numbers = #tpu.dot_dimension_numbers<[1], [0], [0], [1], [0, 0, 1, 1], [], []>} : vector<28x14xf32>, vector<14x224xf32>, vector<28x224xf32> -> vector<28x224xf32>
    %136 = arith.addf %129, %135 : vector<28x224xf32>
    %c3_116 = arith.constant 3 : index
    %c0_117 = arith.constant 0 : index
    %c0_118 = arith.constant 0 : index
    %137 = vector.load %arg7[%c3_116, %c0_117, %c0_118] : memref<4x224x224xbf16, #tpu.memory_space<vmem>>, vector<1x224x224xbf16>
    %138 = vector.shape_cast %137 : vector<1x224x224xbf16> to vector<224x224xbf16>
    %cst_119 = arith.constant dense<0.000000e+00> : vector<14x224xf32>
    %139 = tpu.matmul %114, %138, %cst_119 {dimension_numbers = #tpu.dot_dimension_numbers<[1], [0], [0], [1], [0, 0, 1, 1], [], []>} : vector<14x224xbf16>, vector<224x224xbf16>, vector<14x224xf32> -> vector<14x224xf32>
    %c3_120 = arith.constant 3 : index
    %c0_121 = arith.constant 0 : index
    %c0_122 = arith.constant 0 : index
    %140 = vector.load %arg6[%c3_120, %c0_121, %c0_122] : memref<4x28x14xf32, #tpu.memory_space<vmem>>, vector<1x28x14xf32>
    %141 = vector.shape_cast %140 : vector<1x28x14xf32> to vector<28x14xf32>
    %cst_123 = arith.constant dense<0.000000e+00> : vector<28x224xf32>
    %142 = tpu.matmul %141, %139, %cst_123 {dimension_numbers = #tpu.dot_dimension_numbers<[1], [0], [0], [1], [0, 0, 1, 1], [], []>} : vector<28x14xf32>, vector<14x224xf32>, vector<28x224xf32> -> vector<28x224xf32>
    %143 = arith.addf %136, %142 : vector<28x224xf32>
    %c0_124 = arith.constant 0 : index
    %c0_125 = arith.constant 0 : index
    %144 = vector.load %arg18[%c0_124, %c0_125] : memref<224x16xf32, #tpu.memory_space<vmem>>, vector<224x16xf32>
    %c0_126 = arith.constant 0 : index
    %c0_127 = arith.constant 0 : index
    %145 = vector.load %arg19[%c0_126, %c0_127] : memref<16x224xf32, #tpu.memory_space<vmem>>, vector<16x224xf32>
    %cst_128 = arith.constant dense<0.000000e+00> : vector<224xf32>
    %146 = vector.multi_reduction <add>, %143, %cst_128 [0] : vector<28x224xf32> to vector<224xf32>
    %147 = vector.shape_cast %146 : vector<224xf32> to vector<1x224xf32>
    %cst_129 = arith.constant dense<0.000000e+00> : vector<1x16xf32>
    %148 = tpu.matmul %147, %144, %cst_129 {dimension_numbers = #tpu.dot_dimension_numbers<[1], [0], [0], [1], [0, 0, 1, 1], [], []>} : vector<1x224xf32>, vector<224x16xf32>, vector<1x16xf32> -> vector<1x16xf32>
    %cst_130 = arith.constant 0.00255102036 : f32
    %149 = vector.broadcast %cst_130 : f32 to vector<1x16xf32>
    %150 = arith.mulf %148, %149 : vector<1x16xf32>
    %cst_131 = arith.constant dense<0.000000e+00> : vector<1x224xf32>
    %151 = tpu.matmul %150, %145, %cst_131 {dimension_numbers = #tpu.dot_dimension_numbers<[1], [0], [0], [1], [0, 0, 1, 1], [], []>} : vector<1x16xf32>, vector<16x224xf32>, vector<1x224xf32> -> vector<1x224xf32>
    %152 = vector.broadcast %151 : vector<1x224xf32> to vector<28x224xf32>
    %153 = arith.subf %143, %152 : vector<28x224xf32>
    %154 = arith.mulf %153, %153 : vector<28x224xf32>
    %cst_132 = arith.constant dense<0.000000e+00> : vector<224xf32>
    %155 = vector.multi_reduction <add>, %154, %cst_132 [0] : vector<28x224xf32> to vector<224xf32>
    %156 = vector.shape_cast %155 : vector<224xf32> to vector<1x224xf32>
    %cst_133 = arith.constant dense<0.000000e+00> : vector<1x16xf32>
    %157 = tpu.matmul %156, %144, %cst_133 {dimension_numbers = #tpu.dot_dimension_numbers<[1], [0], [0], [1], [0, 0, 1, 1], [], []>} : vector<1x224xf32>, vector<224x16xf32>, vector<1x16xf32> -> vector<1x16xf32>
    %cst_134 = arith.constant 0.00255102036 : f32
    %158 = vector.broadcast %cst_134 : f32 to vector<1x16xf32>
    %159 = arith.mulf %157, %158 : vector<1x16xf32>
    %cst_135 = arith.constant 9.99999974E-6 : f32
    %160 = vector.broadcast %cst_135 : f32 to vector<1x16xf32>
    %161 = arith.addf %159, %160 : vector<1x16xf32>
    %162 = math.rsqrt %161 : vector<1x16xf32>
    %cst_136 = arith.constant dense<0.000000e+00> : vector<1x224xf32>
    %163 = tpu.matmul %162, %145, %cst_136 {dimension_numbers = #tpu.dot_dimension_numbers<[1], [0], [0], [1], [0, 0, 1, 1], [], []>} : vector<1x16xf32>, vector<16x224xf32>, vector<1x224xf32> -> vector<1x224xf32>
    %164 = vector.broadcast %163 : vector<1x224xf32> to vector<28x224xf32>
    %165 = arith.mulf %153, %164 : vector<28x224xf32>
    %c0_137 = arith.constant 0 : index
    %c0_138 = arith.constant 0 : index
    %166 = vector.load %arg20[%c0_137, %c0_138] : memref<1x224xf32, #tpu.memory_space<vmem>>, vector<1x224xf32>
    %167 = vector.broadcast %166 : vector<1x224xf32> to vector<28x224xf32>
    %168 = arith.mulf %165, %167 : vector<28x224xf32>
    %c0_139 = arith.constant 0 : index
    %c0_140 = arith.constant 0 : index
    %169 = vector.load %arg21[%c0_139, %c0_140] : memref<1x224xf32, #tpu.memory_space<vmem>>, vector<1x224xf32>
    %170 = vector.broadcast %169 : vector<1x224xf32> to vector<28x224xf32>
    %171 = arith.addf %168, %170 : vector<28x224xf32>
    %cst_141 = arith.constant 0.000000e+00 : f32
    %172 = vector.broadcast %cst_141 : f32 to vector<28x224xf32>
    %173 = arith.maximumf %171, %172 : vector<28x224xf32>
    %174 = arith.truncf %173 : vector<28x224xf32> to vector<28x224xbf16>
    %cst_142 = arith.constant 0.000000e+00 : f32
    %175 = vector.broadcast %cst_142 : f32 to vector<56x28xf32>
    %c0_143 = arith.constant 0 : index
    %c0_144 = arith.constant 0 : index
    %c0_145 = arith.constant 0 : index
    %176 = vector.load %arg9[%c0_143, %c0_144, %c0_145] : memref<4x224x28xbf16, #tpu.memory_space<vmem>>, vector<1x224x28xbf16>
    %177 = vector.shape_cast %176 : vector<1x224x28xbf16> to vector<224x28xbf16>
    %cst_146 = arith.constant dense<0.000000e+00> : vector<28x28xf32>
    %178 = tpu.matmul %174, %177, %cst_146 {dimension_numbers = #tpu.dot_dimension_numbers<[1], [0], [0], [1], [0, 0, 1, 1], [], []>} : vector<28x224xbf16>, vector<224x28xbf16>, vector<28x28xf32> -> vector<28x28xf32>
    %c0_147 = arith.constant 0 : index
    %c0_148 = arith.constant 0 : index
    %c0_149 = arith.constant 0 : index
    %179 = vector.load %arg8[%c0_147, %c0_148, %c0_149] : memref<4x56x28xf32, #tpu.memory_space<vmem>>, vector<1x56x28xf32>
    %180 = vector.shape_cast %179 : vector<1x56x28xf32> to vector<56x28xf32>
    %cst_150 = arith.constant dense<0.000000e+00> : vector<56x28xf32>
    %181 = tpu.matmul %180, %178, %cst_150 {dimension_numbers = #tpu.dot_dimension_numbers<[1], [0], [0], [1], [0, 0, 1, 1], [], []>} : vector<56x28xf32>, vector<28x28xf32>, vector<56x28xf32> -> vector<56x28xf32>
    %182 = arith.addf %175, %181 : vector<56x28xf32>
    %c1_151 = arith.constant 1 : index
    %c0_152 = arith.constant 0 : index
    %c0_153 = arith.constant 0 : index
    %183 = vector.load %arg9[%c1_151, %c0_152, %c0_153] : memref<4x224x28xbf16, #tpu.memory_space<vmem>>, vector<1x224x28xbf16>
    %184 = vector.shape_cast %183 : vector<1x224x28xbf16> to vector<224x28xbf16>
    %cst_154 = arith.constant dense<0.000000e+00> : vector<28x28xf32>
    %185 = tpu.matmul %174, %184, %cst_154 {dimension_numbers = #tpu.dot_dimension_numbers<[1], [0], [0], [1], [0, 0, 1, 1], [], []>} : vector<28x224xbf16>, vector<224x28xbf16>, vector<28x28xf32> -> vector<28x28xf32>
    %c1_155 = arith.constant 1 : index
    %c0_156 = arith.constant 0 : index
    %c0_157 = arith.constant 0 : index
    %186 = vector.load %arg8[%c1_155, %c0_156, %c0_157] : memref<4x56x28xf32, #tpu.memory_space<vmem>>, vector<1x56x28xf32>
    %187 = vector.shape_cast %186 : vector<1x56x28xf32> to vector<56x28xf32>
    %cst_158 = arith.constant dense<0.000000e+00> : vector<56x28xf32>
    %188 = tpu.matmul %187, %185, %cst_158 {dimension_numbers = #tpu.dot_dimension_numbers<[1], [0], [0], [1], [0, 0, 1, 1], [], []>} : vector<56x28xf32>, vector<28x28xf32>, vector<56x28xf32> -> vector<56x28xf32>
    %189 = arith.addf %182, %188 : vector<56x28xf32>
    %c2_159 = arith.constant 2 : index
    %c0_160 = arith.constant 0 : index
    %c0_161 = arith.constant 0 : index
    %190 = vector.load %arg9[%c2_159, %c0_160, %c0_161] : memref<4x224x28xbf16, #tpu.memory_space<vmem>>, vector<1x224x28xbf16>
    %191 = vector.shape_cast %190 : vector<1x224x28xbf16> to vector<224x28xbf16>
    %cst_162 = arith.constant dense<0.000000e+00> : vector<28x28xf32>
    %192 = tpu.matmul %174, %191, %cst_162 {dimension_numbers = #tpu.dot_dimension_numbers<[1], [0], [0], [1], [0, 0, 1, 1], [], []>} : vector<28x224xbf16>, vector<224x28xbf16>, vector<28x28xf32> -> vector<28x28xf32>
    %c2_163 = arith.constant 2 : index
    %c0_164 = arith.constant 0 : index
    %c0_165 = arith.constant 0 : index
    %193 = vector.load %arg8[%c2_163, %c0_164, %c0_165] : memref<4x56x28xf32, #tpu.memory_space<vmem>>, vector<1x56x28xf32>
    %194 = vector.shape_cast %193 : vector<1x56x28xf32> to vector<56x28xf32>
    %cst_166 = arith.constant dense<0.000000e+00> : vector<56x28xf32>
    %195 = tpu.matmul %194, %192, %cst_166 {dimension_numbers = #tpu.dot_dimension_numbers<[1], [0], [0], [1], [0, 0, 1, 1], [], []>} : vector<56x28xf32>, vector<28x28xf32>, vector<56x28xf32> -> vector<56x28xf32>
    %196 = arith.addf %189, %195 : vector<56x28xf32>
    %c3_167 = arith.constant 3 : index
    %c0_168 = arith.constant 0 : index
    %c0_169 = arith.constant 0 : index
    %197 = vector.load %arg9[%c3_167, %c0_168, %c0_169] : memref<4x224x28xbf16, #tpu.memory_space<vmem>>, vector<1x224x28xbf16>
    %198 = vector.shape_cast %197 : vector<1x224x28xbf16> to vector<224x28xbf16>
    %cst_170 = arith.constant dense<0.000000e+00> : vector<28x28xf32>
    %199 = tpu.matmul %174, %198, %cst_170 {dimension_numbers = #tpu.dot_dimension_numbers<[1], [0], [0], [1], [0, 0, 1, 1], [], []>} : vector<28x224xbf16>, vector<224x28xbf16>, vector<28x28xf32> -> vector<28x28xf32>
    %c3_171 = arith.constant 3 : index
    %c0_172 = arith.constant 0 : index
    %c0_173 = arith.constant 0 : index
    %200 = vector.load %arg8[%c3_171, %c0_172, %c0_173] : memref<4x56x28xf32, #tpu.memory_space<vmem>>, vector<1x56x28xf32>
    %201 = vector.shape_cast %200 : vector<1x56x28xf32> to vector<56x28xf32>
    %cst_174 = arith.constant dense<0.000000e+00> : vector<56x28xf32>
    %202 = tpu.matmul %201, %199, %cst_174 {dimension_numbers = #tpu.dot_dimension_numbers<[1], [0], [0], [1], [0, 0, 1, 1], [], []>} : vector<56x28xf32>, vector<28x28xf32>, vector<56x28xf32> -> vector<56x28xf32>
    %203 = arith.addf %196, %202 : vector<56x28xf32>
    %204 = math.tanh %203 : vector<56x28xf32>
    %c0_175 = arith.constant 0 : index
    %c0_176 = arith.constant 0 : index
    %205 = vector.load %arg22[%c0_175, %c0_176] : memref<56x28xf32, #tpu.memory_space<vmem>>, vector<56x28xf32>
    tpu.vector_store %arg22[%c0_175, %c0_176], %204 {strides = array<i32>} : memref<56x28xf32, #tpu.memory_space<vmem>>, vector<56x28xf32>,
    return
  }
  func.func @transform_0(%arg0: i32) -> (i32, i32) {
    %c0_i32 = arith.constant 0 : i32
    %c0_i32_0 = arith.constant 0 : i32
    %c0_i32_1 = arith.constant 0 : i32
    return %c0_i32, %c0_i32_0 : i32, i32
  }
  func.func @transform_1(%arg0: i32) -> (i32, i32, i32) {
    %c0_i32 = arith.constant 0 : i32
    %c0_i32_0 = arith.constant 0 : i32
    %c0_i32_1 = arith.constant 0 : i32
    %c0_i32_2 = arith.constant 0 : i32
    return %c0_i32, %c0_i32_0, %c0_i32_1 : i32, i32, i32
  }
  func.func @transform_2(%arg0: i32) -> (i32, i32, i32) {
    %c0_i32 = arith.constant 0 : i32
    %c0_i32_0 = arith.constant 0 : i32
    %c0_i32_1 = arith.constant 0 : i32
    %c0_i32_2 = arith.constant 0 : i32
    return %c0_i32, %c0_i32_0, %c0_i32_1 : i32, i32, i32
  }
  func.func @transform_3(%arg0: i32) -> (i32, i32, i32) {
    %c0_i32 = arith.constant 0 : i32
    %c0_i32_0 = arith.constant 0 : i32
    %c0_i32_1 = arith.constant 0 : i32
    %c0_i32_2 = arith.constant 0 : i32
    return %c0_i32, %c0_i32_0, %c0_i32_1 : i32, i32, i32
  }
  func.func @transform_4(%arg0: i32) -> (i32, i32, i32) {
    %c0_i32 = arith.constant 0 : i32
    %c0_i32_0 = arith.constant 0 : i32
    %c0_i32_1 = arith.constant 0 : i32
    %c0_i32_2 = arith.constant 0 : i32
    return %c0_i32, %c0_i32_0, %c0_i32_1 : i32, i32, i32
  }
  func.func @transform_5(%arg0: i32) -> (i32, i32, i32) {
    %c0_i32 = arith.constant 0 : i32
    %c0_i32_0 = arith.constant 0 : i32
    %c0_i32_1 = arith.constant 0 : i32
    %c0_i32_2 = arith.constant 0 : i32
    return %c0_i32, %c0_i32_0, %c0_i32_1 : i32, i32, i32
  }
  func.func @transform_6(%arg0: i32) -> (i32, i32, i32) {
    %c0_i32 = arith.constant 0 : i32
    %c0_i32_0 = arith.constant 0 : i32
    %c0_i32_1 = arith.constant 0 : i32
    %c0_i32_2 = arith.constant 0 : i32
    return %c0_i32, %c0_i32_0, %c0_i32_1 : i32, i32, i32
  }
  func.func @transform_7(%arg0: i32) -> (i32, i32, i32) {
    %c0_i32 = arith.constant 0 : i32
    %c0_i32_0 = arith.constant 0 : i32
    %c0_i32_1 = arith.constant 0 : i32
    %c0_i32_2 = arith.constant 0 : i32
    return %c0_i32, %c0_i32_0, %c0_i32_1 : i32, i32, i32
  }
  func.func @transform_8(%arg0: i32) -> (i32, i32, i32) {
    %c0_i32 = arith.constant 0 : i32
    %c0_i32_0 = arith.constant 0 : i32
    %c0_i32_1 = arith.constant 0 : i32
    %c0_i32_2 = arith.constant 0 : i32
    return %c0_i32, %c0_i32_0, %c0_i32_1 : i32, i32, i32
  }
  func.func @transform_9(%arg0: i32) -> (i32, i32) {
    %c0_i32 = arith.constant 0 : i32
    %c0_i32_0 = arith.constant 0 : i32
    %c0_i32_1 = arith.constant 0 : i32
    return %c0_i32, %c0_i32_0 : i32, i32
  }
  func.func @transform_10(%arg0: i32) -> (i32, i32) {
    %c0_i32 = arith.constant 0 : i32
    %c0_i32_0 = arith.constant 0 : i32
    %c0_i32_1 = arith.constant 0 : i32
    return %c0_i32, %c0_i32_0 : i32, i32
  }
  func.func @transform_11(%arg0: i32) -> (i32, i32) {
    %c0_i32 = arith.constant 0 : i32
    %c0_i32_0 = arith.constant 0 : i32
    %c0_i32_1 = arith.constant 0 : i32
    return %c0_i32, %c0_i32_0 : i32, i32
  }
  func.func @transform_12(%arg0: i32) -> (i32, i32) {
    %c0_i32 = arith.constant 0 : i32
    %c0_i32_0 = arith.constant 0 : i32
    %c0_i32_1 = arith.constant 0 : i32
    return %c0_i32, %c0_i32_0 : i32, i32
  }
  func.func @transform_13(%arg0: i32) -> (i32, i32) {
    %c0_i32 = arith.constant 0 : i32
    %c0_i32_0 = arith.constant 0 : i32
    %c0_i32_1 = arith.constant 0 : i32
    return %c0_i32, %c0_i32_0 : i32, i32
  }
  func.func @transform_14(%arg0: i32) -> (i32, i32) {
    %c0_i32 = arith.constant 0 : i32
    %c0_i32_0 = arith.constant 0 : i32
    %c0_i32_1 = arith.constant 0 : i32
    return %c0_i32, %c0_i32_0 : i32, i32
  }
  func.func @transform_15(%arg0: i32) -> (i32, i32) {
    %c0_i32 = arith.constant 0 : i32
    %c0_i32_0 = arith.constant 0 : i32
    %c0_i32_1 = arith.constant 0 : i32
    return %c0_i32, %c0_i32_0 : i32, i32
  }
  func.func @transform_16(%arg0: i32) -> (i32, i32) {
    %c0_i32 = arith.constant 0 : i32
    %c0_i32_0 = arith.constant 0 : i32
    %c0_i32_1 = arith.constant 0 : i32
    return %c0_i32, %c0_i32_0 : i32, i32
  }
  func.func @transform_17(%arg0: i32) -> (i32, i32) {
    %c0_i32 = arith.constant 0 : i32
    %c0_i32_0 = arith.constant 0 : i32
    %c0_i32_1 = arith.constant 0 : i32
    return %c0_i32, %c0_i32_0 : i32, i32
  }
  func.func @transform_18(%arg0: i32) -> (i32, i32) {
    %c0_i32 = arith.constant 0 : i32
    %c0_i32_0 = arith.constant 0 : i32
    %c0_i32_1 = arith.constant 0 : i32
    return %c0_i32, %c0_i32_0 : i32, i32
  }
  func.func @transform_19(%arg0: i32) -> (i32, i32) {
    %c0_i32 = arith.constant 0 : i32
    %c0_i32_0 = arith.constant 0 : i32
    %c0_i32_1 = arith.constant 0 : i32
    return %c0_i32, %c0_i32_0 : i32, i32
  }
  func.func @transform_20(%arg0: i32) -> (i32, i32) {
    %c0_i32 = arith.constant 0 : i32
    %c0_i32_0 = arith.constant 0 : i32
    %c0_i32_1 = arith.constant 0 : i32
    return %c0_i32, %c0_i32_0 : i32, i32
  }
  func.func @transform_21(%arg0: i32) -> (i32, i32) {
    %c0_i32 = arith.constant 0 : i32
    %c0_i32_0 = arith.constant 0 : i32
    %c0_i32_1 = arith.constant 0 : i32
    return %c0_i32, %c0_i32_0 : i32, i32
  }
}

</mosaic_0001>

<bundles_post_ra>
// kernel: tile.53
= control target key start
LH: loop header
LB: loop body
LE: loop exit
PB: predicated region body
PF: predicated region fallthrough
CT: control target
= control target key end

     0   :  { %s28_s0 = inlined_call_operand.vmem [shape: f32[16], index: 0, kind: input, shape index: {}]   ;;  %s29_s1 = inlined_call_operand.vmem [shape: f32[14,16], index: 1, kind: output, shape index: {}]  }
   0x1   :  { %v4_v0 = vld [vmem:[%s28_s0] ss:$0 sm:$0xff] }
   0x2   :  { %5 = vst [vmem:[%s29_s1] sm:$0xff] %v4_v0  ;;  %8 = vst [vmem:[%s29_s1 + $0x8] sm:$0xff] %v4_v0 }

// kernel: tile.54
= control target key start
LH: loop header
LB: loop body
LE: loop exit
PB: predicated region body
PF: predicated region fallthrough
CT: control target
= control target key end

     0   :  { %s19_s8 = smov 3  ;;  %s79_s9 = smov 112   ;;  %vm4_vm0 = vcmask 130048   ;;  %vm10_vm1 = vcmask 1048448   ;;  %vm16_vm2 = vcmask 917248   ;;  %vm23_vm3 = vcmask 786048   ;;  %s126_s0 = inlined_call_operand.vmem [shape: f32[14,16], index: 0, kind: input, shape index: {}]   ;;  %s127_s1 = inlined_call_operand.vmem [shape: f32[1,224], index: 1, kind: output, shape index: {}]  }
   0x1   :  { %v64_v0 = vld [vmem:[%s126_s0 + $0x7] sm:$0x1]   ;;  %v66_v1 = vld [vmem:[%s126_s0 + $0x5] ss:$8 sm:%s19_s8]   ;;  %s80_s12 = smov 80   ;;  %s26_s15 = smov 3 }
   0x2   :  { %8 = vrot.lane.b32.xlu0 %v64_v0, %s79_s9  ;;  %21 = vrot.lane.b32.xlu1 %v66_v1, %s80_s12  ;;  %v65_v2 = vld [vmem:[%s126_s0 + $0x6] sm:$0x1]   ;;  %s33_s18 = smov 3  ;;  %s40_s19 = smov 3  ;;  %vm30_vm4 = vcmask 654848   ;;  %vm37_vm5 = vcmask 523648  }
   0x3   :  { %v67_v3 = vld [vmem:[%s126_s0 + $0x4] ss:$8 sm:%s26_s15]   ;;  %s81_s20 = smov 96   ;;  %s82_s21 = smov 64   ;;  %v68_v4 = vld [vmem:[%s126_s0 + $0x3] ss:$8 sm:%s33_s18]  }
   0x4   :  { %s2_s24 = smov 3  ;;  %v69_v5 = vld [vmem:[%s126_s0 + $0x2] ss:$8 sm:%s40_s19]   ;;  %s47_s27 = smov 3  ;;  %vm44_vm6 = vcmask 392448   ;;  %vm51_vm7 = vcmask 261248  }
   0x5   :  { %v3_v6 = vld [vmem:[%s126_s0] ss:$8 sm:%s2_s24]   ;;  %s83_s30 = smov 48   ;;  %s84_s2 = smov 32   ;;  %v70_v7 = vld [vmem:[%s126_s0 + $0x1] ss:$8 sm:%s47_s27]  }
   0x6   :  { %14 = vrot.lane.b32.xlu0 %v65_v2, %s81_s20  ;;  %28 = vrot.lane.b32.xlu1 %v67_v3, %s82_s21  ;;  %5 = vst.msk [vmem:[#allocation0] ss:$8 sm:$0x3] %vm4_vm0, %v3_v6   ;;  %s85_s0 = smov 16  }
   0xa   :  { %35 = vrot.lane.b32.xlu0 %v68_v4, %s83_s30  ;;  %42 = vrot.lane.b32.xlu1 %v69_v5, %s84_s2 }
   0xe   :  { %49 = vrot.lane.b32.xlu0 %v70_v7, %s85_s0 }
  0x74   :  { %v9_v8 = vpop.permute.xlu0 %8   ;;  %v22_v9 = vpop.permute.xlu1 %21  }
  0x75   :  { %11 = vst.msk [vmem:[#allocation0] sm:$0x1] %vm10_vm1, %v9_v8  }
  0x78   :  { %v15_v10 = vpop.permute.xlu0 %14   ;;  %v29_v11 = vpop.permute.xlu1 %28  }
  0x79   :  { %17 = vst.msk [vmem:[#allocation0] sm:$0x1] %vm16_vm2, %v15_v10  }
  0x7a   :  { %24 = vst.msk [vmem:[#allocation0] ss:$8 sm:$0x3] %vm23_vm3, %v22_v9  }
  0x7b   :  { %31 = vst.msk [vmem:[#allocation0] ss:$8 sm:$0x3] %vm30_vm4, %v29_v11  }
  0x7c   :  { %v36_v12 = vpop.permute.xlu0 %35   ;;  %v43_v13 = vpop.permute.xlu1 %42  }
  0x7d   :  { %38 = vst.msk [vmem:[#allocation0] ss:$8 sm:$0x3] %vm37_vm5, %v36_v12  }
  0x7e   :  { %45 = vst.msk [vmem:[#allocation0] ss:$8 sm:$0x3] %vm44_vm6, %v43_v13  }
  0x80   :  { %v50_v14 = vpop.permute.xlu0 %49  }
  0x81   :  { %52 = vst.msk [vmem:[#allocation0] ss:$8 sm:$0x3] %vm51_vm7, %v50_v14  }
  0x88   :  { %v56_v15 = vld [vmem:[#allocation0] sm:$0x1]  ;;  %v60_v16 = vld [vmem:[#allocation0 + $0x8] sm:$0x1] }
  0x89   :  { %58 = vst [vmem:[%s127_s1] sm:$0x1] %v56_v15  ;;  %71 = vst [vmem:[%s127_s1 + $0x1] sm:$0x1] %v60_v16 }

// kernel: tile.43
= control target key start
LH: loop header
LB: loop body
LE: loop exit
PB: predicated region body
PF: predicated region fallthrough
CT: control target
= control target key end

     0   :  { %s22_s0 = inlined_call_operand.vmem [shape: f32[32], index: 0, kind: input, shape index: {}]   ;;  %s23_s1 = inlined_call_operand.vmem [shape: f32[7,32], index: 1, kind: output, shape index: {}]  }
   0x1   :  { %v4_v0 = vld [vmem:[%s22_s0] ss:$0 sm:$0xff] }
   0x2   :  { %5 = vst [vmem:[%s23_s1] sm:$0xff] %v4_v0 }

// kernel: tile.44
= control target key start
LH: loop header
LB: loop body
LE: loop exit
PB: predicated region body
PF: predicated region fallthrough
CT: control target
= control target key end

     0   :  { %s13_s8 = smov 3  ;;  %s44_s9 = smov 96   ;;  %vm4_vm0 = vcmask 261120   ;;  %vm10_vm1 = vcmask 1048320   ;;  %vm17_vm2 = vcmask 785920   ;;  %vm24_vm3 = vcmask 523520   ;;  %s75_s0 = inlined_call_operand.vmem [shape: f32[7,32], index: 0, kind: input, shape index: {}]   ;;  %s76_s1 = inlined_call_operand.vmem [shape: f32[1,224], index: 1, kind: output, shape index: {}]  }
   0x1   :  { %v37_v0 = vld [vmem:[%s75_s0 + $0x3] sm:$0x1]   ;;  %s20_s10 = smov 3  ;;  %v38_v1 = vld [vmem:[%s75_s0 + $0x2] ss:$4 sm:%s13_s8]   ;;  %s2_s15 = smov 3 }
   0x2   :  { %8 = vrot.lane.b32.xlu0 %v37_v0, %s44_s9  ;;  %v39_v2 = vld [vmem:[%s75_s0 + $0x1] ss:$4 sm:%s20_s10]   ;;  %s45_s16 = smov 32  }
   0x3   :  { %22 = vrot.lane.b32.xlu1 %v39_v2, %s45_s16  ;;  %v3_v3 = vld [vmem:[%s75_s0] ss:$4 sm:%s2_s15]   ;;  %s46_s0 = smov 64  }
   0x4   :  { %5 = vst.msk [vmem:[#allocation0] ss:$8 sm:$0x3] %vm4_vm0, %v3_v3  }
   0x6   :  { %15 = vrot.lane.b32.xlu0 %v38_v1, %s46_s0 }
  0x74   :  { %v9_v4 = vpop.permute.xlu0 %8  }
  0x75   :  { %11 = vst.msk [vmem:[#allocation0] sm:$0x1] %vm10_vm1, %v9_v4   ;;  %v23_v5 = vpop.permute.xlu1 %22  }
  0x78   :  { %v16_v6 = vpop.permute.xlu0 %15  }
  0x79   :  { %18 = vst.msk [vmem:[#allocation0] ss:$8 sm:$0x3] %vm17_vm2, %v16_v6  }
  0x7a   :  { %25 = vst.msk [vmem:[#allocation0] ss:$8 sm:$0x3] %vm24_vm3, %v23_v5  }
  0x81   :  { %v29_v7 = vld [vmem:[#allocation0] sm:$0x1]  ;;  %v33_v8 = vld [vmem:[#allocation0 + $0x8] sm:$0x1] }
  0x82   :  { %31 = vst [vmem:[%s76_s1] sm:$0x1] %v29_v7  ;;  %40 = vst [vmem:[%s76_s1 + $0x1] sm:$0x1] %v33_v8 }

// kernel: tile.33
= control target key start
LH: loop header
LB: loop body
LE: loop exit
PB: predicated region body
PF: predicated region fallthrough
CT: control target
= control target key end

     0   :  { %s22_s0 = inlined_call_operand.vmem [shape: f32[64], index: 0, kind: input, shape index: {}]   ;;  %s23_s1 = inlined_call_operand.vmem [shape: f32[4,64], index: 1, kind: output, shape index: {}]  }
   0x1   :  { %v4_v0 = vld [vmem:[%s22_s0] ss:$0 sm:$0xff] }
   0x2   :  { %5 = vst [vmem:[%s23_s1] sm:$0xf] %v4_v0 }

// kernel: tile.34
= control target key start
LH: loop header
LB: loop body
LE: loop exit
PB: predicated region body
PF: predicated region fallthrough
CT: control target
= control target key end

     0   :  { %s6_s8 = smov 3  ;;  %vm8_vm0 = vcmask 523264   ;;  %s30_s9 = smov 64   ;;  %vm15_vm1 = vcmask 1048064   ;;  %s50_s0 = inlined_call_operand.vmem [shape: f32[4,64], index: 0, kind: input, shape index: {}]   ;;  %s51_s1 = inlined_call_operand.vmem [shape: f32[1,256], index: 1, kind: output, shape index: {}]  }
   0x1   :  { %v4_v0 = vld [vmem:[%s50_s0] sm:$0xf]  ;;  %s11_s0 = smov 3 }
   0x2   :  { %5 = vst [vmem:[#allocation1] sm:$0xf] %v4_v0 }
   0x9   :  { %v12_v1 = vld [vmem:[#allocation1 + $0x1] ss:$2 sm:%s11_s0]   ;;  %v7_v2 = vld [vmem:[#allocation1] ss:$2 sm:%s6_s8]  }
   0xa   :  { %13 = vrot.lane.b32.xlu0 %v12_v1, %s30_s9  ;;  %9 = vst.msk [vmem:[#allocation0] ss:$8 sm:$0x3] %vm8_vm0, %v7_v2  }
  0x7c   :  { %v14_v3 = vpop.permute.xlu0 %13  }
  0x7d   :  { %16 = vst.msk [vmem:[#allocation0] ss:$8 sm:$0x3] %vm15_vm1, %v14_v3  }
  0x84   :  { %v20_v4 = vld [vmem:[#allocation0] sm:$0x1]  ;;  %v24_v5 = vld [vmem:[#allocation0 + $0x8] sm:$0x1] }
  0x85   :  { %22 = vst [vmem:[%s51_s1] sm:$0x1] %v20_v4  ;;  %28 = vst [vmem:[%s51_s1 + $0x1] sm:$0x1] %v24_v5 }

// kernel: conv_generator_forward.1
= control target key start
LH: loop header
LB: loop body
LE: loop exit
PB: predicated region body
PF: predicated region fallthrough
CT: control target
= control target key end

     0   :  { %s9622_s0 = inlined_call_operand.vmem [shape: f32[2,64], index: 0, kind: input, shape index: {}]   ;;  %s9623_s1 = inlined_call_operand.vmem [shape: f32[4,8,2], index: 1, kind: input, shape index: {}]   ;;  %s9624_s2 = inlined_call_operand.vmem [shape: bf16[4,64,256], index: 2, kind: input, shape index: {}]   ;;  %s9625_s3 = inlined_call_operand.vmem [shape: f32[3,14,8], index: 3, kind: input, shape index: {}]   ;;  %s9626_s4 = inlined_call_operand.vmem [shape: bf16[3,256,224], index: 4, kind: input, shape index: {}]   ;;  %s9627_s5 = inlined_call_operand.vmem [shape: f32[4,28,14], index: 5, kind: input, shape index: {}]   ;;  %s9628_s6 = inlined_call_operand.vmem [shape: bf16[4,224,224], index: 6, kind: input, shape index: {}]   ;;  %s9629_s7 = inlined_call_operand.vmem [shape: f32[4,56,28], index: 7, kind: input, shape index: {}]   ;;  %s9630_s8 = inlined_call_operand.vmem [shape: bf16[4,224,28], index: 8, kind: input, shape index: {}]   ;;  %s9631_s9 = inlined_call_operand.vmem [shape: f32[256,64], index: 9, kind: input, shape index: {}]   ;;  %s9632_s10 = inlined_call_operand.vmem [shape: f32[64,256], index: 10, kind: input, shape index: {}]   ;;  %s9633_s11 = inlined_call_operand.vmem [shape: f32[1,256], index: 11, kind: input, shape index: {}]   ;;  %s9634_s12 = inlined_call_operand.vmem [shape: f32[1,256], index: 12, kind: input, shape index: {}]   ;;  %s9635_s13 = inlined_call_operand.vmem [shape: f32[224,32], index: 13, kind: input, shape index: {}]   ;;  %s9636_s14 = inlined_call_operand.vmem [shape: f32[32,224], index: 14, kind: input, shape index: {}]   ;;  %s9637_s15 = inlined_call_operand.vmem [shape: f32[1,224], index: 15, kind: input, shape index: {}]   ;;  %s9638_s16 = inlined_call_operand.vmem [shape: f32[1,224], index: 16, kind: input, shape index: {}]   ;;  %s9639_s17 = inlined_call_operand.vmem [shape: f32[224,16], index: 17, kind: input, shape index: {}]   ;;  %s9640_s18 = inlined_call_operand.vmem [shape: f32[16,224], index: 18, kind: input, shape index: {}]   ;;  %s9641_s19 = inlined_call_operand.vmem [shape: f32[1,224], index: 19, kind: input, shape index: {}]   ;;  %s9642_s20 = inlined_call_operand.vmem [shape: f32[1,224], index: 20, kind: input, shape index: {}]   ;;  %s9643_s21 = inlined_call_operand.hbm [shape: f32[56,28], index: 21, kind: output, shape index: {}]  }
   0x1   :  { %9649 = sst [smem:[#allocation5_spill]] %s9622_s0 }
   0x2   :  { %9650 = sst [smem:[#allocation6_spill]] %s9623_s1 }
   0x3   :  { %9651 = sst [smem:[#allocation7_spill]] %s9624_s2 }
   0x4   :  { %9652 = sst [smem:[#allocation8_spill]] %s9625_s3 }
   0x5   :  { %9653 = sst [smem:[#allocation9_spill]] %s9626_s4 }
   0x6   :  { %9654 = sst [smem:[#allocation10_spill]] %s9627_s5 }
   0x7   :  { %s9655_s26 = sld [smem:[#allocation7_spill]]  ;;  %v7407_v2 = vmov 0   ;;  %s9656_s27 = sld [smem:[#allocation5_spill]]  ;;  %vm120_vm0 = vcmask 523264   ;;  %v7408_v27 = vmov 0.0  }
   0x8   :  { %247 = vmatprep.mubr.bf16.mxu1 %v7407_v2  ;;  %156 = vmatprep.mubr.bf16.mxu0 %v7407_v2 }
   0xd   :  { %v6947_v0 = vld [vmem:[%s9655_s26 + $0x44] ss:$8 sps:$4 sm:$0xff]   ;;  %v6949_v1 = vld [vmem:[%s9655_s26 + $0x40] ss:$8 sps:$4 sm:$0xff]   ;;  %v6950_v3 = vld [vmem:[%s9655_s26 + $0x54] ss:$8 sps:$4 sm:$0xff]  }
   0xe   :  { %215 = vmatprep.subr.bf16.mxu1 %v6947_v0  ;;  %v6952_v4 = vld [vmem:[%s9655_s26 + $0x50] ss:$8 sps:$4 sm:$0xff]   ;;  %v6953_v5 = vld [vmem:[%s9655_s26 + $0x4] ss:$8 sps:$4 sm:$0xff]   ;;  %v6955_v6 = vld [vmem:[%s9655_s26] ss:$8 sps:$4 sm:$0xff]  }
   0xf   :  { %216 = vmatpush1.bf16.msra.mxu1 %v6949_v1  ;;  %v6956_v7 = vld [vmem:[%s9655_s26 + $0x64] ss:$8 sps:$4 sm:$0xff]   ;;  %124 = vmatprep.subr.bf16.mxu0 %v6953_v5  ;;  %v6959_v8 = vld [vmem:[%s9655_s26 + $0x14] ss:$8 sps:$4 sm:$0xff]   ;;  %v6961_v9 = vld [vmem:[%s9655_s26 + $0x10] ss:$8 sps:$4 sm:$0xff]  }
  0x10   :  { %217 = vmatprep.subr.bf16.mxu1 %v6950_v3  ;;  %125 = vmatpush1.bf16.msra.mxu0 %v6955_v6  ;;  %v6958_v10 = vld [vmem:[%s9655_s26 + $0x60] ss:$8 sps:$4 sm:$0xff]   ;;  %v6962_v11 = vld [vmem:[%s9655_s26 + $0x74] ss:$8 sps:$4 sm:$0xff]   ;;  %v6965_v12 = vld [vmem:[%s9655_s26 + $0x24] ss:$8 sps:$4 sm:$0xff]  }
  0x11   :  { %126 = vmatprep.subr.bf16.mxu0 %v6959_v8  ;;  %v6964_v13 = vld [vmem:[%s9655_s26 + $0x70] ss:$8 sps:$4 sm:$0xff]   ;;  %v6967_v14 = vld [vmem:[%s9655_s26 + $0x20] ss:$8 sps:$4 sm:$0xff]   ;;  %v6971_v16 = vld [vmem:[%s9655_s26 + $0x34] ss:$8 sps:$4 sm:$0xff]  }
  0x12   :  { %v70_v15 = vld [vmem:[%s9656_s27] sm:$0x3]  ;;  %v6970_v17 = vld [vmem:[%s9655_s26 + $0x84] ss:$8 sps:$4 sm:$0xff]   ;;  %v6973_v19 = vld [vmem:[%s9655_s26 + $0x30] ss:$8 sps:$4 sm:$0xff]  }
  0x13   :  { %218 = vmatpush1.bf16.msra.mxu1 %v6952_v4  ;;  %v7578_v18 = vpack.c.bf16 %v70_v15, %v70_v15  ;;  %v6968_v20 = vld [vmem:[%s9655_s26 + $0x80] ss:$8 sps:$4 sm:$0xff]   ;;  %v6976_v21 = vld [vmem:[%s9655_s26 + $0x94] ss:$8 sps:$4 sm:$0xff]   ;;  %v6974_v22 = vld [vmem:[%s9655_s26 + $0x90] ss:$8 sps:$4 sm:$0xff]  }
  0x14   :  { %219 = vmatprep.subr.bf16.mxu1 %v6956_v7  ;;  %127 = vmatpush1.bf16.msra.mxu0 %v6961_v9  ;;  %v6979_v23 = vld [vmem:[%s9655_s26 + $0xa4] ss:$8 sps:$4 sm:$0xff]   ;;  %v6977_v24 = vld [vmem:[%s9655_s26 + $0xa0] ss:$8 sps:$4 sm:$0xff]   ;;  %v6982_v25 = vld [vmem:[%s9655_s26 + $0xb4] ss:$8 sps:$4 sm:$0xff]  }
  0x15   :  { %128 = vmatprep.subr.bf16.mxu0 %v6965_v12  ;;  %v6980_v26 = vld [vmem:[%s9655_s26 + $0xb0] ss:$8 sps:$4 sm:$0xff]  }
  0x17   :  { %220 = vmatpush1.bf16.msra.mxu1 %v6958_v10 }
  0x18   :  { %221 = vmatprep.subr.bf16.mxu1 %v6962_v11  ;;  %129 = vmatpush1.bf16.msra.mxu0 %v6967_v14 }
  0x19   :  { %130 = vmatprep.subr.bf16.mxu0 %v6971_v16 }
  0x1b   :  { %222 = vmatpush1.bf16.msra.mxu1 %v6964_v13 }
  0x1c   :  { %469 = vmatprep.subr.bf16.mxu1 %v6970_v17  ;;  %131 = vmatpush1.bf16.msra.mxu0 %v6973_v19 }
  0x1e   :  { %5622 = vmatmul.mubr.msk.bf16.vlgmr.msra.gmra.mrb[0].mxu1 %vm120_vm0, %v7578_v18 }
  0x1f   :  { %470 = vmatpush1.bf16.msra.mxu1 %v6968_v20  ;;  %501 = vmatprep.mubr.bf16.mxu1 %v7407_v2 }
  0x20   :  { %471 = vmatprep.subr.bf16.mxu1 %v6976_v21  ;;  %5605 = vmatmul.mubr.msk.bf16.vlgmr.msra.gmra.mrb[0].mxu0 %vm120_vm0, %v7578_v18 }
  0x21   :  { %333 = vmatprep.mubr.f32.mxu0 %v7408_v27 }
  0x23   :  { %472 = vmatpush1.bf16.msra.mxu1 %v6974_v22 }
  0x24   :  { %473 = vmatprep.subr.bf16.mxu1 %v6979_v23 }
  0x27   :  { %474 = vmatpush1.bf16.msra.mxu1 %v6977_v24 }
  0x28   :  { %475 = vmatprep.subr.bf16.mxu1 %v6982_v25 }
  0x2b   :  { %476 = vmatpush1.bf16.msra.mxu1 %v6980_v26 }
  0x2e   :  { %5646 = vmatmul.mubr.msk.bf16.vlgmr.msra.gmra.mrb[4].mxu1 %vm120_vm0, %v7578_v18 }
  0x2f   :  { %26 = vsyncpa [#allocation3], 0  ;;  %vm262_vm1 = vcmask 1041408   ;;  %s9657_s23 = sld [smem:[#allocation6_spill]]  ;;  %vm258_vm2 = vcmask 15360   ;;  %v784_v51 = vld [vmem:[%s9631_s9 + $0x80] sm:$0xff] }
  0x30   :  { %v6985_v39 = vld [vmem:[%s9655_s26 + $0xc4] ss:$8 sps:$4 sm:$0xff]   ;;  %v6983_v41 = vld [vmem:[%s9655_s26 + $0xc0] ss:$8 sps:$4 sm:$0xff]   ;;  %v6988_v44 = vld [vmem:[%s9655_s26 + $0xd4] ss:$8 sps:$4 sm:$0xff]  }
  0x31   :  { %v6986_v46 = vld [vmem:[%s9655_s26 + $0xd0] ss:$8 sps:$4 sm:$0xff]   ;;  %v6991_v47 = vld [vmem:[%s9655_s26 + $0xe4] ss:$8 sps:$4 sm:$0xff]   ;;  %v6989_v48 = vld [vmem:[%s9655_s26 + $0xe0] ss:$8 sps:$4 sm:$0xff]  }
  0x32   :  { %v6994_v49 = vld [vmem:[%s9655_s26 + $0xf4] ss:$8 sps:$4 sm:$0xff]   ;;  %v6992_v50 = vld [vmem:[%s9655_s26 + $0xf0] ss:$8 sps:$4 sm:$0xff]   ;;  %v785_v52 = vld [vmem:[%s9631_s9 + $0x88] sm:$0xff]  ;;  %s9658_s2 = sld [smem:[#allocation9_spill]] }
  0x33   :  { %v768_v53 = vld [vmem:[%s9631_s9] sm:$0xff]  ;;  %v7669_v54 = vpack.c.bf16 %v785_v52, %v784_v51  ;;  %v769_v55 = vld [vmem:[%s9631_s9 + $0x8] sm:$0xff]  ;;  %v786_v56 = vld [vmem:[%s9631_s9 + $0x90] sm:$0xff]  ;;  %s9659_s26 = sld [smem:[#allocation8_spill]]  ;;  %vm1658_vm3 = vcmask 64512   ;;  %vm2185_vm4 = vcmask 1045504  }
  0x34   :  { %v787_v57 = vld [vmem:[%s9631_s9 + $0x98] sm:$0xff]  ;;  %v7680_v58 = vpack.c.bf16 %v769_v55, %v768_v53  ;;  %v770_v60 = vld [vmem:[%s9631_s9 + $0x10] sm:$0xff]  ;;  %v788_v62 = vld [vmem:[%s9631_s9 + $0xa0] sm:$0xff]  ;;  %vm2194_vm5 = vcmask 785408   ;;  %vm2196_vm6 = vcmask 783360   ;;  %vm2279_vm7 = vcmask 261120  }
  0x35   :  { %v5623_v30 = vld [vmem:[%s9657_s23 + $0x8] sm:$0xff]  ;;  %v165_v37 = vld [vmem:[%s9657_s23] sm:$0xff]  ;;  %v5647_v42 = vld [vmem:[%s9657_s23 + $0x10] sm:$0xff]  ;;  %v7682_v59 = vpack.c.bf16 %v787_v57, %v786_v56  ;;  %6520 = vmatprep.subr.bf16.mxu1 %v7669_v54  ;;  %vm7410_vm8 = vmmov 1   ;;  %vm3022_vm10 = vcmask 113664   ;;  %vm3935_vm11 = vcmask 1043456  }
  0x36   :  { %v771_v61 = vld [vmem:[%s9631_s9 + $0x18] sm:$0xff]  ;;  %v789_v63 = vld [vmem:[%s9631_s9 + $0xa8] sm:$0xff]  ;;  %6522 = vmatpush3.bf16.msra.mxu1 %v7680_v58  ;;  %v772_v3 = vld [vmem:[%s9631_s9 + $0x20] sm:$0xff]  ;;  %vm3949_vm12 = vcmask 781312   ;;  %vm4032_vm13 = vcmask 130048   ;;  %vm7411_vm14 = vmmov 0  }
  0x37   :  { %v7698_v0 = vpack.c.bf16 %v771_v61, %v770_v60  ;;  %6524 = vmatprep.subr.bf16.mxu1 %v7682_v59  ;;  %v7701_v1 = vpack.c.bf16 %v789_v63, %v788_v62  ;;  %v773_v4 = vld [vmem:[%s9631_s9 + $0x28] sm:$0xff]  ;;  %v790_v5 = vld [vmem:[%s9631_s9 + $0xb0] sm:$0xff]  ;;  %v791_v6 = vld [vmem:[%s9631_s9 + $0xb8] sm:$0xff] }
  0x38   :  { %v7716_v7 = vpack.c.bf16 %v773_v4, %v772_v3  ;;  %v7719_v8 = vpack.c.bf16 %v791_v6, %v790_v5  ;;  %v774_v9 = vld [vmem:[%s9631_s9 + $0x30] sm:$0xff]  ;;  %v775_v10 = vld [vmem:[%s9631_s9 + $0x38] sm:$0xff]  ;;  %v792_v11 = vld [vmem:[%s9631_s9 + $0xc0] sm:$0xff] }
  0x39   :  { %v793_v12 = vld [vmem:[%s9631_s9 + $0xc8] sm:$0xff]  ;;  %v7734_v13 = vpack.c.bf16 %v775_v10, %v774_v9  ;;  %v5668_v17 = vld [vmem:[%s9657_s23 + $0x18] sm:$0xff]  ;;  %v776_v20 = vld [vmem:[%s9631_s9 + $0x40] sm:$0xff] }
  0x3a   :  { %6526 = vmatpush3.bf16.msra.mxu1 %v7698_v0  ;;  %v7737_v14 = vpack.c.bf16 %v793_v12, %v792_v11  ;;  %v777_v21 = vld [vmem:[%s9631_s9 + $0x48] sm:$0xff]  ;;  %v794_v23 = vld [vmem:[%s9631_s9 + $0xd0] sm:$0xff]  ;;  %v795_v24 = vld [vmem:[%s9631_s9 + $0xd8] sm:$0xff] }
  0x3b   :  { %6528 = vmatprep.subr.bf16.mxu1 %v7701_v1  ;;  %v7754_v22 = vpack.c.bf16 %v777_v21, %v776_v20  ;;  %v7763_v25 = vpack.c.bf16 %v795_v24, %v794_v23  ;;  %v778_v26 = vld [vmem:[%s9631_s9 + $0x50] sm:$0xff]  ;;  %v804_v51 = vld [vmem:[%s9632_s10 + $0x20] sm:$0xff]  ;;  %v809_v53 = vld [vmem:[%s9632_s10 + $0x48] sm:$0xff]  ;;  %v973_v21 = vlaneseq }
  0x3c   :  { %v806_v52 = vld [vmem:[%s9632_s10 + $0x30] sm:$0xff]  ;;  %v808_v57 = vld [vmem:[%s9632_s10 + $0x40] sm:$0xff]  ;;  %vm8760_vm9 = vmpackc.low %vm2185_vm4, %vm7410_vm8 }
  0x3d   :  { %v6557_v55 = vpack.c.bf16 %v806_v52, %v804_v51  ;;  %v810_v60 = vld [vmem:[%s9632_s10 + $0x50] sm:$0xff]  ;;  %v7007_v51 = vld [vmem:[%s9658_s2 + $0x120] ss:$8 sps:$4 sm:$0xff]   ;;  %vm9419_vm15 = vmpackc.low %vm3935_vm11, %vm7410_vm8 }
  0x3e   :  { %6530 = vmatpush3.bf16.msra.mxu1 %v7716_v7  ;;  %v6561_v61 = vpack.c.bf16 %v810_v60, %v808_v57  ;;  %v7015_v52 = vld [vmem:[%s9658_s2 + $0x134] ss:$8 sps:$4 sm:$0xff]   ;;  %v7025_v57 = vld [vmem:[%s9658_s2 + $0x150] ss:$8 sps:$4 sm:$0xff]   ;;  %v7033_v60 = vld [vmem:[%s9658_s2 + $0x164] ss:$8 sps:$4 sm:$0xff]  }
  0x3f   :  { %6532 = vmatprep.subr.bf16.mxu1 %v7719_v8 }
  0x42   :  { %6534 = vmatpush3.bf16.msra.mxu1 %v7734_v13 }
  0x43   :  { %6536 = vmatprep.subr.bf16.mxu1 %v7737_v14 }
  0x46   :  { %6538 = vmatpush3.bf16.msra.mxu1 %v7754_v22 }
  0x47   :  { %6540 = vmatprep.subr.bf16.mxu1 %v7763_v25 }
  0xf1   :  { %v249_v28 = vpop.f32.mrb[0].mxu1 }
  0xf2   :  { %v251_v29 = vpop.f32.mrb[1].mxu1 }
  0xf3   :  { %v253_v31 = vpop.f32.mrb[2].mxu1  ;;  %5624 = vmatprep.subr.msk.mxu0 %vm262_vm1, %v251_v29  ;;  %v158_v33 = vpop.f32.mrb[0].mxu0 }
  0xf4   :  { %v254_v32 = vpop.f32.mrb[3].mxu1  ;;  %5625 = vmatpush1.msk.msra.mxu0 %vm262_vm1, %v249_v28  ;;  %v160_v34 = vpop.f32.mrb[1].mxu0  ;;  %v779_v28 = vld [vmem:[%s9631_s9 + $0x58] sm:$0xff]  ;;  %v797_v31 = vld [vmem:[%s9631_s9 + $0xe8] sm:$0xff] }
  0xf5   :  { %5626 = vmatmul.mubr.msk.f32.vlgmr.msra.gmra.mrb[4].mxu0 %vm258_vm2, %v5623_v30  ;;  %v162_v35 = vpop.f32.mrb[2].mxu0  ;;  %5627 = vmatprep.subr.msk.mxu0 %vm262_vm1, %v160_v34  ;;  %v7771_v29 = vpack.c.bf16 %v779_v28, %v778_v26  ;;  %v796_v30 = vld [vmem:[%s9631_s9 + $0xe0] sm:$0xff]  ;;  %v781_v34 = vld [vmem:[%s9631_s9 + $0x68] sm:$0xff] }
  0xf6   :  { %413 = vmatprep.mubr.f32.mxu0 %v7408_v27  ;;  %v163_v36 = vpop.f32.mrb[3].mxu0  ;;  %5628 = vmatpush1.msk.msra.mxu0 %vm262_vm1, %v158_v33  ;;  %v7781_v32 = vpack.c.bf16 %v797_v31, %v796_v30  ;;  %v780_v33 = vld [vmem:[%s9631_s9 + $0x60] sm:$0xff] }
  0xf7   :  { %6542 = vmatpush3.bf16.msra.mxu1 %v7771_v29  ;;  %v7789_v35 = vpack.c.bf16 %v781_v34, %v780_v33  ;;  %v798_v36 = vld [vmem:[%s9631_s9 + $0xf0] sm:$0xff] }
  0xf8   :  { %6544 = vmatprep.subr.bf16.mxu1 %v7781_v32 }
  0xfb   :  { %6546 = vmatpush3.bf16.msra.mxu1 %v7789_v35 }
  0xfd   :  { %5629 = vmatmul.mubr.msk.f32.vlgmr.msra.gmra.mrb[4].mxu0 %vm258_vm2, %v165_v37  ;;  %v799_v37 = vld [vmem:[%s9631_s9 + $0xf8] sm:$0xff] }
  0xfe   :  { %585 = vmatprep.mubr.f32.mxu0 %v7408_v27 }
 0x101   :  { %v503_v38 = vpop.f32.mrb[4].mxu1 }
 0x102   :  { %v505_v40 = vpop.f32.mrb[5].mxu1 }
 0x103   :  { %v507_v43 = vpop.f32.mrb[6].mxu1  ;;  %5648 = vmatprep.subr.msk.mxu0 %vm262_vm1, %v505_v40  ;;  %v783_v40 = vld [vmem:[%s9631_s9 + $0x78] sm:$0xff] }
 0x104   :  { %v508_v45 = vpop.f32.mrb[7].mxu1  ;;  %5649 = vmatpush1.msk.msra.mxu0 %vm262_vm1, %v503_v38  ;;  %v6547_v38 = vpack.c.bf16 %v799_v37, %v798_v36  ;;  %v803_v43 = vld [vmem:[%s9632_s10 + $0x18] sm:$0xff] }
 0x105   :  { %643 = vmatprep.subr.bf16.mxu0 %v6985_v39  ;;  %5650 = vmatmul.mubr.msk.f32.vlgmr.msra.gmra.mrb[4].mxu0 %vm258_vm2, %v5647_v42  ;;  %v782_v39 = vld [vmem:[%s9631_s9 + $0x70] sm:$0xff]  ;;  %v801_v42 = vld [vmem:[%s9632_s10 + $0x8] sm:$0xff] }
 0x106   :  { %644 = vmatpush1.bf16.msra.mxu0 %v6983_v41  ;;  %675 = vmatprep.mubr.bf16.mxu0 %v7407_v2  ;;  %v6549_v41 = vpack.c.bf16 %v783_v40, %v782_v39  ;;  %v6551_v45 = vpack.c.bf16 %v803_v43, %v801_v42 }
 0x107   :  { %645 = vmatprep.subr.bf16.mxu0 %v6988_v44  ;;  %6548 = vmatprep.subr.bf16.mxu1 %v6547_v38  ;;  %v800_v44 = vld [vmem:[%s9632_s10] sm:$0xff] }
 0x108   :  { %6550 = vmatpush3.bf16.msra.mxu1 %v6549_v41 }
 0x109   :  { %6568 = vmatprep.subr.bf16.mxu1 %v7669_v54  ;;  %v811_v54 = vld [vmem:[%s9632_s10 + $0x58] sm:$0xff] }
 0x10a   :  { %646 = vmatpush1.bf16.msra.mxu0 %v6986_v46  ;;  %v802_v46 = vld [vmem:[%s9632_s10 + $0x10] sm:$0xff]  ;;  %v6559_v56 = vpack.c.bf16 %v811_v54, %v809_v53  ;;  %v7021_v54 = vld [vmem:[%s9658_s2 + $0x144] ss:$8 sps:$4 sm:$0xff]  }
 0x10b   :  { %647 = vmatprep.subr.bf16.mxu0 %v6991_v47  ;;  %v805_v47 = vld [vmem:[%s9632_s10 + $0x28] sm:$0xff]  ;;  %v7013_v53 = vld [vmem:[%s9658_s2 + $0x130] ss:$8 sps:$4 sm:$0xff]  }
 0x10e   :  { %648 = vmatpush1.bf16.msra.mxu0 %v6989_v48  ;;  %v807_v48 = vld [vmem:[%s9632_s10 + $0x38] sm:$0xff] }
 0x10f   :  { %649 = vmatprep.subr.bf16.mxu0 %v6994_v49  ;;  %v6553_v49 = vpack.c.bf16 %v802_v46, %v800_v44  ;;  %v6997_v46 = vld [vmem:[%s9658_s2 + $0x104] ss:$8 sps:$4 sm:$0xff]  }
 0x112   :  { %650 = vmatpush1.bf16.msra.mxu0 %v6992_v50  ;;  %v6555_v50 = vpack.c.bf16 %v807_v48, %v805_v47  ;;  %v7000_v47 = vld [vmem:[%s9658_s2 + $0x4] ss:$8 sps:$4 sm:$0xff]   ;;  %v7003_v48 = vld [vmem:[%s9658_s2 + $0x114] ss:$8 sps:$4 sm:$0xff]  }
 0x115   :  { %5667 = vmatmul.mubr.msk.bf16.vlgmr.msra.gmra.mrb[8].mxu0 %vm120_vm0, %v7578_v18 }
 0x116   :  { %759 = vmatprep.mubr.f32.mxu0 %v7408_v27 }
 0x1e8   :  { %v677_v15 = vpop.f32.mrb[8].mxu0 }
 0x1e9   :  { %v679_v16 = vpop.f32.mrb[9].mxu0 }
 0x1ea   :  { %v681_v18 = vpop.f32.mrb[10].mxu0  ;;  %5669 = vmatprep.subr.msk.mxu0 %vm262_vm1, %v679_v16 }
 0x1eb   :  { %v682_v19 = vpop.f32.mrb[11].mxu0  ;;  %5670 = vmatpush1.msk.msra.mxu0 %vm262_vm1, %v677_v15 }
 0x1ec   :  { %5671 = vmatmul.mubr.msk.f32.vlgmr.msra.gmra.mrb[4].mxu0 %vm258_vm2, %v5668_v17  ;;  %6552 = vmatprep.subr.bf16.mxu0 %v6551_v45 }
 0x1ed   :  { %966 = vmatprep.mubr.f32.mxu0 %v7408_v27  ;;  %6554 = vmatpush1.bf16.msra.mxu0 %v6553_v49 }
 0x1ee   :  { %6556 = vmatprep.subr.bf16.mxu0 %v6555_v50 }
 0x1f1   :  { %6558 = vmatpush1.bf16.msra.mxu0 %v6557_v55 }
 0x1f2   :  { %6560 = vmatprep.subr.bf16.mxu0 %v6559_v56 }
 0x1f5   :  { %6562 = vmatpush1.bf16.msra.mxu0 %v6561_v61 }
 0x2bf   :  { %v761_v62 = vpop.f32.mrb[4].mxu0 }
 0x2c0   :  { %v816_v63 = vrot.slane %v761_v62, 4  ;;  %v763_v3 = vpop.f32.mrb[5].mxu0 }
 0x2c1   :  { %v822_v4 = vrot.slane %v763_v3, 4 }
 0x2c2   :  { %v817_v5 = vadd.f32 %v816_v63, %v761_v62  ;;  %v7037_v63 = vld [vmem:[%s9658_s2 + $0x170] ss:$8 sps:$4 sm:$0xff]  }
 0x2c3   :  { %v823_v6 = vadd.f32 %v822_v4, %v763_v3  ;;  %v7043_v4 = vld [vmem:[%s9658_s2 + $0x180] ss:$8 sps:$4 sm:$0xff]  }
 0x2c4   :  { %v818_v9 = vrot.slane %v817_v5, 2 }
 0x2c5   :  { %v824_v10 = vrot.slane %v823_v6, 2 }
 0x2c6   :  { %v819_v11 = vadd.f32 %v818_v9, %v817_v5  ;;  %v7051_v5 = vld [vmem:[%s9658_s2 + $0x194] ss:$8 sps:$4 sm:$0xff]   ;;  %v7057_v9 = vld [vmem:[%s9658_s2 + $0x1a4] ss:$8 sps:$4 sm:$0xff]  }
 0x2c7   :  { %v825_v12 = vadd.f32 %v824_v10, %v823_v6  ;;  %v7049_v6 = vld [vmem:[%s9658_s2 + $0x190] ss:$8 sps:$4 sm:$0xff]   ;;  %v7055_v10 = vld [vmem:[%s9658_s2 + $0x1a0] ss:$8 sps:$4 sm:$0xff]  }
 0x2c8   :  { %v820_v15 = vrot.slane %v819_v11, 1 }
 0x2c9   :  { %v826_v16 = vrot.slane %v825_v12, 1 }
 0x2ca   :  { %v821_v18 = vadd.f32 %v820_v15, %v819_v11  ;;  %v7063_v11 = vld [vmem:[%s9658_s2 + $0x1b4] ss:$8 sps:$4 sm:$0xff]   ;;  %v7069_v15 = vld [vmem:[%s9658_s2 + $0x1c4] ss:$8 sps:$4 sm:$0xff]  }
 0x2cb   :  { %v827_v17 = vadd.f32 %v826_v16, %v825_v12  ;;  %v7061_v12 = vld [vmem:[%s9658_s2 + $0x1b0] ss:$8 sps:$4 sm:$0xff]   ;;  %v7067_v16 = vld [vmem:[%s9658_s2 + $0x1c0] ss:$8 sps:$4 sm:$0xff]  }
 0x2cd   :  { %892 = vmatprep.mubr.f32.mxu1 %v827_v17 }
 0x2ce   :  { %893 = vmatmul.mubr.f32.vlgmr.msra.gmra.mrb[8].mxu1 %v821_v18 }
 0x2cf   :  { %6570 = vmatpush3.bf16.msra.mxu1 %v7680_v58  ;;  %v813_v58 = vld [vmem:[%s9632_s10 + $0x68] sm:$0xff] }
 0x2d0   :  { %6572 = vmatprep.subr.bf16.mxu1 %v7682_v59  ;;  %v815_v59 = vld [vmem:[%s9632_s10 + $0x78] sm:$0xff] }
 0x2d3   :  { %6574 = vmatpush3.bf16.msra.mxu1 %v7698_v0  ;;  %v6563_v0 = vpack.c.bf16 %v815_v59, %v813_v58 }
 0x2d4   :  { %6576 = vmatprep.subr.bf16.mxu1 %v7701_v1  ;;  %v812_v1 = vld [vmem:[%s9632_s10 + $0x60] sm:$0xff] }
 0x2d5   :  { %6564 = vmatprep.subr.bf16.mxu0 %v6563_v0 }
 0x2d7   :  { %6578 = vmatpush3.bf16.msra.mxu1 %v7716_v7  ;;  %v814_v7 = vld [vmem:[%s9632_s10 + $0x70] sm:$0xff] }
 0x2d8   :  { %6580 = vmatprep.subr.bf16.mxu1 %v7719_v8  ;;  %v6565_v8 = vpack.c.bf16 %v814_v7, %v812_v1  ;;  %v6998_v1 = vld [vmem:[%s9658_s2] ss:$8 sps:$4 sm:$0xff]   ;;  %v7006_v7 = vld [vmem:[%s9658_s2 + $0x14] ss:$8 sps:$4 sm:$0xff]  }
 0x2da   :  { %6566 = vmatpush1.bf16.msra.mxu0 %v6565_v8 }
 0x2db   :  { %6582 = vmatpush3.bf16.msra.mxu1 %v7734_v13  ;;  %6600 = vmatprep.subr.bf16.mxu0 %v6551_v45  ;;  %v6995_v45 = vld [vmem:[%s9658_s2 + $0x100] ss:$8 sps:$4 sm:$0xff]  }
 0x2dc   :  { %6584 = vmatprep.subr.bf16.mxu1 %v7737_v14 }
 0x2df   :  { %6586 = vmatpush3.bf16.msra.mxu1 %v7754_v22  ;;  %v7869_v22 = vshrl.u32 %v973_v21, 7  ;;  %v7016_v21 = vld [vmem:[%s9658_s2 + $0x30] ss:$8 sps:$4 sm:$0xff]  }
 0x2e0   :  { %6588 = vmatprep.subr.bf16.mxu1 %v7763_v25 }
 0x2e1   :  { %v7872_v23 = vsub.s32 0, %v7869_v22 }
 0x2e3   :  { %6590 = vmatpush3.bf16.msra.mxu1 %v7771_v29 }
 0x2e4   :  { %6592 = vmatprep.subr.bf16.mxu1 %v7781_v32 }
 0x2e7   :  { %6594 = vmatpush3.bf16.msra.mxu1 %v7789_v35 }
 0x2e8   :  { %6596 = vmatprep.subr.bf16.mxu1 %v6547_v38 }
 0x2eb   :  { %6598 = vmatpush3.bf16.msra.mxu1 %v6549_v41 }
 0x2ec   :  { %1614 = vmatprep.subr.bf16.mxu1 %v6997_v46  ;;  %v7073_v46 = vld [vmem:[%s9658_s2 + $0x1d0] ss:$8 sps:$4 sm:$0xff]  }
 0x3a1   :  { %v6321_v13 = vpop.f32.mrb[8].mxu1 }
 0x3a2   :  { %v6322_v14 = vpop.f32.mrb[9].mxu1 }
 0x3a3   :  { %v6323_v19 = vadd.f32 %v6322_v14, %v6321_v13  ;;  %v7004_v13 = vld [vmem:[%s9658_s2 + $0x10] ss:$8 sps:$4 sm:$0xff]   ;;  %v7012_v14 = vld [vmem:[%s9658_s2 + $0x24] ss:$8 sps:$4 sm:$0xff]  }
 0x3a5   :  { %v898_v20 = vmul.f32 0.03125, %v6323_v19  ;;  %v7010_v19 = vld [vmem:[%s9658_s2 + $0x20] ss:$8 sps:$4 sm:$0xff]  }
 0x3a7   :  { %5672 = vmatmul.mubr.msk.f32.vlgmr.msra.gmra.mrb[6].mxu0 %vm120_vm0, %v898_v20  ;;  %v7018_v20 = vld [vmem:[%s9658_s2 + $0x34] ss:$8 sps:$4 sm:$0xff]  }
 0x3a8   :  { %6602 = vmatpush1.bf16.msra.mxu0 %v6553_v49  ;;  %1137 = vmatprep.mubr.f32.mxu0 %v7408_v27  ;;  %v7001_v49 = vld [vmem:[%s9658_s2 + $0x110] ss:$8 sps:$4 sm:$0xff]  }
 0x3a9   :  { %6604 = vmatprep.subr.bf16.mxu0 %v6555_v50  ;;  %v7009_v50 = vld [vmem:[%s9658_s2 + $0x124] ss:$8 sps:$4 sm:$0xff]  }
 0x3ac   :  { %6606 = vmatpush1.bf16.msra.mxu0 %v6557_v55  ;;  %v7019_v55 = vld [vmem:[%s9658_s2 + $0x140] ss:$8 sps:$4 sm:$0xff]  }
 0x3ad   :  { %6608 = vmatprep.subr.bf16.mxu0 %v6559_v56  ;;  %v7027_v56 = vld [vmem:[%s9658_s2 + $0x154] ss:$8 sps:$4 sm:$0xff]  }
 0x3b0   :  { %6610 = vmatpush1.bf16.msra.mxu0 %v6561_v61  ;;  %v7031_v61 = vld [vmem:[%s9658_s2 + $0x160] ss:$8 sps:$4 sm:$0xff]  }
 0x3b1   :  { %6612 = vmatprep.subr.bf16.mxu0 %v6563_v0 }
 0x3b4   :  { %6614 = vmatpush1.bf16.msra.mxu0 %v6565_v8 }
 0x3b5   :  { %1378 = vmatprep.subr.bf16.mxu0 %v7000_v47  ;;  %v7078_v47 = vld [vmem:[%s9658_s2 + $0xd4] ss:$8 sps:$4 sm:$0xff]  }
 0x47a   :  { %v968_v24 = vpop.f32.mrb[6].mxu0 }
 0x47b   :  { %v976_v25 = vrot.slane %v968_v24, %v7872_v23  ;;  %v970_v26 = vpop.f32.mrb[7].mxu0  ;;  %v7024_v24 = vld [vmem:[%s9658_s2 + $0x44] ss:$8 sps:$4 sm:$0xff]  }
 0x47c   :  { %v980_v28 = vrot.slane %v970_v26, %v7872_v23  ;;  %v7030_v26 = vld [vmem:[%s9658_s2 + $0x54] ss:$8 sps:$4 sm:$0xff]  }
 0x47d   :  { %v7876_v29 = vsub.f32 %v761_v62, %v976_v25  ;;  %v7039_v62 = vld [vmem:[%s9658_s2 + $0x174] ss:$8 sps:$4 sm:$0xff]   ;;  %v7022_v25 = vld [vmem:[%s9658_s2 + $0x40] ss:$8 sps:$4 sm:$0xff]  }
 0x47e   :  { %v7878_v30 = vsub.f32 %v763_v3, %v980_v28  ;;  %v7045_v3 = vld [vmem:[%s9658_s2 + $0x184] ss:$8 sps:$4 sm:$0xff]   ;;  %v7028_v28 = vld [vmem:[%s9658_s2 + $0x50] ss:$8 sps:$4 sm:$0xff]  }
 0x47f   :  { %v983_v31 = vmul.f32 %v7876_v29, %v7876_v29 }
 0x480   :  { %v984_v32 = vmul.f32 %v7878_v30, %v7878_v30 }
 0x481   :  { %v985_v33 = vrot.slane %v983_v31, 4 }
 0x482   :  { %v991_v34 = vrot.slane %v984_v32, 4 }
 0x483   :  { %v986_v35 = vadd.f32 %v985_v33, %v983_v31  ;;  %v7036_v31 = vld [vmem:[%s9658_s2 + $0x64] ss:$8 sps:$4 sm:$0xff]   ;;  %v7042_v33 = vld [vmem:[%s9658_s2 + $0x74] ss:$8 sps:$4 sm:$0xff]  }
 0x484   :  { %v992_v36 = vadd.f32 %v991_v34, %v984_v32  ;;  %v7034_v32 = vld [vmem:[%s9658_s2 + $0x60] ss:$8 sps:$4 sm:$0xff]   ;;  %v7040_v34 = vld [vmem:[%s9658_s2 + $0x70] ss:$8 sps:$4 sm:$0xff]  }
 0x485   :  { %v987_v37 = vrot.slane %v986_v35, 2 }
 0x486   :  { %v993_v38 = vrot.slane %v992_v36, 2 }
 0x487   :  { %v988_v39 = vadd.f32 %v987_v37, %v986_v35  ;;  %v7048_v35 = vld [vmem:[%s9658_s2 + $0x84] ss:$8 sps:$4 sm:$0xff]   ;;  %v7054_v37 = vld [vmem:[%s9658_s2 + $0x94] ss:$8 sps:$4 sm:$0xff]  }
 0x488   :  { %v994_v40 = vadd.f32 %v993_v38, %v992_v36  ;;  %v7046_v36 = vld [vmem:[%s9658_s2 + $0x80] ss:$8 sps:$4 sm:$0xff]   ;;  %v7052_v38 = vld [vmem:[%s9658_s2 + $0x90] ss:$8 sps:$4 sm:$0xff]  }
 0x489   :  { %v989_v41 = vrot.slane %v988_v39, 1 }
 0x48a   :  { %v995_v42 = vrot.slane %v994_v40, 1 }
 0x48b   :  { %v990_v44 = vadd.f32 %v989_v41, %v988_v39  ;;  %v7060_v39 = vld [vmem:[%s9658_s2 + $0xa4] ss:$8 sps:$4 sm:$0xff]   ;;  %v7066_v41 = vld [vmem:[%s9658_s2 + $0xb4] ss:$8 sps:$4 sm:$0xff]  }
 0x48c   :  { %v996_v43 = vadd.f32 %v995_v42, %v994_v40  ;;  %v7058_v40 = vld [vmem:[%s9658_s2 + $0xa0] ss:$8 sps:$4 sm:$0xff]   ;;  %v7064_v42 = vld [vmem:[%s9658_s2 + $0xb0] ss:$8 sps:$4 sm:$0xff]  }
 0x48e   :  { %1061 = vmatprep.mubr.f32.mxu1 %v996_v43  ;;  %v7072_v43 = vld [vmem:[%s9658_s2 + $0xc4] ss:$8 sps:$4 sm:$0xff]  }
 0x48f   :  { %1062 = vmatmul.mubr.f32.vlgmr.msra.gmra.mrb[10].mxu1 %v990_v44  ;;  %v7070_v44 = vld [vmem:[%s9658_s2 + $0xc0] ss:$8 sps:$4 sm:$0xff]  }
 0x490   :  { %1615 = vmatpush1.bf16.msra.mxu1 %v6995_v45  ;;  %v7075_v45 = vld [vmem:[%s9658_s2 + $0x1d4] ss:$8 sps:$4 sm:$0xff]  }
 0x491   :  { %1616 = vmatprep.subr.bf16.mxu1 %v7003_v48  ;;  %v7076_v48 = vld [vmem:[%s9658_s2 + $0xd0] ss:$8 sps:$4 sm:$0xff]  }
 0x494   :  { %1617 = vmatpush1.bf16.msra.mxu1 %v7001_v49  ;;  %v7081_v49 = vld [vmem:[%s9658_s2 + $0x1e4] ss:$8 sps:$4 sm:$0xff]  }
 0x495   :  { %1618 = vmatprep.subr.bf16.mxu1 %v7009_v50  ;;  %v7079_v50 = vld [vmem:[%s9658_s2 + $0x1e0] ss:$8 sps:$4 sm:$0xff]  }
 0x498   :  { %1619 = vmatpush1.bf16.msra.mxu1 %v7007_v51  ;;  %v7084_v51 = vld [vmem:[%s9658_s2 + $0xe4] ss:$8 sps:$4 sm:$0xff]  }
 0x499   :  { %1620 = vmatprep.subr.bf16.mxu1 %v7015_v52  ;;  %v7082_v52 = vld [vmem:[%s9658_s2 + $0xe0] ss:$8 sps:$4 sm:$0xff]  }
 0x49c   :  { %1621 = vmatpush1.bf16.msra.mxu1 %v7013_v53  ;;  %v7087_v53 = vld [vmem:[%s9658_s2 + $0x1f4] ss:$8 sps:$4 sm:$0xff]  }
 0x49d   :  { %1622 = vmatprep.subr.bf16.mxu1 %v7021_v54  ;;  %v7085_v54 = vld [vmem:[%s9658_s2 + $0x1f0] ss:$8 sps:$4 sm:$0xff]  }
 0x4a0   :  { %1623 = vmatpush1.bf16.msra.mxu1 %v7019_v55  ;;  %v7088_v55 = vld [vmem:[%s9658_s2 + $0xf0] ss:$8 sps:$4 sm:$0xff]  }
 0x4a1   :  { %1624 = vmatprep.subr.bf16.mxu1 %v7027_v56  ;;  %v7090_v56 = vld [vmem:[%s9658_s2 + $0xf4] ss:$8 sps:$4 sm:$0xff]  }
 0x4a4   :  { %1625 = vmatpush1.bf16.msra.mxu1 %v7025_v57  ;;  %v7093_v57 = vld [vmem:[%s9658_s2 + $0x204] ss:$8 sps:$4 sm:$0xff]  }
 0x4a5   :  { %1626 = vmatprep.subr.bf16.mxu1 %v7033_v60  ;;  %v1154_v60 = vld [vmem:[%s9633_s11] sm:$0x3] }
 0x4a8   :  { %1627 = vmatpush1.bf16.msra.mxu1 %v7031_v61  ;;  %v8084_v61 = vsub.s32 1, %v7869_v22 }
 0x4a9   :  { %1628 = vmatprep.subr.bf16.mxu1 %v7039_v62 }
 0x4ac   :  { %1629 = vmatpush1.bf16.msra.mxu1 %v7037_v63  ;;  %v1168_v63 = vld [vmem:[%s9634_s12] sm:$0x3] }
 0x4ad   :  { %1630 = vmatprep.subr.bf16.mxu1 %v7045_v3 }
 0x4b0   :  { %1631 = vmatpush1.bf16.msra.mxu1 %v7043_v4  ;;  %v1159_v4 = vrot.slane %v1154_v60, %v7872_v23 }
 0x4b1   :  { %1632 = vmatprep.subr.bf16.mxu1 %v7051_v5 }
 0x4b4   :  { %1633 = vmatpush1.bf16.msra.mxu1 %v7049_v6 }
 0x4b5   :  { %1634 = vmatprep.subr.bf16.mxu1 %v7057_v9  ;;  %v1163_v9 = vrot.slane %v1154_v60, %v8084_v61  ;;  %v5771_v60 = vld [vmem:[%s9659_s26 + $0x18] sm:$0x3f] }
 0x4b8   :  { %1635 = vmatpush1.bf16.msra.mxu1 %v7055_v10 }
 0x4b9   :  { %1636 = vmatprep.subr.bf16.mxu1 %v7063_v11  ;;  %v1173_v11 = vrot.slane %v1168_v63, %v7872_v23 }
 0x4bc   :  { %1637 = vmatpush1.bf16.msra.mxu1 %v7061_v12  ;;  %v1177_v12 = vrot.slane %v1168_v63, %v8084_v61  ;;  %v1420_v63 = vld [vmem:[%s9659_s26 + $0x8] sm:$0x3f] }
 0x4bd   :  { %1638 = vmatprep.subr.bf16.mxu1 %v7069_v15 }
 0x4c0   :  { %1639 = vmatpush1.bf16.msra.mxu1 %v7067_v16 }
 0x4c1   :  { %1640 = vmatprep.subr.bf16.mxu1 %v7075_v45  ;;  %v7135_v45 = vld [vmem:[%s9658_s2 + $0x2e4] ss:$8 sps:$4 sm:$0xff]  }
 0x4c4   :  { %1641 = vmatpush1.bf16.msra.mxu1 %v7073_v46  ;;  %v7133_v46 = vld [vmem:[%s9658_s2 + $0x2e0] ss:$8 sps:$4 sm:$0xff]  }
 0x4c5   :  { %1642 = vmatprep.subr.bf16.mxu1 %v7081_v49 }
 0x4c8   :  { %1643 = vmatpush1.bf16.msra.mxu1 %v7079_v50 }
 0x4c9   :  { %1644 = vmatprep.subr.bf16.mxu1 %v7087_v53  ;;  %v5770_v53 = vld [vmem:[%s9659_s26 + $0x10] sm:$0xff] }
 0x4cc   :  { %1645 = vmatpush1.bf16.msra.mxu1 %v7085_v54 }
 0x4cd   :  { %2018 = vmatprep.subr.bf16.mxu1 %v7093_v57 }
 0x562   :  { %v6356_v17 = vpop.f32.mrb[10].mxu1 }
 0x563   :  { %v6357_v18 = vpop.f32.mrb[11].mxu1 }
 0x564   :  { %v6358_v58 = vadd.f32 %v6357_v18, %v6356_v17 }
 0x566   :  { %v1067_v59 = vmul.f32 0.03125, %v6358_v58 }
 0x568   :  { %v1068_v0 = vadd.f32 1e-05, %v1067_v59 }
 0x56a   :  { %7363 = vrsqrt.f32 %v1068_v0 }
 0x574   :  { %v7364_v8 = vpop.eup %7363 }
 0x575   :  { %5673 = vmatmul.mubr.msk.f32.vlgmr.msra.gmra.mrb[12].mxu0 %vm120_vm0, %v7364_v8  ;;  %v7099_v8 = vld [vmem:[%s9658_s2 + $0x224] ss:$8 sps:$4 sm:$0xff]   ;;  %vm4716_vm0 = vcmask 228352  }
 0x576   :  { %1379 = vmatpush1.bf16.msra.mxu0 %v6998_v1  ;;  %v7091_v1 = vld [vmem:[%s9658_s2 + $0x200] ss:$8 sps:$4 sm:$0xff]  }
 0x577   :  { %1380 = vmatprep.subr.bf16.mxu0 %v7006_v7 }
 0x57a   :  { %1381 = vmatpush1.bf16.msra.mxu0 %v7004_v13  ;;  %v7097_v13 = vld [vmem:[%s9658_s2 + $0x220] ss:$8 sps:$4 sm:$0xff]  }
 0x57b   :  { %1382 = vmatprep.subr.bf16.mxu0 %v7012_v14  ;;  %v7102_v14 = vld [vmem:[%s9658_s2 + $0x234] ss:$8 sps:$4 sm:$0xff]  }
 0x57e   :  { %1383 = vmatpush1.bf16.msra.mxu0 %v7010_v19  ;;  %v7100_v19 = vld [vmem:[%s9658_s2 + $0x230] ss:$8 sps:$4 sm:$0xff]  }
 0x57f   :  { %1384 = vmatprep.subr.bf16.mxu0 %v7018_v20  ;;  %v7105_v20 = vld [vmem:[%s9658_s2 + $0x244] ss:$8 sps:$4 sm:$0xff]  }
 0x582   :  { %1385 = vmatpush1.bf16.msra.mxu0 %v7016_v21  ;;  %v7103_v21 = vld [vmem:[%s9658_s2 + $0x240] ss:$8 sps:$4 sm:$0xff]  }
 0x583   :  { %1386 = vmatprep.subr.bf16.mxu0 %v7024_v24  ;;  %v7108_v24 = vld [vmem:[%s9658_s2 + $0x254] ss:$8 sps:$4 sm:$0xff]  }
 0x586   :  { %1387 = vmatpush1.bf16.msra.mxu0 %v7022_v25  ;;  %v7106_v25 = vld [vmem:[%s9658_s2 + $0x250] ss:$8 sps:$4 sm:$0xff]  }
 0x587   :  { %1388 = vmatprep.subr.bf16.mxu0 %v7030_v26  ;;  %v7111_v26 = vld [vmem:[%s9658_s2 + $0x264] ss:$8 sps:$4 sm:$0xff]  }
 0x58a   :  { %1389 = vmatpush1.bf16.msra.mxu0 %v7028_v28  ;;  %v7109_v28 = vld [vmem:[%s9658_s2 + $0x260] ss:$8 sps:$4 sm:$0xff]  }
 0x58b   :  { %1390 = vmatprep.subr.bf16.mxu0 %v7036_v31  ;;  %v7114_v31 = vld [vmem:[%s9658_s2 + $0x274] ss:$8 sps:$4 sm:$0xff]  }
 0x58e   :  { %1391 = vmatpush1.bf16.msra.mxu0 %v7034_v32  ;;  %v7112_v32 = vld [vmem:[%s9658_s2 + $0x270] ss:$8 sps:$4 sm:$0xff]  }
 0x58f   :  { %1392 = vmatprep.subr.bf16.mxu0 %v7042_v33  ;;  %v7117_v33 = vld [vmem:[%s9658_s2 + $0x284] ss:$8 sps:$4 sm:$0xff]  }
 0x592   :  { %1393 = vmatpush1.bf16.msra.mxu0 %v7040_v34  ;;  %v7115_v34 = vld [vmem:[%s9658_s2 + $0x280] ss:$8 sps:$4 sm:$0xff]  }
 0x593   :  { %1394 = vmatprep.subr.bf16.mxu0 %v7048_v35  ;;  %v7120_v35 = vld [vmem:[%s9658_s2 + $0x294] ss:$8 sps:$4 sm:$0xff]  }
 0x596   :  { %1395 = vmatpush1.bf16.msra.mxu0 %v7046_v36  ;;  %v7118_v36 = vld [vmem:[%s9658_s2 + $0x290] ss:$8 sps:$4 sm:$0xff]  }
 0x597   :  { %1396 = vmatprep.subr.bf16.mxu0 %v7054_v37  ;;  %v7123_v37 = vld [vmem:[%s9658_s2 + $0x2a4] ss:$8 sps:$4 sm:$0xff]  }
 0x59a   :  { %1397 = vmatpush1.bf16.msra.mxu0 %v7052_v38  ;;  %v7121_v38 = vld [vmem:[%s9658_s2 + $0x2a0] ss:$8 sps:$4 sm:$0xff]  }
 0x59b   :  { %1398 = vmatprep.subr.bf16.mxu0 %v7060_v39  ;;  %v7126_v39 = vld [vmem:[%s9658_s2 + $0x2b4] ss:$8 sps:$4 sm:$0xff]  }
 0x59e   :  { %1399 = vmatpush1.bf16.msra.mxu0 %v7058_v40  ;;  %v7124_v40 = vld [vmem:[%s9658_s2 + $0x2b0] ss:$8 sps:$4 sm:$0xff]  }
 0x59f   :  { %1400 = vmatprep.subr.bf16.mxu0 %v7066_v41  ;;  %v7129_v41 = vld [vmem:[%s9658_s2 + $0x2c4] ss:$8 sps:$4 sm:$0xff]  }
 0x5a2   :  { %1401 = vmatpush1.bf16.msra.mxu0 %v7064_v42  ;;  %v7127_v42 = vld [vmem:[%s9658_s2 + $0x2c0] ss:$8 sps:$4 sm:$0xff]  }
 0x5a3   :  { %1402 = vmatprep.subr.bf16.mxu0 %v7072_v43  ;;  %v7132_v43 = vld [vmem:[%s9658_s2 + $0x2d4] ss:$8 sps:$4 sm:$0xff]  }
 0x5a6   :  { %1403 = vmatpush1.bf16.msra.mxu0 %v7070_v44  ;;  %v7130_v44 = vld [vmem:[%s9658_s2 + $0x2d0] ss:$8 sps:$4 sm:$0xff]  }
 0x5a7   :  { %1404 = vmatprep.subr.bf16.mxu0 %v7078_v47  ;;  %v7138_v47 = vld [vmem:[%s9658_s2 + $0x2f4] ss:$8 sps:$4 sm:$0xff]  }
 0x5aa   :  { %1405 = vmatpush1.bf16.msra.mxu0 %v7076_v48  ;;  %v7136_v48 = vld [vmem:[%s9658_s2 + $0x2f0] ss:$8 sps:$4 sm:$0xff]  }
 0x5ab   :  { %1406 = vmatprep.subr.bf16.mxu0 %v7084_v51 }
 0x5ae   :  { %1407 = vmatpush1.bf16.msra.mxu0 %v7082_v52 }
 0x5af   :  { %1408 = vmatprep.subr.bf16.mxu0 %v7090_v56 }
 0x5b2   :  { %1409 = vmatpush1.bf16.msra.mxu0 %v7088_v55 }
 0x648   :  { %v1139_v62 = vpop.f32.mrb[12].mxu0 }
 0x649   :  { %v1147_v3 = vrot.slane %v1139_v62, %v7872_v23  ;;  %v1141_v5 = vpop.f32.mrb[13].mxu0  ;;  %v1419_v62 = vld [vmem:[%s9659_s26] sm:$0xff] }
 0x64a   :  { %v1151_v6 = vrot.slane %v1141_v5, %v7872_v23 }
 0x64b   :  { %v1152_v10 = vmul.f32 %v1147_v3, %v7876_v29  ;;  %v7096_v29 = vld [vmem:[%s9658_s2 + $0x214] ss:$8 sps:$4 sm:$0xff]   ;;  %v2149_v3 = vld [vmem:[%s9635_s13] sm:$0xff] }
 0x64c   :  { %v1153_v22 = vmul.f32 %v1151_v6, %v7878_v30  ;;  %v7094_v30 = vld [vmem:[%s9658_s2 + $0x210] ss:$8 sps:$4 sm:$0xff]  }
 0x64d   :  { %v1166_v15 = vmul.f32 %v1159_v4, %v1152_v10  ;;  %v2150_v4 = vld [vmem:[%s9635_s13 + $0x8] sm:$0xff] }
 0x64e   :  { %v1167_v16 = vmul.f32 %v1163_v9, %v1153_v22  ;;  %v5840_v9 = vld [vmem:[%s9659_s26 + $0x20] sm:$0xff]  ;;  %v8226_v10 = vpack.c.bf16 %v2150_v4, %v2149_v3  ;;  %v2151_v22 = vld [vmem:[%s9635_s13 + $0x10] sm:$0xff] }
 0x64f   :  { %v1180_v17 = vadd.f32 %v1173_v11, %v1166_v15 }
 0x650   :  { %v1181_v18 = vadd.f32 %v1177_v12, %v1167_v16  ;;  %v2152_v12 = vld [vmem:[%s9635_s13 + $0x18] sm:$0xff]  ;;  %v7409_v16 = vmov 0.0|0.0  }
 0x651   :  { %v1182_v58 = vmax.f32 %v1180_v17, 0.0  ;;  %v5841_v17 = vld [vmem:[%s9659_s26 + $0x28] sm:$0x3f] }
 0x652   :  { %v1183_v59 = vmax.f32 %v1181_v18, 0.0  ;;  %v8241_v18 = vpack.c.bf16 %v2152_v12, %v2151_v22 }
 0x653   :  { %v8100_v7 = vpack.c.bf16 %v1182_v58, %v1182_v58  ;;  %v2153_v58 = vld [vmem:[%s9635_s13 + $0x20] sm:$0xff] }
 0x654   :  { %v1185_v0 = vpack.c.bf16 %v1183_v59, %v1183_v59  ;;  %v2154_v59 = vld [vmem:[%s9635_s13 + $0x28] sm:$0xff] }
 0x656   :  { %1410 = vmatprep.mubr.bf16.mxu0 %v1185_v0  ;;  %1646 = vmatprep.mubr.bf16.mxu1 %v1185_v0 }
 0x657   :  { %1411 = vmatmul.mubr.bf16.vlgmr.msra.gmra.mrb[16].mxu0 %v8100_v7  ;;  %1647 = vmatmul.mubr.bf16.vlgmr.msra.gmra.mrb[12].mxu1 %v8100_v7 }
 0x658   :  { %2019 = vmatpush1.bf16.msra.mxu1 %v7091_v1  ;;  %2050 = vmatprep.mubr.bf16.mxu1 %v1185_v0  ;;  %v8252_v0 = vpack.c.bf16 %v2154_v59, %v2153_v58  ;;  %v2155_v1 = vld [vmem:[%s9635_s13 + $0x30] sm:$0xff] }
 0x659   :  { %2020 = vmatprep.subr.bf16.mxu1 %v7096_v29  ;;  %1729 = vmatprep.mubr.f32.mxu0 %v7408_v27 }
 0x65c   :  { %2021 = vmatpush1.bf16.msra.mxu1 %v7094_v30  ;;  %v2157_v30 = vld [vmem:[%s9635_s13 + $0x40] sm:$0xff] }
 0x65d   :  { %2022 = vmatprep.subr.bf16.mxu1 %v7099_v8  ;;  %v2158_v8 = vld [vmem:[%s9635_s13 + $0x48] sm:$0xff] }
 0x660   :  { %2023 = vmatpush1.bf16.msra.mxu1 %v7097_v13  ;;  %v8272_v13 = vpack.c.bf16 %v2158_v8, %v2157_v30 }
 0x661   :  { %2024 = vmatprep.subr.bf16.mxu1 %v7102_v14  ;;  %v2159_v14 = vld [vmem:[%s9635_s13 + $0x50] sm:$0xff] }
 0x664   :  { %2025 = vmatpush1.bf16.msra.mxu1 %v7100_v19  ;;  %v2160_v19 = vld [vmem:[%s9635_s13 + $0x58] sm:$0xff] }
 0x665   :  { %2026 = vmatprep.subr.bf16.mxu1 %v7105_v20  ;;  %v8282_v20 = vpack.c.bf16 %v2160_v19, %v2159_v14 }
 0x668   :  { %2027 = vmatpush1.bf16.msra.mxu1 %v7103_v21  ;;  %v2161_v21 = vld [vmem:[%s9635_s13 + $0x60] sm:$0xff] }
 0x669   :  { %2028 = vmatprep.subr.bf16.mxu1 %v7108_v24  ;;  %v2162_v24 = vld [vmem:[%s9635_s13 + $0x68] sm:$0xff] }
 0x66c   :  { %2029 = vmatpush1.bf16.msra.mxu1 %v7106_v25  ;;  %v8292_v25 = vpack.c.bf16 %v2162_v24, %v2161_v21 }
 0x66d   :  { %2030 = vmatprep.subr.bf16.mxu1 %v7111_v26  ;;  %v2163_v26 = vld [vmem:[%s9635_s13 + $0x70] sm:$0xff] }
 0x670   :  { %2031 = vmatpush1.bf16.msra.mxu1 %v7109_v28  ;;  %v2164_v28 = vld [vmem:[%s9635_s13 + $0x78] sm:$0xff] }
 0x671   :  { %2032 = vmatprep.subr.bf16.mxu1 %v7114_v31  ;;  %v8302_v31 = vpack.c.bf16 %v2164_v28, %v2163_v26 }
 0x674   :  { %2033 = vmatpush1.bf16.msra.mxu1 %v7112_v32  ;;  %v2165_v32 = vld [vmem:[%s9635_s13 + $0x80] sm:$0xff] }
 0x675   :  { %2034 = vmatprep.subr.bf16.mxu1 %v7117_v33  ;;  %v2166_v33 = vld [vmem:[%s9635_s13 + $0x88] sm:$0xff] }
 0x678   :  { %2035 = vmatpush1.bf16.msra.mxu1 %v7115_v34  ;;  %v8312_v34 = vpack.c.bf16 %v2166_v33, %v2165_v32 }
 0x679   :  { %2036 = vmatprep.subr.bf16.mxu1 %v7120_v35  ;;  %v2167_v35 = vld [vmem:[%s9635_s13 + $0x90] sm:$0xff] }
 0x67c   :  { %2037 = vmatpush1.bf16.msra.mxu1 %v7118_v36  ;;  %v2168_v36 = vld [vmem:[%s9635_s13 + $0x98] sm:$0xff] }
 0x67d   :  { %2038 = vmatprep.subr.bf16.mxu1 %v7123_v37  ;;  %v8323_v37 = vpack.c.bf16 %v2168_v36, %v2167_v35 }
 0x680   :  { %2039 = vmatpush1.bf16.msra.mxu1 %v7121_v38  ;;  %v2169_v38 = vld [vmem:[%s9635_s13 + $0xa0] sm:$0xff] }
 0x681   :  { %2040 = vmatprep.subr.bf16.mxu1 %v7126_v39  ;;  %v2170_v39 = vld [vmem:[%s9635_s13 + $0xa8] sm:$0xff] }
 0x684   :  { %2041 = vmatpush1.bf16.msra.mxu1 %v7124_v40  ;;  %v8333_v40 = vpack.c.bf16 %v2170_v39, %v2169_v38 }
 0x685   :  { %2042 = vmatprep.subr.bf16.mxu1 %v7129_v41  ;;  %v2171_v41 = vld [vmem:[%s9635_s13 + $0xb0] sm:$0xff] }
 0x688   :  { %2043 = vmatpush1.bf16.msra.mxu1 %v7127_v42  ;;  %v2172_v42 = vld [vmem:[%s9635_s13 + $0xb8] sm:$0xff] }
 0x689   :  { %2044 = vmatprep.subr.bf16.mxu1 %v7132_v43  ;;  %v8343_v43 = vpack.c.bf16 %v2172_v42, %v2171_v41 }
 0x68c   :  { %2045 = vmatpush1.bf16.msra.mxu1 %v7130_v44  ;;  %v2173_v44 = vld [vmem:[%s9635_s13 + $0xc0] sm:$0xff] }
 0x68d   :  { %2046 = vmatprep.subr.bf16.mxu1 %v7135_v45  ;;  %v2174_v45 = vld [vmem:[%s9635_s13 + $0xc8] sm:$0xff] }
 0x690   :  { %2047 = vmatpush1.bf16.msra.mxu1 %v7133_v46  ;;  %v8353_v46 = vpack.c.bf16 %v2174_v45, %v2173_v44 }
 0x691   :  { %2048 = vmatprep.subr.bf16.mxu1 %v7138_v47  ;;  %v2175_v47 = vld [vmem:[%s9635_s13 + $0xd0] sm:$0xff] }
 0x694   :  { %2049 = vmatpush1.bf16.msra.mxu1 %v7136_v48  ;;  %v2176_v48 = vld [vmem:[%s9635_s13 + $0xd8] sm:$0xff] }
 0x697   :  { %2051 = vmatmul.mubr.bf16.vlgmr.msra.gmra.mrb[16].mxu1 %v8100_v7  ;;  %v2156_v7 = vld [vmem:[%s9635_s13 + $0x38] sm:$0xff] }
 0x698   :  { %2347 = vmatprep.mubr.f32.mxu1 %v7408_v27  ;;  %v8262_v29 = vpack.c.bf16 %v2156_v7, %v2155_v1 }
 0x72a   :  { %v1412_v49 = vpop.f32.mrb[16].mxu0  ;;  %v1648_v50 = vpop.f32.mrb[12].mxu1 }
 0x72b   :  { %v1414_v51 = vpop.f32.mrb[17].mxu0  ;;  %v1650_v52 = vpop.f32.mrb[13].mxu1 }
 0x72c   :  { %v1416_v54 = vpop.f32.mrb[18].mxu0  ;;  %v1652_v55 = vpop.f32.mrb[14].mxu1  ;;  %1665 = vmatprep.subr.mxu0 %v1650_v52  ;;  %v2177_v52 = vld [vmem:[%s9636_s14] sm:$0xff] }
 0x72d   :  { %v1417_v56 = vpop.f32.mrb[19].mxu0  ;;  %v1653_v57 = vpop.f32.mrb[15].mxu1  ;;  %1666 = vmatpush1.msra.mxu0 %v1648_v50  ;;  %v2178_v50 = vld [vmem:[%s9636_s14 + $0x8] sm:$0xff]  ;;  %v2179_v54 = vld [vmem:[%s9636_s14 + $0x10] sm:$0xff] }
 0x72e   :  { %1748 = vmatprep.subr.mxu0 %v1414_v51  ;;  %5772 = vmatmul.mubr.msk.f32.vlgmr.msra.gmra.mrb[14].mxu0 %vm1658_vm3, %v5770_v53  ;;  %v2180_v51 = vld [vmem:[%s9636_s14 + $0x18] sm:$0xff]  ;;  %v2182_v55 = vld [vmem:[%s9636_s14 + $0x28] sm:$0xff]  ;;  %v8387_v57 = vpack.c.bf16 %v2179_v54, %v2177_v52 }
 0x72f   :  { %1749 = vmatpush1.msra.mxu0 %v1412_v49  ;;  %1735 = vmatprep.mubr.f32.mxu0 %v7408_v27  ;;  %v8363_v49 = vpack.c.bf16 %v2176_v48, %v2175_v47  ;;  %v8376_v53 = vpack.c.bf16 %v2180_v51, %v2178_v50  ;;  %v2184_v56 = vld [vmem:[%s9636_s14 + $0x38] sm:$0xff] }
 0x731   :  { %6658 = vmatprep.subr.bf16.mxu1 %v8376_v53 }
 0x732   :  { %5773 = vmatmul.mubr.msk.f32.gmra.mrb[20].mxu0 %vm1658_vm3, %v5771_v60  ;;  %v8389_v60 = vpack.c.bf16 %v2184_v56, %v2182_v55  ;;  %6660 = vmatpush1.bf16.msra.mxu1 %v8387_v57  ;;  %v7139_v56 = vld [vmem:[%s9628_s6 + $0xe0] ss:$8 sps:$4 sm:$0xff]  }
 0x733   :  { %1812 = vmatprep.mubr.f32.mxu0 %v7408_v27 }
 0x734   :  { %6662 = vmatprep.subr.bf16.mxu1 %v8389_v60 }
 0x736   :  { %5774 = vmatmul.mubr.msk.f32.vlgmr.msra.gmra.mrb[14].mxu0 %vm1658_vm3, %v1419_v62 }
 0x737   :  { %1818 = vmatprep.mubr.f32.mxu0 %v7408_v27 }
 0x73a   :  { %5775 = vmatmul.mubr.msk.f32.gmra.mrb[20].mxu0 %vm1658_vm3, %v1420_v63 }
 0x73b   :  { %2132 = vmatprep.mubr.f32.mxu0 %v7408_v27 }
 0x76a   :  { %v2052_v5 = vpop.f32.mrb[16].mxu1 }
 0x76b   :  { %v2054_v6 = vpop.f32.mrb[17].mxu1 }
 0x76c   :  { %v2056_v11 = vpop.f32.mrb[18].mxu1  ;;  %2068 = vmatprep.subr.mxu0 %v2054_v6 }
 0x76d   :  { %v2057_v15 = vpop.f32.mrb[19].mxu1  ;;  %2069 = vmatpush1.msra.mxu0 %v2052_v5 }
 0x76e   :  { %5842 = vmatmul.mubr.msk.f32.vlgmr.msra.gmra.mrb[14].mxu0 %vm1658_vm3, %v5840_v9  ;;  %6615 = vmatprep.subr.bf16.mxu0 %v7409_v16 }
 0x76f   :  { %2138 = vmatprep.mubr.f32.mxu0 %v7408_v27  ;;  %6617 = vmatpush1.bf16.msra.mxu0 %v8226_v10 }
 0x770   :  { %6618 = vmatprep.subr.bf16.mxu0 %v7409_v16 }
 0x772   :  { %5843 = vmatmul.mubr.msk.f32.gmra.mrb[20].mxu0 %vm1658_vm3, %v5841_v17 }
 0x773   :  { %6620 = vmatpush1.bf16.msra.mxu0 %v8241_v18 }
 0x774   :  { %6621 = vmatprep.subr.bf16.mxu0 %v7409_v16 }
 0x777   :  { %6623 = vmatpush1.bf16.msra.mxu0 %v8252_v0 }
 0x778   :  { %6624 = vmatprep.subr.bf16.mxu0 %v7409_v16 }
 0x77b   :  { %6626 = vmatpush1.bf16.msra.mxu0 %v8262_v29 }
 0x77c   :  { %6627 = vmatprep.subr.bf16.mxu0 %v7409_v16 }
 0x77f   :  { %6629 = vmatpush1.bf16.msra.mxu0 %v8272_v13 }
 0x780   :  { %6630 = vmatprep.subr.bf16.mxu0 %v7409_v16 }
 0x783   :  { %6632 = vmatpush1.bf16.msra.mxu0 %v8282_v20 }
 0x784   :  { %6633 = vmatprep.subr.bf16.mxu0 %v7409_v16 }
 0x787   :  { %6635 = vmatpush1.bf16.msra.mxu0 %v8292_v25 }
 0x788   :  { %6636 = vmatprep.subr.bf16.mxu0 %v7409_v16 }
 0x78b   :  { %6638 = vmatpush1.bf16.msra.mxu0 %v8302_v31 }
 0x78c   :  { %6639 = vmatprep.subr.bf16.mxu0 %v7409_v16 }
 0x78f   :  { %6641 = vmatpush1.bf16.msra.mxu0 %v8312_v34 }
 0x790   :  { %6642 = vmatprep.subr.bf16.mxu0 %v7409_v16 }
 0x793   :  { %6644 = vmatpush1.bf16.msra.mxu0 %v8323_v37 }
 0x794   :  { %6645 = vmatprep.subr.bf16.mxu0 %v7409_v16 }
 0x797   :  { %6647 = vmatpush1.bf16.msra.mxu0 %v8333_v40 }
 0x798   :  { %6648 = vmatprep.subr.bf16.mxu0 %v7409_v16 }
 0x79b   :  { %6650 = vmatpush1.bf16.msra.mxu0 %v8343_v43 }
 0x79c   :  { %6651 = vmatprep.subr.bf16.mxu0 %v7409_v16 }
 0x79f   :  { %6653 = vmatpush1.bf16.msra.mxu0 %v8353_v46 }
 0x7a0   :  { %6654 = vmatprep.subr.bf16.mxu0 %v7409_v16 }
 0x7a3   :  { %6656 = vmatpush1.bf16.msra.mxu0 %v8363_v49 }
 0x7a4   :  { %6665 = vmatprep.subr.bf16.mxu0 %v7409_v16 }
 0x841   :  { %v8394_v62 = vpop.f32.mrb[14].mxu0 }
 0x842   :  { %v8396_v63 = vpop.f32.mrb[15].mxu0 }
 0x843   :  { %v2195_v6 = vsel %vm2194_vm5, %v8396_v63, 0.0 }
 0x845   :  { %v8398_v3 = vpop.f32.mrb[20].mxu0 }
 0x846   :  { %v2186_v4 = vsel %vm2185_vm4, %v8398_v3, 0.0  ;;  %v8402_v5 = vpop.f32.mrb[21].mxu0 }
 0x847   :  { %v2187_v9 = vadd.f32 %v2186_v4, %v8394_v62  ;;  %v2197_v11 = vsel %vm2196_vm6, %v8402_v5, 0.0  ;;  %v7151_v4 = vld [vmem:[%s9628_s6 + $0x100] ss:$8 sps:$4 sm:$0xff]  }
 0x848   :  { %v2198_v22 = vadd.f32 %v2197_v11, %v2195_v6  ;;  %v7157_v6 = vld [vmem:[%s9628_s6 + $0x110] ss:$8 sps:$4 sm:$0xff]   ;;  %v7163_v11 = vld [vmem:[%s9628_s6 + $0x120] ss:$8 sps:$4 sm:$0xff]  }
 0x849   :  { %v2188_v12 = vrot.slane %v2187_v9, 4 }
 0x84a   :  { %v2199_v15 = vrot.slane %v2198_v22, 4 }
 0x84b   :  { %v2189_v17 = vadd.f32 %v2188_v12, %v2187_v9  ;;  %v7165_v9 = vld [vmem:[%s9628_s6 + $0x124] ss:$8 sps:$4 sm:$0xff]   ;;  %v7169_v12 = vld [vmem:[%s9628_s6 + $0x130] ss:$8 sps:$4 sm:$0xff]  }
 0x84c   :  { %v2200_v58 = vadd.f32 %v2199_v15, %v2198_v22  ;;  %v7171_v22 = vld [vmem:[%s9628_s6 + $0x134] ss:$8 sps:$4 sm:$0xff]   ;;  %v7177_v15 = vld [vmem:[%s9628_s6 + $0x144] ss:$8 sps:$4 sm:$0xff]  }
 0x84d   :  { %v2190_v59 = vrot.slane %v2189_v17, 2 }
 0x84e   :  { %v2201_v1 = vrot.slane %v2200_v58, 2 }
 0x84f   :  { %v2191_v7 = vadd.f32 %v2190_v59, %v2189_v17  ;;  %v7175_v17 = vld [vmem:[%s9628_s6 + $0x140] ss:$8 sps:$4 sm:$0xff]   ;;  %v7181_v59 = vld [vmem:[%s9628_s6 + $0x150] ss:$8 sps:$4 sm:$0xff]  }
 0x850   :  { %v2202_v30 = vadd.f32 %v2201_v1, %v2200_v58  ;;  %v7183_v58 = vld [vmem:[%s9628_s6 + $0x154] ss:$8 sps:$4 sm:$0xff]   ;;  %v7189_v1 = vld [vmem:[%s9628_s6 + $0x164] ss:$8 sps:$4 sm:$0xff]  }
 0x851   :  { %v2192_v8 = vrot.slane %v2191_v7, 1 }
 0x852   :  { %v2203_v14 = vrot.slane %v2202_v30, 1 }
 0x853   :  { %v2193_v21 = vadd.f32 %v2192_v8, %v2191_v7  ;;  %v7187_v7 = vld [vmem:[%s9628_s6 + $0x160] ss:$8 sps:$4 sm:$0xff]   ;;  %v7193_v8 = vld [vmem:[%s9628_s6 + $0x170] ss:$8 sps:$4 sm:$0xff]  }
 0x854   :  { %v2204_v19 = vadd.f32 %v2203_v14, %v2202_v30  ;;  %v7195_v30 = vld [vmem:[%s9628_s6 + $0x174] ss:$8 sps:$4 sm:$0xff]   ;;  %v7201_v14 = vld [vmem:[%s9628_s6 + $0x184] ss:$8 sps:$4 sm:$0xff]  }
 0x856   :  { %5844 = vmatprep.mubr.msk.f32.mxu0 %vm2194_vm5, %v2204_v19  ;;  %v7199_v19 = vld [vmem:[%s9628_s6 + $0x180] ss:$8 sps:$4 sm:$0xff]  }
 0x857   :  { %2273 = vmatmul.mubr.f32.vlgmr.msra.gmra.mrb[22].mxu0 %v2193_v21 }
 0x858   :  { %6667 = vmatpush1.bf16.msra.mxu0 %v8226_v10  ;;  %v2181_v10 = vld [vmem:[%s9636_s14 + $0x20] sm:$0xff] }
 0x859   :  { %6668 = vmatprep.subr.bf16.mxu0 %v7409_v16 }
 0x85c   :  { %6670 = vmatpush1.bf16.msra.mxu0 %v8241_v18  ;;  %v2183_v18 = vld [vmem:[%s9636_s14 + $0x30] sm:$0xff]  ;;  %s9662_s14 = sld [smem:[#allocation10_spill]] }
 0x85d   :  { %6671 = vmatprep.subr.bf16.mxu0 %v7409_v16 }
 0x860   :  { %6673 = vmatpush1.bf16.msra.mxu0 %v8252_v0  ;;  %v6663_v0 = vpack.c.bf16 %v2183_v18, %v2181_v10 }
 0x861   :  { %6674 = vmatprep.subr.bf16.mxu0 %v7409_v16 }
 0x862   :  { %6664 = vmatpush1.bf16.msra.mxu1 %v6663_v0 }
 0x863   :  { %6708 = vmatprep.subr.bf16.mxu1 %v8376_v53 }
 0x864   :  { %6676 = vmatpush1.bf16.msra.mxu0 %v8262_v29 }
 0x865   :  { %6677 = vmatprep.subr.bf16.mxu0 %v7409_v16 }
 0x868   :  { %6679 = vmatpush1.bf16.msra.mxu0 %v8272_v13 }
 0x869   :  { %6680 = vmatprep.subr.bf16.mxu0 %v7409_v16 }
 0x86c   :  { %6682 = vmatpush1.bf16.msra.mxu0 %v8282_v20 }
 0x86d   :  { %6683 = vmatprep.subr.bf16.mxu0 %v7409_v16 }
 0x870   :  { %6685 = vmatpush1.bf16.msra.mxu0 %v8292_v25 }
 0x871   :  { %6686 = vmatprep.subr.bf16.mxu0 %v7409_v16 }
 0x874   :  { %6688 = vmatpush1.bf16.msra.mxu0 %v8302_v31 }
 0x875   :  { %6689 = vmatprep.subr.bf16.mxu0 %v7409_v16 }
 0x878   :  { %6691 = vmatpush1.bf16.msra.mxu0 %v8312_v34 }
 0x879   :  { %6692 = vmatprep.subr.bf16.mxu0 %v7409_v16 }
 0x87c   :  { %6694 = vmatpush1.bf16.msra.mxu0 %v8323_v37 }
 0x87d   :  { %6695 = vmatprep.subr.bf16.mxu0 %v7409_v16 }
 0x880   :  { %6697 = vmatpush1.bf16.msra.mxu0 %v8333_v40 }
 0x881   :  { %6698 = vmatprep.subr.bf16.mxu0 %v7409_v16 }
 0x884   :  { %6700 = vmatpush1.bf16.msra.mxu0 %v8343_v43 }
 0x885   :  { %6701 = vmatprep.subr.bf16.mxu0 %v7409_v16 }
 0x888   :  { %6703 = vmatpush1.bf16.msra.mxu0 %v8353_v46 }
 0x889   :  { %6704 = vmatprep.subr.bf16.mxu0 %v7409_v16 }
 0x88c   :  { %6706 = vmatpush1.bf16.msra.mxu0 %v8363_v49 }
 0x92a   :  { %v2274_v29 = vpop.f32.mrb[22].mxu0 }
 0x92b   :  { %v2278_v13 = vmul.f32 0.010204081, %v2274_v29  ;;  %v2276_v20 = vpop.f32.mrb[23].mxu0  ;;  %v7142_v29 = vld [vmem:[%s9628_s6] ss:$8 sps:$4 sm:$0xff]  }
 0x92d   :  { %5845 = vmatmul.mubr.msk.f32.vlgmr.msra.gmra.mrb[20].mxu1 %vm2279_vm7, %v2278_v13  ;;  %v7150_v13 = vld [vmem:[%s9628_s6 + $0x14] ss:$8 sps:$4 sm:$0xff]  }
 0x92e   :  { %6710 = vmatpush1.bf16.msra.mxu1 %v8387_v57  ;;  %2530 = vmatprep.mubr.f32.mxu1 %v7408_v27  ;;  %v7141_v57 = vld [vmem:[%s9628_s6 + $0xe4] ss:$8 sps:$4 sm:$0xff]  }
 0x92f   :  { %6712 = vmatprep.subr.bf16.mxu1 %v8389_v60  ;;  %v7144_v60 = vld [vmem:[%s9628_s6 + $0x4] ss:$8 sps:$4 sm:$0xff]   ;;  %2974 = vmatprep.subr.bf16.mxu0 %v7141_v57  ;;  %v7214_v57 = vld [vmem:[%s9628_s6 + $0xc0] ss:$8 sps:$4 sm:$0xff]  }
 0x932   :  { %6714 = vmatpush1.bf16.msra.mxu1 %v6663_v0 }
 0x933   :  { %2758 = vmatprep.subr.bf16.mxu1 %v7144_v60  ;;  %v7219_v60 = vld [vmem:[%s9628_s6 + $0x1b4] ss:$8 sps:$4 sm:$0xff]  }
 0xa00   :  { %v2349_v24 = vpop.f32.mrb[20].mxu1 }
 0xa01   :  { %v2357_v25 = vrot.slane %v2349_v24, %v7872_v23  ;;  %v2351_v26 = vpop.f32.mrb[21].mxu1  ;;  %v7148_v24 = vld [vmem:[%s9628_s6 + $0x10] ss:$8 sps:$4 sm:$0xff]  }
 0xa02   :  { %v2361_v28 = vrot.slane %v2351_v26, %v7872_v23  ;;  %v7154_v26 = vld [vmem:[%s9628_s6 + $0x20] ss:$8 sps:$4 sm:$0xff]  }
 0xa03   :  { %v8451_v31 = vsub.f32 %v8394_v62, %v2357_v25  ;;  %v8454_v32 = vsub.f32 %v8398_v3, %v2357_v25  ;;  %v7147_v62 = vld [vmem:[%s9628_s6 + $0xf4] ss:$8 sps:$4 sm:$0xff]   ;;  %v7153_v3 = vld [vmem:[%s9628_s6 + $0x104] ss:$8 sps:$4 sm:$0xff]  }
 0xa04   :  { %v8457_v33 = vsub.f32 %v8396_v63, %v2361_v28  ;;  %v8460_v34 = vsub.f32 %v8402_v5, %v2361_v28  ;;  %v7145_v63 = vld [vmem:[%s9628_s6 + $0xf0] ss:$8 sps:$4 sm:$0xff]   ;;  %v7159_v5 = vld [vmem:[%s9628_s6 + $0x114] ss:$8 sps:$4 sm:$0xff]   ;;  %v7156_v25 = vld [vmem:[%s9628_s6 + $0x24] ss:$8 sps:$4 sm:$0xff]  }
 0xa05   :  { %v2366_v35 = vmul.f32 %v8451_v31, %v8451_v31  ;;  %v2368_v36 = vmul.f32 %v8454_v32, %v8454_v32  ;;  %v7162_v28 = vld [vmem:[%s9628_s6 + $0x34] ss:$8 sps:$4 sm:$0xff]  }
 0xa06   :  { %v2367_v37 = vmul.f32 %v8457_v33, %v8457_v33  ;;  %v2369_v38 = vmul.f32 %v8460_v34, %v8460_v34 }
 0xa07   :  { %v2370_v39 = vsel %vm2185_vm4, %v2368_v36, 0.0  ;;  %v7168_v36 = vld [vmem:[%s9628_s6 + $0x44] ss:$8 sps:$4 sm:$0xff]  }
 0xa08   :  { %v2371_v40 = vadd.f32 %v2370_v39, %v2366_v35  ;;  %v2378_v41 = vsel %vm2194_vm5, %v2367_v37, 0.0  ;;  %v2379_v42 = vsel %vm2196_vm6, %v2369_v38, 0.0  ;;  %v7160_v35 = vld [vmem:[%s9628_s6 + $0x30] ss:$8 sps:$4 sm:$0xff]   ;;  %v7166_v37 = vld [vmem:[%s9628_s6 + $0x40] ss:$8 sps:$4 sm:$0xff]  }
 0xa09   :  { %v2380_v43 = vadd.f32 %v2379_v42, %v2378_v41  ;;  %v7174_v38 = vld [vmem:[%s9628_s6 + $0x54] ss:$8 sps:$4 sm:$0xff]   ;;  %v7172_v39 = vld [vmem:[%s9628_s6 + $0x50] ss:$8 sps:$4 sm:$0xff]   ;;  %v7178_v41 = vld [vmem:[%s9628_s6 + $0x60] ss:$8 sps:$4 sm:$0xff]  }
 0xa0a   :  { %v2372_v44 = vrot.slane %v2371_v40, 4  ;;  %v7186_v42 = vld [vmem:[%s9628_s6 + $0x74] ss:$8 sps:$4 sm:$0xff]  }
 0xa0b   :  { %v2381_v45 = vrot.slane %v2380_v43, 4 }
 0xa0c   :  { %v2373_v46 = vadd.f32 %v2372_v44, %v2371_v40  ;;  %v7180_v40 = vld [vmem:[%s9628_s6 + $0x64] ss:$8 sps:$4 sm:$0xff]  }
 0xa0d   :  { %v2382_v47 = vadd.f32 %v2381_v45, %v2380_v43  ;;  %v7184_v43 = vld [vmem:[%s9628_s6 + $0x70] ss:$8 sps:$4 sm:$0xff]   ;;  %v7192_v44 = vld [vmem:[%s9628_s6 + $0x84] ss:$8 sps:$4 sm:$0xff]   ;;  %v7190_v45 = vld [vmem:[%s9628_s6 + $0x80] ss:$8 sps:$4 sm:$0xff]  }
 0xa0e   :  { %v2374_v48 = vrot.slane %v2373_v46, 2 }
 0xa0f   :  { %v2383_v49 = vrot.slane %v2382_v47, 2 }
 0xa10   :  { %v2375_v50 = vadd.f32 %v2374_v48, %v2373_v46  ;;  %v7198_v46 = vld [vmem:[%s9628_s6 + $0x94] ss:$8 sps:$4 sm:$0xff]   ;;  %v7204_v48 = vld [vmem:[%s9628_s6 + $0xa4] ss:$8 sps:$4 sm:$0xff]  }
 0xa11   :  { %v2384_v51 = vadd.f32 %v2383_v49, %v2382_v47  ;;  %v7196_v47 = vld [vmem:[%s9628_s6 + $0x90] ss:$8 sps:$4 sm:$0xff]   ;;  %v7202_v49 = vld [vmem:[%s9628_s6 + $0xa0] ss:$8 sps:$4 sm:$0xff]  }
 0xa12   :  { %v2376_v52 = vrot.slane %v2375_v50, 1 }
 0xa13   :  { %v2385_v53 = vrot.slane %v2384_v51, 1 }
 0xa14   :  { %v2377_v55 = vadd.f32 %v2376_v52, %v2375_v50  ;;  %v7207_v50 = vld [vmem:[%s9628_s6 + $0x194] ss:$8 sps:$4 sm:$0xff]  }
 0xa15   :  { %v2386_v54 = vadd.f32 %v2385_v53, %v2384_v51  ;;  %v7205_v51 = vld [vmem:[%s9628_s6 + $0x190] ss:$8 sps:$4 sm:$0xff]   ;;  %v7210_v52 = vld [vmem:[%s9628_s6 + $0xb4] ss:$8 sps:$4 sm:$0xff]  }
 0xa16   :  { %v7208_v53 = vld [vmem:[%s9628_s6 + $0xb0] ss:$8 sps:$4 sm:$0xff]  }
 0xa17   :  { %5846 = vmatprep.mubr.msk.f32.mxu0 %vm2194_vm5, %v2386_v54  ;;  %v7213_v54 = vld [vmem:[%s9628_s6 + $0x1a4] ss:$8 sps:$4 sm:$0xff]  }
 0xa18   :  { %2455 = vmatmul.mubr.f32.vlgmr.msra.gmra.mrb[24].mxu0 %v2377_v55  ;;  %v7211_v55 = vld [vmem:[%s9628_s6 + $0x1a0] ss:$8 sps:$4 sm:$0xff]  }
 0xa19   :  { %2975 = vmatpush1.bf16.msra.mxu0 %v7139_v56  ;;  %v7216_v56 = vld [vmem:[%s9628_s6 + $0xc4] ss:$8 sps:$4 sm:$0xff]  }
 0xa1a   :  { %2976 = vmatprep.subr.bf16.mxu0 %v7147_v62  ;;  %v7217_v62 = vld [vmem:[%s9628_s6 + $0x1b0] ss:$8 sps:$4 sm:$0xff]  }
 0xa1d   :  { %2977 = vmatpush1.bf16.msra.mxu0 %v7145_v63  ;;  %v7222_v63 = vld [vmem:[%s9628_s6 + $0xd4] ss:$8 sps:$4 sm:$0xff]  }
 0xa1e   :  { %2978 = vmatprep.subr.bf16.mxu0 %v7153_v3  ;;  %v7220_v3 = vld [vmem:[%s9628_s6 + $0xd0] ss:$8 sps:$4 sm:$0xff]  }
 0xa21   :  { %2979 = vmatpush1.bf16.msra.mxu0 %v7151_v4  ;;  %v7225_v4 = vld [vmem:[%s9628_s6 + $0x2a4] ss:$8 sps:$4 sm:$0xff]  }
 0xa22   :  { %2980 = vmatprep.subr.bf16.mxu0 %v7159_v5  ;;  %v2549_v5 = vld [vmem:[%s9637_s15] sm:$0x3] }
 0xa25   :  { %2981 = vmatpush1.bf16.msra.mxu0 %v7157_v6 }
 0xa26   :  { %2982 = vmatprep.subr.bf16.mxu0 %v7165_v9  ;;  %v2565_v9 = vld [vmem:[%s9638_s16] sm:$0x3] }
 0xa29   :  { %2983 = vmatpush1.bf16.msra.mxu0 %v7163_v11 }
 0xa2a   :  { %2984 = vmatprep.subr.bf16.mxu0 %v7171_v22  ;;  %v2554_v22 = vrot.slane %v2549_v5, %v7872_v23 }
 0xa2d   :  { %2985 = vmatpush1.bf16.msra.mxu0 %v7169_v12 }
 0xa2e   :  { %2986 = vmatprep.subr.bf16.mxu0 %v7177_v15 }
 0xa31   :  { %2987 = vmatpush1.bf16.msra.mxu0 %v7175_v17  ;;  %v2558_v17 = vrot.slane %v2549_v5, %v8084_v61 }
 0xa32   :  { %2988 = vmatprep.subr.bf16.mxu0 %v7183_v58 }
 0xa35   :  { %2989 = vmatpush1.bf16.msra.mxu0 %v7181_v59 }
 0xa36   :  { %2990 = vmatprep.subr.bf16.mxu0 %v7189_v1  ;;  %v2570_v1 = vrot.slane %v2565_v9, %v7872_v23 }
 0xa39   :  { %2991 = vmatpush1.bf16.msra.mxu0 %v7187_v7 }
 0xa3a   :  { %2992 = vmatprep.subr.bf16.mxu0 %v7195_v30 }
 0xa3d   :  { %2993 = vmatpush1.bf16.msra.mxu0 %v7193_v8  ;;  %v2574_v8 = vrot.slane %v2565_v9, %v8084_v61  ;;  %v6010_v9 = vld [vmem:[%s9662_s14 + $0x58] sm:$0xf] }
 0xa3e   :  { %2994 = vmatprep.subr.bf16.mxu0 %v7201_v14 }
 0xa41   :  { %2995 = vmatpush1.bf16.msra.mxu0 %v7199_v19 }
 0xa42   :  { %2996 = vmatprep.subr.bf16.mxu0 %v7207_v50  ;;  %v7250_v50 = vld [vmem:[%s9628_s6 + $0x330] ss:$8 sps:$4 sm:$0xff]  }
 0xa45   :  { %2997 = vmatpush1.bf16.msra.mxu0 %v7205_v51  ;;  %v7255_v51 = vld [vmem:[%s9628_s6 + $0x344] ss:$8 sps:$4 sm:$0xff]  }
 0xa46   :  { %2998 = vmatprep.subr.bf16.mxu0 %v7213_v54  ;;  %v7256_v54 = vld [vmem:[%s9628_s6 + $0x350] ss:$8 sps:$4 sm:$0xff]  }
 0xa49   :  { %2999 = vmatpush1.bf16.msra.mxu0 %v7211_v55  ;;  %v7261_v55 = vld [vmem:[%s9628_s6 + $0x364] ss:$8 sps:$4 sm:$0xff]  }
 0xa4a   :  { %3000 = vmatprep.subr.bf16.mxu0 %v7219_v60  ;;  %v7262_v60 = vld [vmem:[%s9628_s6 + $0x370] ss:$8 sps:$4 sm:$0xff]  }
 0xa4d   :  { %3001 = vmatpush1.bf16.msra.mxu0 %v7217_v62 }
 0xa4e   :  { %3738 = vmatprep.subr.bf16.mxu0 %v7225_v4 }
 0xaeb   :  { %v2456_v21 = vpop.f32.mrb[24].mxu0 }
 0xaec   :  { %v2460_v10 = vmul.f32 0.010204081, %v2456_v21  ;;  %v2458_v18 = vpop.f32.mrb[25].mxu0 }
 0xaee   :  { %v2461_v0 = vadd.f32 1e-05, %v2460_v10 }
 0xaf0   :  { %7365 = vrsqrt.f32 %v2461_v0 }
 0xafa   :  { %v7366_v20 = vpop.eup %7365 }
 0xafb   :  { %5847 = vmatmul.mubr.msk.f32.vlgmr.msra.gmra.mrb[22].mxu1 %vm2279_vm7, %v7366_v20 }
 0xafc   :  { %2759 = vmatpush1.bf16.msra.mxu1 %v7142_v29 }
 0xafd   :  { %2760 = vmatprep.subr.bf16.mxu1 %v7150_v13 }
 0xb00   :  { %2761 = vmatpush1.bf16.msra.mxu1 %v7148_v24 }
 0xb01   :  { %2762 = vmatprep.subr.bf16.mxu1 %v7156_v25 }
 0xb04   :  { %2763 = vmatpush1.bf16.msra.mxu1 %v7154_v26  ;;  %v7228_v26 = vld [vmem:[%s9628_s6 + $0x2b4] ss:$8 sps:$4 sm:$0xff]  }
 0xb05   :  { %2764 = vmatprep.subr.bf16.mxu1 %v7162_v28  ;;  %v7226_v28 = vld [vmem:[%s9628_s6 + $0x2b0] ss:$8 sps:$4 sm:$0xff]  }
 0xb08   :  { %2765 = vmatpush1.bf16.msra.mxu1 %v7160_v35  ;;  %v7231_v35 = vld [vmem:[%s9628_s6 + $0x2c4] ss:$8 sps:$4 sm:$0xff]  }
 0xb09   :  { %2766 = vmatprep.subr.bf16.mxu1 %v7168_v36  ;;  %v7229_v36 = vld [vmem:[%s9628_s6 + $0x2c0] ss:$8 sps:$4 sm:$0xff]  }
 0xb0c   :  { %2767 = vmatpush1.bf16.msra.mxu1 %v7166_v37  ;;  %v7234_v37 = vld [vmem:[%s9628_s6 + $0x2d4] ss:$8 sps:$4 sm:$0xff]  }
 0xb0d   :  { %2768 = vmatprep.subr.bf16.mxu1 %v7174_v38  ;;  %v7232_v38 = vld [vmem:[%s9628_s6 + $0x2d0] ss:$8 sps:$4 sm:$0xff]  }
 0xb10   :  { %2769 = vmatpush1.bf16.msra.mxu1 %v7172_v39  ;;  %v7237_v39 = vld [vmem:[%s9628_s6 + $0x2e4] ss:$8 sps:$4 sm:$0xff]  }
 0xb11   :  { %2770 = vmatprep.subr.bf16.mxu1 %v7180_v40  ;;  %v7235_v40 = vld [vmem:[%s9628_s6 + $0x2e0] ss:$8 sps:$4 sm:$0xff]  }
 0xb14   :  { %2771 = vmatpush1.bf16.msra.mxu1 %v7178_v41  ;;  %v7240_v41 = vld [vmem:[%s9628_s6 + $0x2f4] ss:$8 sps:$4 sm:$0xff]  }
 0xb15   :  { %2772 = vmatprep.subr.bf16.mxu1 %v7186_v42  ;;  %v7238_v42 = vld [vmem:[%s9628_s6 + $0x2f0] ss:$8 sps:$4 sm:$0xff]  }
 0xb18   :  { %2773 = vmatpush1.bf16.msra.mxu1 %v7184_v43  ;;  %v7243_v43 = vld [vmem:[%s9628_s6 + $0x304] ss:$8 sps:$4 sm:$0xff]  }
 0xb19   :  { %2774 = vmatprep.subr.bf16.mxu1 %v7192_v44  ;;  %v7241_v44 = vld [vmem:[%s9628_s6 + $0x300] ss:$8 sps:$4 sm:$0xff]  }
 0xb1c   :  { %2775 = vmatpush1.bf16.msra.mxu1 %v7190_v45  ;;  %v7246_v45 = vld [vmem:[%s9628_s6 + $0x314] ss:$8 sps:$4 sm:$0xff]  }
 0xb1d   :  { %2776 = vmatprep.subr.bf16.mxu1 %v7198_v46  ;;  %v7244_v46 = vld [vmem:[%s9628_s6 + $0x310] ss:$8 sps:$4 sm:$0xff]  }
 0xb20   :  { %2777 = vmatpush1.bf16.msra.mxu1 %v7196_v47  ;;  %v7249_v47 = vld [vmem:[%s9628_s6 + $0x324] ss:$8 sps:$4 sm:$0xff]  }
 0xb21   :  { %2778 = vmatprep.subr.bf16.mxu1 %v7204_v48  ;;  %v7247_v48 = vld [vmem:[%s9628_s6 + $0x320] ss:$8 sps:$4 sm:$0xff]  }
 0xb24   :  { %2779 = vmatpush1.bf16.msra.mxu1 %v7202_v49  ;;  %v7252_v49 = vld [vmem:[%s9628_s6 + $0x334] ss:$8 sps:$4 sm:$0xff]  }
 0xb25   :  { %2780 = vmatprep.subr.bf16.mxu1 %v7210_v52  ;;  %v7253_v52 = vld [vmem:[%s9628_s6 + $0x340] ss:$8 sps:$4 sm:$0xff]  }
 0xb28   :  { %2781 = vmatpush1.bf16.msra.mxu1 %v7208_v53  ;;  %v7258_v53 = vld [vmem:[%s9628_s6 + $0x354] ss:$8 sps:$4 sm:$0xff]  }
 0xb29   :  { %2782 = vmatprep.subr.bf16.mxu1 %v7216_v56  ;;  %v7259_v56 = vld [vmem:[%s9628_s6 + $0x360] ss:$8 sps:$4 sm:$0xff]  }
 0xb2c   :  { %2783 = vmatpush1.bf16.msra.mxu1 %v7214_v57  ;;  %v7264_v57 = vld [vmem:[%s9628_s6 + $0x374] ss:$8 sps:$4 sm:$0xff]  }
 0xb2d   :  { %2784 = vmatprep.subr.bf16.mxu1 %v7222_v63 }
 0xb30   :  { %2785 = vmatpush1.bf16.msra.mxu1 %v7220_v3 }
 0xbce   :  { %v2532_v6 = vpop.f32.mrb[22].mxu1 }
 0xbcf   :  { %v2540_v11 = vrot.slane %v2532_v6, %v7872_v23  ;;  %v2534_v12 = vpop.f32.mrb[23].mxu1 }
 0xbd0   :  { %v2544_v15 = vrot.slane %v2534_v12, %v7872_v23 }
 0xbd1   :  { %v2545_v58 = vmul.f32 %v2540_v11, %v8451_v31  ;;  %v2547_v59 = vmul.f32 %v2540_v11, %v8454_v32 }
 0xbd2   :  { %v2546_v7 = vmul.f32 %v2544_v15, %v8457_v33  ;;  %v2548_v30 = vmul.f32 %v2544_v15, %v8460_v34  ;;  %v7223_v33 = vld [vmem:[%s9628_s6 + $0x2a0] ss:$8 sps:$4 sm:$0xff]  }
 0xbd3   :  { %v2561_v14 = vmul.f32 %v2554_v22, %v2545_v58  ;;  %v2563_v19 = vmul.f32 %v2554_v22, %v2547_v59  ;;  %v5934_v59 = vld [vmem:[%s9662_s14 + $0x20] sm:$0xff] }
 0xbd4   :  { %v2562_v21 = vmul.f32 %v2558_v17, %v2546_v7  ;;  %v2564_v10 = vmul.f32 %v2558_v17, %v2548_v30  ;;  %v5935_v7 = vld [vmem:[%s9662_s14 + $0x28] sm:$0xff]  ;;  %v5936_v30 = vld [vmem:[%s9662_s14 + $0x30] sm:$0xff] }
 0xbd5   :  { %v2577_v18 = vadd.f32 %v2570_v1, %v2561_v14  ;;  %v2579_v0 = vadd.f32 %v2570_v1, %v2563_v19  ;;  %v7267_v1 = vld [vmem:[%s9628_s6 + $0x1c4] ss:$8 sps:$4 sm:$0xff]   ;;  %v7265_v14 = vld [vmem:[%s9628_s6 + $0x1c0] ss:$8 sps:$4 sm:$0xff]  }
 0xbd6   :  { %v2578_v29 = vadd.f32 %v2574_v8, %v2562_v21  ;;  %v2580_v13 = vadd.f32 %v2574_v8, %v2564_v10  ;;  %v5937_v8 = vld [vmem:[%s9662_s14 + $0x38] sm:$0xf]  ;;  %v2801_v19 = vld [vmem:[%s9662_s14] sm:$0xff]  ;;  %v7270_v21 = vld [vmem:[%s9628_s6 + $0x1d4] ss:$8 sps:$4 sm:$0xff]  }
 0xbd7   :  { %v2581_v20 = vmax.f32 %v2577_v18, 0.0  ;;  %v2583_v31 = vmax.f32 %v2579_v0, 0.0  ;;  %v7268_v10 = vld [vmem:[%s9628_s6 + $0x1d0] ss:$8 sps:$4 sm:$0xff]   ;;  %v2802_v18 = vld [vmem:[%s9662_s14 + $0x8] sm:$0xff] }
 0xbd8   :  { %v2582_v24 = vmax.f32 %v2578_v29, 0.0  ;;  %v2584_v32 = vmax.f32 %v2580_v13, 0.0  ;;  %v7273_v0 = vld [vmem:[%s9628_s6 + $0x1e4] ss:$8 sps:$4 sm:$0xff]   ;;  %v7271_v29 = vld [vmem:[%s9628_s6 + $0x1e0] ss:$8 sps:$4 sm:$0xff]  }
 0xbd9   :  { %v8667_v34 = vpack.c.bf16 %v2583_v31, %v2581_v20  ;;  %v2803_v13 = vld [vmem:[%s9662_s14 + $0x10] sm:$0xff] }
 0xbda   :  { %v8662_v25 = vpack.c.bf16 %v2584_v32, %v2582_v24  ;;  %v7276_v20 = vld [vmem:[%s9628_s6 + $0x1f4] ss:$8 sps:$4 sm:$0xff]   ;;  %v7274_v31 = vld [vmem:[%s9628_s6 + $0x1f0] ss:$8 sps:$4 sm:$0xff]   ;;  %v7279_v32 = vld [vmem:[%s9628_s6 + $0x204] ss:$8 sps:$4 sm:$0xff]  }
 0xbdb   :  { %v2804_v24 = vld [vmem:[%s9662_s14 + $0x18] sm:$0xf] }
 0xbdc   :  { %5876 = vmatprep.mubr.msk.bf16.mxu1 %vm2194_vm5, %v8662_v25  ;;  %5933 = vmatprep.mubr.msk.bf16.mxu0 %vm2194_vm5, %v8662_v25 }
 0xbdd   :  { %2791 = vmatmul.mubr.bf16.vlgmr.msra.gmra.mrb[24].mxu1 %v8667_v34  ;;  %3007 = vmatmul.mubr.bf16.vlgmr.msra.gmra.mrb[28].mxu0 %v8667_v34 }
 0xbde   :  { %3739 = vmatpush1.bf16.msra.mxu0 %v7223_v33  ;;  %6073 = vmatprep.mubr.msk.bf16.mxu0 %vm2194_vm5, %v8662_v25  ;;  %v7277_v33 = vld [vmem:[%s9628_s6 + $0x200] ss:$8 sps:$4 sm:$0xff]  }
 0xbdf   :  { %3740 = vmatprep.subr.bf16.mxu0 %v7228_v26  ;;  %3105 = vmatprep.mubr.f32.mxu1 %v7408_v27  ;;  %v7282_v26 = vld [vmem:[%s9628_s6 + $0x214] ss:$8 sps:$4 sm:$0xff]  }
 0xbe2   :  { %3741 = vmatpush1.bf16.msra.mxu0 %v7226_v28  ;;  %v7280_v28 = vld [vmem:[%s9628_s6 + $0x210] ss:$8 sps:$4 sm:$0xff]  }
 0xbe3   :  { %3742 = vmatprep.subr.bf16.mxu0 %v7231_v35  ;;  %v7285_v35 = vld [vmem:[%s9628_s6 + $0x224] ss:$8 sps:$4 sm:$0xff]  }
 0xbe6   :  { %3743 = vmatpush1.bf16.msra.mxu0 %v7229_v36  ;;  %v7288_v36 = vld [vmem:[%s9628_s6 + $0x234] ss:$8 sps:$4 sm:$0xff]  }
 0xbe7   :  { %3744 = vmatprep.subr.bf16.mxu0 %v7234_v37  ;;  %v7286_v37 = vld [vmem:[%s9628_s6 + $0x230] ss:$8 sps:$4 sm:$0xff]  }
 0xbea   :  { %3745 = vmatpush1.bf16.msra.mxu0 %v7232_v38  ;;  %v7291_v38 = vld [vmem:[%s9628_s6 + $0x244] ss:$8 sps:$4 sm:$0xff]  }
 0xbeb   :  { %3746 = vmatprep.subr.bf16.mxu0 %v7237_v39  ;;  %v7289_v39 = vld [vmem:[%s9628_s6 + $0x240] ss:$8 sps:$4 sm:$0xff]  }
 0xbee   :  { %3747 = vmatpush1.bf16.msra.mxu0 %v7235_v40 }
 0xbef   :  { %3748 = vmatprep.subr.bf16.mxu0 %v7240_v41  ;;  %v7294_v41 = vld [vmem:[%s9628_s6 + $0x254] ss:$8 sps:$4 sm:$0xff]  }
 0xbf2   :  { %3749 = vmatpush1.bf16.msra.mxu0 %v7238_v42 }
 0xbf3   :  { %3750 = vmatprep.subr.bf16.mxu0 %v7243_v43 }
 0xbf6   :  { %3751 = vmatpush1.bf16.msra.mxu0 %v7241_v44 }
 0xbf7   :  { %3752 = vmatprep.subr.bf16.mxu0 %v7246_v45 }
 0xbfa   :  { %3753 = vmatpush1.bf16.msra.mxu0 %v7244_v46  ;;  %v7292_v46 = vld [vmem:[%s9628_s6 + $0x250] ss:$8 sps:$4 sm:$0xff]  }
 0xbfb   :  { %3754 = vmatprep.subr.bf16.mxu0 %v7249_v47 }
 0xbfe   :  { %3755 = vmatpush1.bf16.msra.mxu0 %v7247_v48  ;;  %v7297_v48 = vld [vmem:[%s9628_s6 + $0x264] ss:$8 sps:$4 sm:$0xff]  }
 0xbff   :  { %3756 = vmatprep.subr.bf16.mxu0 %v7252_v49  ;;  %v7295_v49 = vld [vmem:[%s9628_s6 + $0x260] ss:$8 sps:$4 sm:$0xff]  }
 0xc02   :  { %3757 = vmatpush1.bf16.msra.mxu0 %v7250_v50  ;;  %v7300_v50 = vld [vmem:[%s9628_s6 + $0x274] ss:$8 sps:$4 sm:$0xff]  }
 0xc03   :  { %3758 = vmatprep.subr.bf16.mxu0 %v7255_v51  ;;  %v7298_v51 = vld [vmem:[%s9628_s6 + $0x270] ss:$8 sps:$4 sm:$0xff]  }
 0xc06   :  { %3759 = vmatpush1.bf16.msra.mxu0 %v7253_v52  ;;  %v7303_v52 = vld [vmem:[%s9628_s6 + $0x284] ss:$8 sps:$4 sm:$0xff]  }
 0xc07   :  { %3760 = vmatprep.subr.bf16.mxu0 %v7258_v53  ;;  %v7301_v53 = vld [vmem:[%s9628_s6 + $0x280] ss:$8 sps:$4 sm:$0xff]  }
 0xc0a   :  { %3761 = vmatpush1.bf16.msra.mxu0 %v7256_v54  ;;  %v7306_v54 = vld [vmem:[%s9628_s6 + $0x294] ss:$8 sps:$4 sm:$0xff]  }
 0xc0b   :  { %3762 = vmatprep.subr.bf16.mxu0 %v7261_v55  ;;  %v7304_v55 = vld [vmem:[%s9628_s6 + $0x290] ss:$8 sps:$4 sm:$0xff]  }
 0xc0e   :  { %3763 = vmatpush1.bf16.msra.mxu0 %v7259_v56  ;;  %v3901_v56 = vld [vmem:[%s9639_s17] sm:$0xff] }
 0xc0f   :  { %3764 = vmatprep.subr.bf16.mxu0 %v7264_v57  ;;  %v3902_v57 = vld [vmem:[%s9639_s17 + $0x8] sm:$0xff] }
 0xc12   :  { %3765 = vmatpush1.bf16.msra.mxu0 %v7262_v60  ;;  %v3903_v60 = vld [vmem:[%s9639_s17 + $0x10] sm:$0xff] }
 0xc13   :  { %6739 = vmatprep.subr.bf16.mxu0 %v7409_v16 }
 0xc15   :  { %3771 = vmatmul.mubr.bf16.vlgmr.msra.gmra.mrb[32].mxu0 %v8667_v34 }
 0xcb0   :  { %v2792_v62 = vpop.f32.mrb[24].mxu1  ;;  %v3008_v63 = vpop.f32.mrb[28].mxu0 }
 0xcb1   :  { %v2794_v3 = vpop.f32.mrb[25].mxu1  ;;  %v3010_v4 = vpop.f32.mrb[29].mxu0 }
 0xcb2   :  { %v2796_v5 = vpop.f32.mrb[26].mxu1  ;;  %v3012_v6 = vpop.f32.mrb[30].mxu0 }
 0xcb3   :  { %v6724_v11 = vpack.c.bf16 %v2796_v5, %v2792_v62  ;;  %v6718_v22 = vpack.c.bf16 %v3012_v6, %v3008_v63  ;;  %v2798_v12 = vpop.f32.mrb[27].mxu1  ;;  %v3014_v15 = vpop.f32.mrb[31].mxu0  ;;  %v6740_v62 = vpack.c.bf16 %v3902_v57, %v3901_v56  ;;  %v3904_v63 = vld [vmem:[%s9639_s17 + $0x18] sm:$0xff]  ;;  %v3907_v6 = vld [vmem:[%s9639_s17 + $0x30] sm:$0xff] }
 0xcb4   :  { %v6721_v17 = vpack.c.bf16 %v2798_v12, %v2794_v3  ;;  %v6715_v58 = vpack.c.bf16 %v3014_v15, %v3010_v4  ;;  %v3905_v3 = vld [vmem:[%s9639_s17 + $0x20] sm:$0xff]  ;;  %v3906_v4 = vld [vmem:[%s9639_s17 + $0x28] sm:$0xff] }
 0xcb5   :  { %6741 = vmatpush1.bf16.msra.mxu0 %v6740_v62  ;;  %v6746_v5 = vpack.c.bf16 %v3906_v4, %v3905_v3  ;;  %v3909_v12 = vld [vmem:[%s9639_s17 + $0x40] sm:$0xff]  ;;  %v3910_v15 = vld [vmem:[%s9639_s17 + $0x48] sm:$0xff] }
 0xcb6   :  { %6717 = vmatprep.subr.msk.bf16.mxu1 %vm8760_vm9, %v6715_v58  ;;  %6742 = vmatprep.subr.bf16.mxu0 %v7409_v16  ;;  %v3911_v58 = vld [vmem:[%s9639_s17 + $0x50] sm:$0xff] }
 0xcb7   :  { %6720 = vmatpush1.bf16.msk.msra.mxu1 %vm8760_vm9, %v6718_v22 }
 0xcb8   :  { %6723 = vmatprep.subr.msk.bf16.mxu1 %vm8760_vm9, %v6721_v17  ;;  %v6752_v17 = vpack.c.bf16 %v3910_v15, %v3909_v12 }
 0xcba   :  { %5940 = vmatmul.mubr.msk.f32.vlgmr.msra.gmra.mrb[28].mxu1 %vm3022_vm10, %v5934_v59  ;;  %v3912_v59 = vld [vmem:[%s9639_s17 + $0x58] sm:$0xff] }
 0xcbb   :  { %6726 = vmatpush1.bf16.msk.msra.mxu1 %vm8760_vm9, %v6724_v11  ;;  %3111 = vmatprep.mubr.f32.mxu1 %v7408_v27  ;;  %v3908_v11 = vld [vmem:[%s9639_s17 + $0x38] sm:$0xff] }
 0xcbc   :  { %3406 = vmatprep.subr.bf16.mxu1 %v7267_v1  ;;  %v6749_v22 = vpack.c.bf16 %v3908_v11, %v3907_v6  ;;  %v6755_v1 = vpack.c.bf16 %v3912_v59, %v3911_v58 }
 0xcbe   :  { %5941 = vmatmul.mubr.msk.f32.gmra.mrb[30].mxu1 %vm3022_vm10, %v5935_v7  ;;  %v3913_v7 = vld [vmem:[%s9639_s17 + $0x60] sm:$0xff] }
 0xcbf   :  { %3117 = vmatprep.mubr.f32.mxu1 %v7408_v27 }
 0xcc2   :  { %5942 = vmatmul.mubr.msk.f32.gmra.mrb[32].mxu1 %vm3022_vm10, %v5936_v30  ;;  %v3914_v30 = vld [vmem:[%s9639_s17 + $0x68] sm:$0xff] }
 0xcc3   :  { %3123 = vmatprep.mubr.f32.mxu1 %v7408_v27 }
 0xcc6   :  { %5943 = vmatmul.mubr.msk.f32.gmra.mrb[34].mxu1 %vm3022_vm10, %v5937_v8  ;;  %v6758_v8 = vpack.c.bf16 %v3914_v30, %v3913_v7 }
 0xcc7   :  { %3212 = vmatprep.mubr.f32.mxu1 %v7408_v27 }
 0xcca   :  { %5946 = vmatmul.mubr.msk.f32.vlgmr.msra.gmra.mrb[28].mxu1 %vm3022_vm10, %v2801_v19 }
 0xccb   :  { %3407 = vmatpush1.bf16.msra.mxu1 %v7265_v14  ;;  %3218 = vmatprep.mubr.f32.mxu1 %v7408_v27 }
 0xccc   :  { %3408 = vmatprep.subr.bf16.mxu1 %v7270_v21 }
 0xcce   :  { %5947 = vmatmul.mubr.msk.f32.gmra.mrb[30].mxu1 %vm3022_vm10, %v2802_v18 }
 0xccf   :  { %3409 = vmatpush1.bf16.msra.mxu1 %v7268_v10  ;;  %3224 = vmatprep.mubr.f32.mxu1 %v7408_v27 }
 0xcd0   :  { %3410 = vmatprep.subr.bf16.mxu1 %v7273_v0 }
 0xcd2   :  { %5948 = vmatmul.mubr.msk.f32.gmra.mrb[32].mxu1 %vm3022_vm10, %v2803_v13  ;;  %v6008_v13 = vld [vmem:[%s9662_s14 + $0x48] sm:$0xff] }
 0xcd3   :  { %3411 = vmatpush1.bf16.msra.mxu1 %v7271_v29  ;;  %3230 = vmatprep.mubr.f32.mxu1 %v7408_v27  ;;  %v6007_v29 = vld [vmem:[%s9662_s14 + $0x40] sm:$0xff] }
 0xcd4   :  { %3412 = vmatprep.subr.bf16.mxu1 %v7276_v20  ;;  %v6009_v20 = vld [vmem:[%s9662_s14 + $0x50] sm:$0xff] }
 0xcd6   :  { %5949 = vmatmul.mubr.msk.f32.gmra.mrb[34].mxu1 %vm3022_vm10, %v2804_v24  ;;  %v6075_v24 = vld [vmem:[%s9662_s14 + $0x68] sm:$0xff] }
 0xcd7   :  { %3413 = vmatpush1.bf16.msra.mxu1 %v7274_v31  ;;  %6006 = vmatprep.mubr.msk.bf16.mxu1 %vm2194_vm5, %v8662_v25  ;;  %v7283_v25 = vld [vmem:[%s9628_s6 + $0x220] ss:$8 sps:$4 sm:$0xff]  }
 0xcd8   :  { %3414 = vmatprep.subr.bf16.mxu1 %v7279_v32  ;;  %v6074_v31 = vld [vmem:[%s9662_s14 + $0x60] sm:$0xff]  ;;  %v6076_v32 = vld [vmem:[%s9662_s14 + $0x70] sm:$0xff] }
 0xcdb   :  { %3415 = vmatpush1.bf16.msra.mxu1 %v7277_v33  ;;  %v6077_v33 = vld [vmem:[%s9662_s14 + $0x78] sm:$0xf] }
 0xcdc   :  { %3416 = vmatprep.subr.bf16.mxu1 %v7282_v26  ;;  %v3915_v26 = vld [vmem:[%s9639_s17 + $0x70] sm:$0xff] }
 0xcdf   :  { %3417 = vmatpush1.bf16.msra.mxu1 %v7280_v28  ;;  %v3916_v28 = vld [vmem:[%s9639_s17 + $0x78] sm:$0xff] }
 0xce0   :  { %3418 = vmatprep.subr.bf16.mxu1 %v7285_v35  ;;  %v6761_v35 = vpack.c.bf16 %v3916_v28, %v3915_v26 }
 0xce3   :  { %3419 = vmatpush1.bf16.msra.mxu1 %v7283_v25  ;;  %v3917_v25 = vld [vmem:[%s9639_s17 + $0x80] sm:$0xff] }
 0xce4   :  { %3420 = vmatprep.subr.bf16.mxu1 %v7288_v36  ;;  %v3918_v36 = vld [vmem:[%s9639_s17 + $0x88] sm:$0xff] }
 0xce7   :  { %3421 = vmatpush1.bf16.msra.mxu1 %v7286_v37  ;;  %v6764_v37 = vpack.c.bf16 %v3918_v36, %v3917_v25 }
 0xce8   :  { %v8867_v40 = vpop.f32.mrb[32].mxu0  ;;  %3422 = vmatprep.subr.bf16.mxu1 %v7291_v38  ;;  %v3919_v38 = vld [vmem:[%s9639_s17 + $0x90] sm:$0xff] }
 0xce9   :  { %v8872_v42 = vpop.f32.mrb[33].mxu0 }
 0xcea   :  { %v8874_v43 = vpop.f32.mrb[34].mxu0 }
 0xceb   :  { %v6736_v44 = vpack.c.bf16 %v8874_v43, %v8867_v40  ;;  %3423 = vmatpush1.bf16.msra.mxu1 %v7289_v39  ;;  %v8878_v45 = vpop.f32.mrb[35].mxu0  ;;  %v3920_v39 = vld [vmem:[%s9639_s17 + $0x98] sm:$0xff] }
 0xcec   :  { %v6733_v47 = vpack.c.bf16 %v8878_v45, %v8872_v42  ;;  %3424 = vmatprep.subr.bf16.mxu1 %v7294_v41  ;;  %v6767_v40 = vpack.c.bf16 %v3920_v39, %v3919_v38  ;;  %v3921_v41 = vld [vmem:[%s9639_s17 + $0xa0] sm:$0xff]  ;;  %v3922_v42 = vld [vmem:[%s9639_s17 + $0xa8] sm:$0xff]  ;;  %v3924_v45 = vld [vmem:[%s9639_s17 + $0xb8] sm:$0xff] }
 0xced   :  { %v6770_v43 = vpack.c.bf16 %v3922_v42, %v3921_v41 }
 0xcef   :  { %3425 = vmatpush1.bf16.msra.mxu1 %v7292_v46 }
 0xcf0   :  { %3426 = vmatprep.subr.bf16.mxu1 %v7297_v48  ;;  %v3926_v48 = vld [vmem:[%s9639_s17 + $0xc8] sm:$0xff] }
 0xcf3   :  { %3427 = vmatpush1.bf16.msra.mxu1 %v7295_v49 }
 0xcf4   :  { %3428 = vmatprep.subr.bf16.mxu1 %v7300_v50  ;;  %v3927_v50 = vld [vmem:[%s9639_s17 + $0xd0] sm:$0xff] }
 0xcf7   :  { %3429 = vmatpush1.bf16.msra.mxu1 %v7298_v51  ;;  %v3928_v51 = vld [vmem:[%s9639_s17 + $0xd8] sm:$0xff] }
 0xcf8   :  { %3430 = vmatprep.subr.bf16.mxu1 %v7303_v52  ;;  %v6779_v52 = vpack.c.bf16 %v3928_v51, %v3927_v50 }
 0xcfb   :  { %3431 = vmatpush1.bf16.msra.mxu1 %v7301_v53  ;;  %v3930_v53 = vld [vmem:[%s9640_s18 + $0x8] sm:$0xff] }
 0xcfc   :  { %3432 = vmatprep.subr.bf16.mxu1 %v7306_v54  ;;  %v3932_v54 = vld [vmem:[%s9640_s18 + $0x18] sm:$0xff] }
 0xcff   :  { %3433 = vmatpush1.bf16.msra.mxu1 %v7304_v55  ;;  %v6781_v55 = vpack.c.bf16 %v3932_v54, %v3930_v53 }
 0xd02   :  { %3439 = vmatmul.mubr.bf16.vlgmr.msra.gmra.mrb[36].mxu1 %v8667_v34  ;;  %v6743_v34 = vpack.c.bf16 %v3904_v63, %v3903_v60 }
 0xd03   :  { %3536 = vmatprep.mubr.f32.mxu1 %v7408_v27 }
 0xd04   :  { %6744 = vmatpush1.bf16.msra.mxu0 %v6743_v34 }
 0xd05   :  { %6745 = vmatprep.subr.bf16.mxu0 %v7409_v16 }
 0xd08   :  { %6747 = vmatpush1.bf16.msra.mxu0 %v6746_v5 }
 0xd09   :  { %6748 = vmatprep.subr.bf16.mxu0 %v7409_v16 }
 0xd0c   :  { %6750 = vmatpush1.bf16.msra.mxu0 %v6749_v22 }
 0xd0d   :  { %6751 = vmatprep.subr.bf16.mxu0 %v7409_v16 }
 0xd10   :  { %6753 = vmatpush1.bf16.msra.mxu0 %v6752_v17 }
 0xd11   :  { %6754 = vmatprep.subr.bf16.mxu0 %v7409_v16 }
 0xd14   :  { %6756 = vmatpush1.bf16.msra.mxu0 %v6755_v1 }
 0xd15   :  { %6757 = vmatprep.subr.bf16.mxu0 %v7409_v16 }
 0xd18   :  { %6759 = vmatpush1.bf16.msra.mxu0 %v6758_v8 }
 0xd19   :  { %6760 = vmatprep.subr.bf16.mxu0 %v7409_v16 }
 0xd1c   :  { %6762 = vmatpush1.bf16.msra.mxu0 %v6761_v35 }
 0xd1d   :  { %6763 = vmatprep.subr.bf16.mxu0 %v7409_v16 }
 0xd20   :  { %6765 = vmatpush1.bf16.msra.mxu0 %v6764_v37 }
 0xd21   :  { %6766 = vmatprep.subr.bf16.mxu0 %v7409_v16 }
 0xd24   :  { %6768 = vmatpush1.bf16.msra.mxu0 %v6767_v40 }
 0xd25   :  { %6769 = vmatprep.subr.bf16.mxu0 %v7409_v16 }
 0xd28   :  { %6771 = vmatpush1.bf16.msra.mxu0 %v6770_v43 }
 0xd29   :  { %6772 = vmatprep.subr.bf16.mxu0 %v7409_v16 }
 0xdd5   :  { %v3440_v14 = vpop.f32.mrb[36].mxu1 }
 0xdd6   :  { %v3442_v19 = vpop.f32.mrb[37].mxu1 }
 0xdd7   :  { %v3444_v21 = vpop.f32.mrb[38].mxu1 }
 0xdd8   :  { %v6730_v10 = vpack.c.bf16 %v3444_v21, %v3440_v14  ;;  %v3446_v18 = vpop.f32.mrb[39].mxu1 }
 0xdd9   :  { %v6727_v0 = vpack.c.bf16 %v3446_v18, %v3442_v19 }
 0xddb   :  { %6729 = vmatprep.subr.msk.bf16.mxu1 %vm8760_vm9, %v6727_v0 }
 0xddc   :  { %6732 = vmatpush1.bf16.msk.msra.mxu1 %vm8760_vm9, %v6730_v10 }
 0xddd   :  { %6735 = vmatprep.subr.msk.bf16.mxu1 %vm8760_vm9, %v6733_v47  ;;  %v3925_v47 = vld [vmem:[%s9639_s17 + $0xc0] sm:$0xff] }
 0xdde   :  { %v6776_v49 = vpack.c.bf16 %v3926_v48, %v3925_v47 }
 0xddf   :  { %6013 = vmatmul.mubr.msk.f32.vlgmr.msra.gmra.mrb[28].mxu1 %vm3022_vm10, %v6007_v29 }
 0xde0   :  { %6738 = vmatpush1.bf16.msk.msra.mxu1 %vm8760_vm9, %v6736_v44  ;;  %3542 = vmatprep.mubr.f32.mxu1 %v7408_v27  ;;  %v3923_v44 = vld [vmem:[%s9639_s17 + $0xb0] sm:$0xff] }
 0xde1   :  { %6785 = vmatprep.subr.bf16.mxu1 %v7409_v16  ;;  %v6773_v46 = vpack.c.bf16 %v3924_v45, %v3923_v44 }
 0xde3   :  { %6014 = vmatmul.mubr.msk.f32.gmra.mrb[30].mxu1 %vm3022_vm10, %v6008_v13  ;;  %6774 = vmatpush1.bf16.msra.mxu0 %v6773_v46 }
 0xde4   :  { %3548 = vmatprep.mubr.f32.mxu1 %v7408_v27  ;;  %6775 = vmatprep.subr.bf16.mxu0 %v7409_v16 }
 0xde7   :  { %6015 = vmatmul.mubr.msk.f32.gmra.mrb[32].mxu1 %vm3022_vm10, %v6009_v20  ;;  %6777 = vmatpush1.bf16.msra.mxu0 %v6776_v49 }
 0xde8   :  { %3554 = vmatprep.mubr.f32.mxu1 %v7408_v27  ;;  %6778 = vmatprep.subr.bf16.mxu0 %v7409_v16 }
 0xdeb   :  { %6016 = vmatmul.mubr.msk.f32.gmra.mrb[34].mxu1 %vm3022_vm10, %v6010_v9  ;;  %6780 = vmatpush1.bf16.msra.mxu0 %v6779_v52 }
 0xdec   :  { %3868 = vmatprep.mubr.f32.mxu1 %v7408_v27  ;;  %6782 = vmatprep.subr.bf16.mxu0 %v6781_v55 }
 0xdef   :  { %6080 = vmatmul.mubr.msk.f32.vlgmr.msra.gmra.mrb[28].mxu1 %vm3022_vm10, %v6074_v31  ;;  %v3929_v31 = vld [vmem:[%s9640_s18] sm:$0xff] }
 0xdf0   :  { %3874 = vmatprep.mubr.f32.mxu1 %v7408_v27  ;;  %6787 = vmatpush1.bf16.msra.mxu1 %v6740_v62 }
 0xdf1   :  { %6788 = vmatprep.subr.bf16.mxu1 %v7409_v16 }
 0xdf3   :  { %6081 = vmatmul.mubr.msk.f32.gmra.mrb[30].mxu1 %vm3022_vm10, %v6075_v24  ;;  %v3931_v24 = vld [vmem:[%s9640_s18 + $0x10] sm:$0xff] }
 0xdf4   :  { %3880 = vmatprep.mubr.f32.mxu1 %v7408_v27  ;;  %6790 = vmatpush1.bf16.msra.mxu1 %v6743_v34 }
 0xdf5   :  { %6791 = vmatprep.subr.bf16.mxu1 %v7409_v16 }
 0xdf7   :  { %6082 = vmatmul.mubr.msk.f32.gmra.mrb[32].mxu1 %vm3022_vm10, %v6076_v32  ;;  %v6783_v32 = vpack.c.bf16 %v3931_v24, %v3929_v31 }
 0xdf8   :  { %3886 = vmatprep.mubr.f32.mxu1 %v7408_v27  ;;  %6793 = vmatpush1.bf16.msra.mxu1 %v6746_v5 }
 0xdf9   :  { %6794 = vmatprep.subr.bf16.mxu1 %v7409_v16 }
 0xdfb   :  { %6083 = vmatmul.mubr.msk.f32.gmra.mrb[34].mxu1 %vm3022_vm10, %v6077_v33 }
 0xdfc   :  { %6796 = vmatpush1.bf16.msra.mxu1 %v6749_v22 }
 0xdfd   :  { %6797 = vmatprep.subr.bf16.mxu1 %v7409_v16 }
 0xe00   :  { %6799 = vmatpush1.bf16.msra.mxu1 %v6752_v17 }
 0xe01   :  { %6800 = vmatprep.subr.bf16.mxu1 %v7409_v16 }
 0xe04   :  { %6802 = vmatpush1.bf16.msra.mxu1 %v6755_v1 }
 0xe05   :  { %6803 = vmatprep.subr.bf16.mxu1 %v7409_v16 }
 0xe08   :  { %6805 = vmatpush1.bf16.msra.mxu1 %v6758_v8 }
 0xe09   :  { %6806 = vmatprep.subr.bf16.mxu1 %v7409_v16 }
 0xe0c   :  { %6808 = vmatpush1.bf16.msra.mxu1 %v6761_v35 }
 0xe0d   :  { %6809 = vmatprep.subr.bf16.mxu1 %v7409_v16 }
 0xe10   :  { %6811 = vmatpush1.bf16.msra.mxu1 %v6764_v37 }
 0xe11   :  { %6812 = vmatprep.subr.bf16.mxu1 %v7409_v16 }
 0xe14   :  { %6814 = vmatpush1.bf16.msra.mxu1 %v6767_v40 }
 0xe15   :  { %6815 = vmatprep.subr.bf16.mxu1 %v7409_v16 }
 0xe18   :  { %6817 = vmatpush1.bf16.msra.mxu1 %v6770_v43 }
 0xe19   :  { %6818 = vmatprep.subr.bf16.mxu1 %v7409_v16 }
 0xe1c   :  { %6820 = vmatpush1.bf16.msra.mxu1 %v6773_v46 }
 0xe1d   :  { %6821 = vmatprep.subr.bf16.mxu1 %v7409_v16 }
 0xe20   :  { %6823 = vmatpush1.bf16.msra.mxu1 %v6776_v49 }
 0xe21   :  { %6824 = vmatprep.subr.bf16.mxu1 %v7409_v16 }
 0xe24   :  { %6826 = vmatpush1.bf16.msra.mxu1 %v6779_v52 }
 0xe25   :  { %6828 = vmatprep.subr.bf16.mxu1 %v6781_v55 }
 0xec2   :  { %v3870_v56 = vpop.f32.mrb[28].mxu1 }
 0xec3   :  { %v3872_v57 = vpop.f32.mrb[29].mxu1 }
 0xec4   :  { %v3944_v34 = vsel %vm2194_vm5, %v3872_v57, 0.0 }
 0xec6   :  { %v3876_v60 = vpop.f32.mrb[30].mxu1 }
 0xec7   :  { %v3933_v62 = vadd.f32 %v3876_v60, %v3870_v56  ;;  %v3878_v63 = vpop.f32.mrb[31].mxu1 }
 0xec8   :  { %v3945_v3 = vsel %vm2194_vm5, %v3878_v63, 0.0 }
 0xec9   :  { %v3946_v4 = vadd.f32 %v3945_v3, %v3944_v34 }
 0xeca   :  { %v3882_v5 = vpop.f32.mrb[32].mxu1 }
 0xecb   :  { %v3934_v6 = vadd.f32 %v3933_v62, %v3882_v5  ;;  %v3884_v11 = vpop.f32.mrb[33].mxu1 }
 0xecc   :  { %v3947_v22 = vsel %vm2194_vm5, %v3884_v11, 0.0 }
 0xecd   :  { %v3948_v12 = vadd.f32 %v3947_v22, %v3946_v4 }
 0xece   :  { %v3888_v15 = vpop.f32.mrb[34].mxu1 }
 0xecf   :  { %v3936_v17 = vsel %vm3935_vm11, %v3888_v15, 0.0  ;;  %v3890_v58 = vpop.f32.mrb[35].mxu1 }
 0xed0   :  { %v3937_v59 = vadd.f32 %v3936_v17, %v3934_v6  ;;  %v3950_v1 = vsel %vm3949_vm12, %v3890_v58, 0.0 }
 0xed1   :  { %v3951_v7 = vadd.f32 %v3950_v1, %v3948_v12 }
 0xed2   :  { %v3938_v30 = vrot.slane %v3937_v59, 4 }
 0xed3   :  { %v3952_v8 = vrot.slane %v3951_v7, 4 }
 0xed4   :  { %v3939_v14 = vadd.f32 %v3938_v30, %v3937_v59 }
 0xed5   :  { %v3953_v19 = vadd.f32 %v3952_v8, %v3951_v7 }
 0xed6   :  { %v3940_v21 = vrot.slane %v3939_v14, 2 }
 0xed7   :  { %v3954_v10 = vrot.slane %v3953_v19, 2 }
 0xed8   :  { %v3941_v18 = vadd.f32 %v3940_v21, %v3939_v14  ;;  %v7308_v14 = vld [vmem:[%s9630_s8] sm:$0xff]   ;;  %v7312_v21 = vld [vmem:[%s9630_s8 + $0x10] sm:$0xff]  }
 0xed9   :  { %v3955_v0 = vadd.f32 %v3954_v10, %v3953_v19  ;;  %v7310_v19 = vld [vmem:[%s9630_s8 + $0x8] sm:$0xff]   ;;  %v7314_v10 = vld [vmem:[%s9630_s8 + $0x18] sm:$0xff]  }
 0xeda   :  { %v3942_v29 = vrot.slane %v3941_v18, 1 }
 0xedb   :  { %v3956_v13 = vrot.slane %v3955_v0, 1 }
 0xedc   :  { %v3943_v9 = vadd.f32 %v3942_v29, %v3941_v18  ;;  %v7316_v18 = vld [vmem:[%s9630_s8 + $0x20] sm:$0xff]   ;;  %v7320_v29 = vld [vmem:[%s9630_s8 + $0x30] sm:$0xff]  }
 0xedd   :  { %v3957_v20 = vadd.f32 %v3956_v13, %v3955_v0  ;;  %v7318_v0 = vld [vmem:[%s9630_s8 + $0x28] sm:$0xff]   ;;  %v7322_v13 = vld [vmem:[%s9630_s8 + $0x38] sm:$0xff]  }
 0xedf   :  { %6084 = vmatprep.mubr.msk.f32.mxu0 %vm2194_vm5, %v3957_v20  ;;  %v7324_v20 = vld [vmem:[%s9630_s8 + $0x40] sm:$0xff]  }
 0xee0   :  { %4026 = vmatmul.mubr.f32.vlgmr.msra.gmra.mrb[26].mxu0 %v3943_v9  ;;  %v7326_v9 = vld [vmem:[%s9630_s8 + $0x48] sm:$0xff]  }
 0xee1   :  { %4100 = vmatprep.mubr.f32.mxu0 %v7408_v27  ;;  %6784 = vmatpush1.bf16.msra.mxu0 %v6783_v32 }
 0xee2   :  { %4490 = vmatprep.subr.bf16.mxu0 %v7407_v2 }
 0xfb3   :  { %v4027_v33 = vpop.f32.mrb[26].mxu0 }
 0xfb4   :  { %v4031_v26 = vmul.f32 0.0025510204, %v4027_v33  ;;  %v4029_v28 = vpop.f32.mrb[27].mxu0 }
 0xfb6   :  { %6085 = vmatmul.mubr.msk.f32.vlgmr.msra.gmra.mrb[36].mxu0 %vm4032_vm13, %v4031_v26  ;;  %v7307_v26 = vld [vmem:[%s9630_s8 + $0x70] sm:$0xff]  }
 0xfb7   :  { %4491 = vmatpush1.bf16.msra.mxu0 %v7308_v14 }
 0xfb8   :  { %4492 = vmatprep.subr.bf16.mxu0 %v7407_v2 }
 0xfbb   :  { %4493 = vmatpush1.bf16.msra.mxu0 %v7310_v19 }
 0xfbc   :  { %4494 = vmatprep.subr.bf16.mxu0 %v7407_v2 }
 0xfbf   :  { %4495 = vmatpush1.bf16.msra.mxu0 %v7312_v21 }
 0xfc0   :  { %4496 = vmatprep.subr.bf16.mxu0 %v7407_v2 }
 0xfc3   :  { %4497 = vmatpush1.bf16.msra.mxu0 %v7314_v10 }
 0xfc4   :  { %4498 = vmatprep.subr.bf16.mxu0 %v7407_v2 }
 0xfc7   :  { %4499 = vmatpush1.bf16.msra.mxu0 %v7316_v18 }
 0xfc8   :  { %4500 = vmatprep.subr.bf16.mxu0 %v7407_v2 }
 0xfcb   :  { %4501 = vmatpush1.bf16.msra.mxu0 %v7318_v0 }
 0xfcc   :  { %4502 = vmatprep.subr.bf16.mxu0 %v7407_v2 }
 0xfcf   :  { %4503 = vmatpush1.bf16.msra.mxu0 %v7320_v29 }
 0xfd0   :  { %4504 = vmatprep.subr.bf16.mxu0 %v7407_v2 }
 0xfd3   :  { %4505 = vmatpush1.bf16.msra.mxu0 %v7322_v13 }
 0xfd4   :  { %4506 = vmatprep.subr.bf16.mxu0 %v7407_v2 }
 0xfd7   :  { %4507 = vmatpush1.bf16.msra.mxu0 %v7324_v20 }
 0xfd8   :  { %4508 = vmatprep.subr.bf16.mxu0 %v7407_v2 }
 0xfdb   :  { %4509 = vmatpush1.bf16.msra.mxu0 %v7326_v9 }
 0xfdc   :  { %4510 = vmatprep.subr.bf16.mxu0 %v7407_v2 }
0x1089   :  { %v4102_v35 = vpop.f32.mrb[36].mxu0 }
0x108a   :  { %v4110_v25 = vrot.slane %v4102_v35, %v7872_v23  ;;  %v4104_v36 = vpop.f32.mrb[37].mxu0  ;;  %v7309_v35 = vld [vmem:[%s9630_s8 + $0x78] sm:$0xff]  }
0x108b   :  { %v4114_v37 = vrot.slane %v4104_v36, %v7872_v23  ;;  %v7313_v36 = vld [vmem:[%s9630_s8 + $0x88] sm:$0xff]  }
0x108c   :  { %v9098_v38 = vsub.f32 %v3870_v56, %v4110_v25  ;;  %v9100_v39 = vsub.f32 %v3876_v60, %v4110_v25  ;;  %v9102_v40 = vsub.f32 %v3882_v5, %v4110_v25  ;;  %v9104_v41 = vsub.f32 %v3888_v15, %v4110_v25  ;;  %v7311_v25 = vld [vmem:[%s9630_s8 + $0x80] sm:$0xff]  }
0x108d   :  { %v9106_v42 = vsub.f32 %v3872_v57, %v4114_v37  ;;  %v9108_v43 = vsub.f32 %v3878_v63, %v4114_v37  ;;  %v9110_v44 = vsub.f32 %v3884_v11, %v4114_v37  ;;  %v9112_v45 = vsub.f32 %v3890_v58, %v4114_v37  ;;  %v7315_v37 = vld [vmem:[%s9630_s8 + $0x90] sm:$0xff]  }
0x108e   :  { %v4123_v46 = vmul.f32 %v9098_v38, %v9098_v38  ;;  %v4125_v47 = vmul.f32 %v9100_v39, %v9100_v39  ;;  %v4129_v48 = vmul.f32 %v9104_v41, %v9104_v41  ;;  %v4127_v52 = vmul.f32 %v9102_v40, %v9102_v40 }
0x108f   :  { %v4124_v49 = vmul.f32 %v9106_v42, %v9106_v42  ;;  %v4126_v50 = vmul.f32 %v9108_v43, %v9108_v43  ;;  %v4128_v51 = vmul.f32 %v9110_v44, %v9110_v44  ;;  %v4130_v54 = vmul.f32 %v9112_v45, %v9112_v45 }
0x1090   :  { %v4131_v53 = vadd.f32 %v4125_v47, %v4123_v46  ;;  %v4133_v62 = vsel %vm3935_vm11, %v4129_v48, 0.0  ;;  %v7317_v46 = vld [vmem:[%s9630_s8 + $0x98] sm:$0xff]   ;;  %v7319_v47 = vld [vmem:[%s9630_s8 + $0xa0] sm:$0xff]   ;;  %v7321_v48 = vld [vmem:[%s9630_s8 + $0xa8] sm:$0xff]  }
0x1091   :  { %v4141_v55 = vsel %vm2194_vm5, %v4124_v49, 0.0  ;;  %v4142_v56 = vsel %vm2194_vm5, %v4126_v50, 0.0  ;;  %v4144_v63 = vsel %vm2194_vm5, %v4128_v51, 0.0  ;;  %v4146_v4 = vsel %vm3949_vm12, %v4130_v54, 0.0  ;;  %v7323_v49 = vld [vmem:[%s9630_s8 + $0xb0] sm:$0xff]   ;;  %v7325_v50 = vld [vmem:[%s9630_s8 + $0xb8] sm:$0xff]  }
0x1092   :  { %v4132_v57 = vadd.f32 %v4131_v53, %v4127_v52  ;;  %v4143_v60 = vadd.f32 %v4142_v56, %v4141_v55  ;;  %v7327_v51 = vld [vmem:[%s9630_s8 + $0xc0] sm:$0xff]   ;;  %v7328_v52 = vld [vmem:[%s9630_s8 + $0x50] sm:$0xff]   ;;  %v7329_v53 = vld [vmem:[%s9630_s8 + $0xc8] sm:$0xff]  }
0x1093   :  { %4511 = vmatpush1.bf16.msra.mxu0 %v7328_v52  ;;  %v7330_v54 = vld [vmem:[%s9630_s8 + $0x58] sm:$0xff]   ;;  %v7331_v55 = vld [vmem:[%s9630_s8 + $0xd0] sm:$0xff]   ;;  %v7332_v56 = vld [vmem:[%s9630_s8 + $0x60] sm:$0xff]  }
0x1094   :  { %v4134_v34 = vadd.f32 %v4133_v62, %v4132_v57  ;;  %v4145_v3 = vadd.f32 %v4144_v63, %v4143_v60  ;;  %4512 = vmatprep.subr.bf16.mxu0 %v7407_v2  ;;  %v7333_v57 = vld [vmem:[%s9630_s8 + $0xd8] sm:$0xff]   ;;  %v7334_v60 = vld [vmem:[%s9630_s8 + $0x68] sm:$0xff]   ;;  %v4320_v62 = vld [vmem:[%s9641_s19] sm:$0x3] }
0x1095   :  { %v7343_v52 = vld [vmem:[%s9630_s8 + $0x120] sm:$0xff]  }
0x1096   :  { %v4135_v5 = vrot.slane %v4134_v34, 4  ;;  %v4147_v6 = vadd.f32 %v4146_v4, %v4145_v3  ;;  %v4325_v4 = vrot.slane %v4320_v62, %v7872_v23 }
0x1097   :  { %4513 = vmatpush1.bf16.msra.mxu0 %v7330_v54  ;;  %v7345_v54 = vld [vmem:[%s9630_s8 + $0x130] sm:$0xff]  }
0x1098   :  { %v4136_v11 = vadd.f32 %v4135_v5, %v4134_v34  ;;  %v4148_v22 = vrot.slane %v4147_v6, 4  ;;  %4514 = vmatprep.subr.bf16.mxu0 %v7407_v2  ;;  %v4340_v34 = vld [vmem:[%s9642_s20] sm:$0x3] }
0x109a   :  { %v4149_v12 = vadd.f32 %v4148_v22, %v4147_v6  ;;  %v4137_v15 = vrot.slane %v4136_v11, 2 }
0x109b   :  { %4515 = vmatpush1.bf16.msra.mxu0 %v7332_v56  ;;  %v7347_v56 = vld [vmem:[%s9630_s8 + $0x140] sm:$0xff]  }
0x109c   :  { %v4150_v17 = vrot.slane %v4149_v12, 2  ;;  %v4138_v58 = vadd.f32 %v4137_v15, %v4136_v11  ;;  %4516 = vmatprep.subr.bf16.mxu0 %v7407_v2  ;;  %v4329_v11 = vrot.slane %v4320_v62, %v8084_v61  ;;  %v4349_v15 = vrot.slane %v4340_v34, %v8084_v61  ;;  %v7350_v62 = vld [vmem:[%s9630_s8 + $0x158] sm:$0xff]  }
0x109e   :  { %v4151_v59 = vadd.f32 %v4150_v17, %v4149_v12  ;;  %v4139_v1 = vrot.slane %v4138_v58, 1  ;;  %v4345_v17 = vrot.slane %v4340_v34, %v7872_v23  ;;  %v7352_v34 = vld [vmem:[%s9630_s8 + $0x168] sm:$0xff]  }
0x109f   :  { %4517 = vmatpush1.bf16.msra.mxu0 %v7334_v60  ;;  %v7349_v60 = vld [vmem:[%s9630_s8 + $0x150] sm:$0xff]  }
0x10a0   :  { %v4152_v7 = vrot.slane %v4151_v59, 1  ;;  %v4140_v8 = vadd.f32 %v4139_v1, %v4138_v58  ;;  %6831 = vmatprep.subr.bf16.mxu0 %v7409_v16 }
0x10a2   :  { %v4153_v30 = vadd.f32 %v4152_v7, %v4151_v59 }
0x10a4   :  { %6086 = vmatprep.mubr.msk.f32.mxu1 %vm2194_vm5, %v4153_v30 }
0x10a5   :  { %4222 = vmatmul.mubr.f32.vlgmr.msra.gmra.mrb[40].mxu1 %v4140_v8 }
0x10a6   :  { %6830 = vmatpush1.bf16.msra.mxu1 %v6783_v32  ;;  %4297 = vmatprep.mubr.f32.mxu1 %v7408_v27 }
0x10a7   :  { %4659 = vmatprep.subr.bf16.mxu1 %v7407_v2 }
0x1178   :  { %v4223_v31 = vpop.f32.mrb[40].mxu1 }
0x1179   :  { %v4227_v24 = vmul.f32 0.0025510204, %v4223_v31  ;;  %v4225_v32 = vpop.f32.mrb[41].mxu1 }
0x117b   :  { %v4228_v33 = vadd.f32 1e-05, %v4227_v24  ;;  %v7335_v24 = vld [vmem:[%s9630_s8 + $0xe0] sm:$0xff]  }
0x117d   :  { %7367 = vrsqrt.f32 %v4228_v33 }
0x1187   :  { %v7368_v28 = vpop.eup %7367 }
0x1188   :  { %6087 = vmatmul.mubr.msk.f32.vlgmr.msra.gmra.mrb[42].mxu1 %vm4032_vm13, %v7368_v28 }
0x1189   :  { %4660 = vmatpush1.bf16.msra.mxu1 %v7307_v26 }
0x118a   :  { %4661 = vmatprep.subr.bf16.mxu1 %v7407_v2 }
0x118d   :  { %4662 = vmatpush1.bf16.msra.mxu1 %v7309_v35  ;;  %v7336_v35 = vld [vmem:[%s9630_s8 + $0xe8] sm:$0xff]  }
0x118e   :  { %4663 = vmatprep.subr.bf16.mxu1 %v7407_v2 }
0x1191   :  { %4664 = vmatpush1.bf16.msra.mxu1 %v7311_v25 }
0x1192   :  { %4665 = vmatprep.subr.bf16.mxu1 %v7407_v2 }
0x1195   :  { %4666 = vmatpush1.bf16.msra.mxu1 %v7313_v36 }
0x1196   :  { %4667 = vmatprep.subr.bf16.mxu1 %v7407_v2 }
0x1199   :  { %4668 = vmatpush1.bf16.msra.mxu1 %v7315_v37  ;;  %v7337_v37 = vld [vmem:[%s9630_s8 + $0xf0] sm:$0xff]  }
0x119a   :  { %4669 = vmatprep.subr.bf16.mxu1 %v7407_v2 }
0x119d   :  { %4670 = vmatpush1.bf16.msra.mxu1 %v7317_v46 }
0x119e   :  { %4671 = vmatprep.subr.bf16.mxu1 %v7407_v2 }
0x11a1   :  { %4672 = vmatpush1.bf16.msra.mxu1 %v7319_v47  ;;  %v7338_v47 = vld [vmem:[%s9630_s8 + $0xf8] sm:$0xff]  }
0x11a2   :  { %4673 = vmatprep.subr.bf16.mxu1 %v7407_v2 }
0x11a5   :  { %4674 = vmatpush1.bf16.msra.mxu1 %v7321_v48  ;;  %v7339_v48 = vld [vmem:[%s9630_s8 + $0x100] sm:$0xff]  }
0x11a6   :  { %4675 = vmatprep.subr.bf16.mxu1 %v7407_v2 }
0x11a9   :  { %4676 = vmatpush1.bf16.msra.mxu1 %v7323_v49  ;;  %v7340_v49 = vld [vmem:[%s9630_s8 + $0x108] sm:$0xff]  }
0x11aa   :  { %4677 = vmatprep.subr.bf16.mxu1 %v7407_v2 }
0x11ad   :  { %4678 = vmatpush1.bf16.msra.mxu1 %v7325_v50  ;;  %v7341_v50 = vld [vmem:[%s9630_s8 + $0x110] sm:$0xff]  }
0x11ae   :  { %4679 = vmatprep.subr.bf16.mxu1 %v7407_v2 }
0x11b1   :  { %4680 = vmatpush1.bf16.msra.mxu1 %v7327_v51  ;;  %v7342_v51 = vld [vmem:[%s9630_s8 + $0x118] sm:$0xff]  }
0x11b2   :  { %4681 = vmatprep.subr.bf16.mxu1 %v7407_v2 }
0x11b5   :  { %4682 = vmatpush1.bf16.msra.mxu1 %v7329_v53  ;;  %v7344_v53 = vld [vmem:[%s9630_s8 + $0x128] sm:$0xff]  }
0x11b6   :  { %4683 = vmatprep.subr.bf16.mxu1 %v7407_v2 }
0x11b9   :  { %4684 = vmatpush1.bf16.msra.mxu1 %v7331_v55  ;;  %v7346_v55 = vld [vmem:[%s9630_s8 + $0x138] sm:$0xff]  }
0x11ba   :  { %4685 = vmatprep.subr.bf16.mxu1 %v7407_v2 }
0x11bd   :  { %4686 = vmatpush1.bf16.msra.mxu1 %v7333_v57  ;;  %v7348_v57 = vld [vmem:[%s9630_s8 + $0x148] sm:$0xff]  }
0x11be   :  { %5078 = vmatprep.subr.bf16.mxu1 %v7407_v2 }
0x125b   :  { %v4299_v63 = vpop.f32.mrb[42].mxu1 }
0x125c   :  { %v4307_v3 = vrot.slane %v4299_v63, %v7872_v23  ;;  %v4301_v5 = vpop.f32.mrb[43].mxu1  ;;  %v7351_v63 = vld [vmem:[%s9630_s8 + $0x160] sm:$0xff]  }
0x125d   :  { %v4311_v6 = vrot.slane %v4301_v5, %v7872_v23  ;;  %v7355_v5 = vld [vmem:[%s9630_s8 + $0x180] sm:$0xff]  }
0x125e   :  { %v4312_v22 = vmul.f32 %v4307_v3, %v9098_v38  ;;  %v4314_v12 = vmul.f32 %v4307_v3, %v9100_v39  ;;  %v4316_v30 = vmul.f32 %v4307_v3, %v9102_v40  ;;  %v4318_v8 = vmul.f32 %v4307_v3, %v9104_v41  ;;  %v7353_v3 = vld [vmem:[%s9630_s8 + $0x170] sm:$0xff]  }
0x125f   :  { %v4313_v58 = vmul.f32 %v4311_v6, %v9106_v42  ;;  %v4315_v59 = vmul.f32 %v4311_v6, %v9108_v43  ;;  %v4317_v1 = vmul.f32 %v4311_v6, %v9110_v44  ;;  %v4319_v7 = vmul.f32 %v4311_v6, %v9112_v45  ;;  %v7356_v6 = vld [vmem:[%s9630_s8 + $0x188] sm:$0xff]  }
0x1260   :  { %v4332_v14 = vmul.f32 %v4325_v4, %v4312_v22  ;;  %v4334_v38 = vmul.f32 %v4325_v4, %v4314_v12  ;;  %v4336_v29 = vmul.f32 %v4325_v4, %v4316_v30  ;;  %v4338_v44 = vmul.f32 %v4325_v4, %v4318_v8  ;;  %v7354_v4 = vld [vmem:[%s9630_s8 + $0x178] sm:$0xff]   ;;  %v7359_v12 = vld [vmem:[%s9630_s8 + $0x1a0] sm:$0xff]  }
0x1261   :  { %v4333_v19 = vmul.f32 %v4329_v11, %v4313_v58  ;;  %v4335_v39 = vmul.f32 %v4329_v11, %v4315_v59  ;;  %v4337_v21 = vmul.f32 %v4329_v11, %v4317_v1  ;;  %v4339_v61 = vmul.f32 %v4329_v11, %v4319_v7  ;;  %v7357_v11 = vld [vmem:[%s9630_s8 + $0x190] sm:$0xff]   ;;  %v7358_v22 = vld [vmem:[%s9630_s8 + $0x198] sm:$0xff]  }
0x1262   :  { %v4352_v10 = vadd.f32 %v4345_v17, %v4332_v14  ;;  %v4354_v23 = vadd.f32 %v4345_v17, %v4334_v38  ;;  %v4356_v33 = vadd.f32 %v4345_v17, %v4336_v29  ;;  %v4358_v26 = vadd.f32 %v4345_v17, %v4338_v44  ;;  %v7361_v17 = vld [vmem:[%s9630_s8 + $0x1b0] sm:$0xff]   ;;  %v7362_v58 = vld [vmem:[%s9630_s8 + $0x1b8] sm:$0xff]  }
0x1263   :  { %v4353_v18 = vadd.f32 %v4349_v15, %v4333_v19  ;;  %v4355_v42 = vadd.f32 %v4349_v15, %v4335_v39  ;;  %v4357_v0 = vadd.f32 %v4349_v15, %v4337_v21  ;;  %v4359_v43 = vadd.f32 %v4349_v15, %v4339_v61  ;;  %v7360_v15 = vld [vmem:[%s9630_s8 + $0x1a8] sm:$0xff]  }
0x1264   :  { %v4360_v13 = vmax.f32 %v4352_v10, 0.0  ;;  %v4362_v45 = vmax.f32 %v4354_v23, 0.0  ;;  %v4364_v25 = vmax.f32 %v4356_v33, 0.0  ;;  %v4366_v36 = vmax.f32 %v4358_v26, 0.0  ;;  %v4540_v33 = vld [vmem:[%s9629_s7 + $0x8] sm:$0xff]  ;;  %v4541_v26 = vld [vmem:[%s9629_s7 + $0x10] sm:$0xff] }
0x1265   :  { %v4361_v20 = vmax.f32 %v4353_v18, 0.0  ;;  %v4363_v40 = vmax.f32 %v4355_v42, 0.0  ;;  %v4365_v9 = vmax.f32 %v4357_v0, 0.0  ;;  %v4367_v41 = vmax.f32 %v4359_v43, 0.0 }
0x1266   :  { %v9276_v32 = vpack.c.bf16 %v4362_v45, %v4360_v13  ;;  %v9298_v46 = vpack.c.bf16 %v4366_v36, %v4364_v25  ;;  %v6148_v45 = vld [vmem:[%s9629_s7 + $0x38] sm:$0xff]  ;;  %v4543_v36 = vld [vmem:[%s9629_s7 + $0x20] sm:$0xff] }
0x1267   :  { %v9271_v31 = vpack.c.bf16 %v4363_v40, %v4361_v20  ;;  %v9282_v28 = vpack.c.bf16 %v4367_v41, %v4365_v9  ;;  %v6149_v20 = vld [vmem:[%s9629_s7 + $0x40] sm:$0xff]  ;;  %v6150_v40 = vld [vmem:[%s9629_s7 + $0x48] sm:$0xff]  ;;  %v6151_v9 = vld [vmem:[%s9629_s7 + $0x50] sm:$0xff] }
0x1268   :  { %v6152_v41 = vld [vmem:[%s9629_s7 + $0x58] sm:$0xff] }
0x1269   :  { %6102 = vmatprep.mubr.msk.bf16.mxu0 %vm2194_vm5, %v9271_v31  ;;  %6146 = vmatprep.mubr.msk.bf16.mxu1 %vm2194_vm5, %v9271_v31 }
0x126a   :  { %4523 = vmatmul.mubr.bf16.vlgmr.msra.gmra.mrb[40].mxu0 %v9276_v32  ;;  %4692 = vmatmul.mubr.bf16.vlgmr.msra.gmra.mrb[44].mxu1 %v9276_v32 }
0x126b   :  { %5079 = vmatpush1.bf16.msra.mxu1 %v7335_v24  ;;  %6103 = vmatprep.mubr.msk.bf16.mxu0 %vm2194_vm5, %v9282_v28  ;;  %v6154_v24 = vld [vmem:[%s9629_s7 + $0x68] sm:$0xff] }
0x126c   :  { %6147 = vmatprep.mubr.msk.bf16.mxu1 %vm2194_vm5, %v9282_v28  ;;  %5080 = vmatprep.subr.bf16.mxu1 %v7407_v2 }
0x126f   :  { %5081 = vmatpush1.bf16.msra.mxu1 %v7336_v35 }
0x1270   :  { %5082 = vmatprep.subr.bf16.mxu1 %v7407_v2 }
0x1272   :  { %4531 = vmatmul.mubr.bf16.gmra.mrb[44].mxu0 %v9298_v46  ;;  %4700 = vmatmul.mubr.bf16.gmra.mrb[48].mxu1 %v9298_v46 }
0x1273   :  { %5083 = vmatpush1.bf16.msra.mxu1 %v7337_v37  ;;  %6213 = vmatprep.mubr.msk.bf16.mxu1 %vm2194_vm5, %v9271_v31 }
0x1274   :  { %5084 = vmatprep.subr.bf16.mxu1 %v7407_v2  ;;  %6411 = vmatprep.mubr.msk.f32.mxu0 %vm7411_vm14, %v7408_v27 }
0x1277   :  { %5085 = vmatpush1.bf16.msra.mxu1 %v7338_v47 }
0x1278   :  { %5086 = vmatprep.subr.bf16.mxu1 %v7407_v2 }
0x127b   :  { %5087 = vmatpush1.bf16.msra.mxu1 %v7339_v48  ;;  %v4544_v48 = vld [vmem:[%s9629_s7 + $0x28] sm:$0xff] }
0x127c   :  { %5088 = vmatprep.subr.bf16.mxu1 %v7407_v2 }
0x127f   :  { %5089 = vmatpush1.bf16.msra.mxu1 %v7340_v49 }
0x1280   :  { %5090 = vmatprep.subr.bf16.mxu1 %v7407_v2 }
0x1283   :  { %5091 = vmatpush1.bf16.msra.mxu1 %v7341_v50 }
0x1284   :  { %5092 = vmatprep.subr.bf16.mxu1 %v7407_v2 }
0x1287   :  { %5093 = vmatpush1.bf16.msra.mxu1 %v7342_v51  ;;  %v4545_v51 = vld [vmem:[%s9629_s7 + $0x30] sm:$0xff] }
0x1288   :  { %5094 = vmatprep.subr.bf16.mxu1 %v7407_v2 }
0x128b   :  { %5095 = vmatpush1.bf16.msra.mxu1 %v7343_v52 }
0x128c   :  { %5096 = vmatprep.subr.bf16.mxu1 %v7407_v2 }
0x128f   :  { %5097 = vmatpush1.bf16.msra.mxu1 %v7344_v53 }
0x1290   :  { %5098 = vmatprep.subr.bf16.mxu1 %v7407_v2 }
0x1293   :  { %5099 = vmatpush1.bf16.msra.mxu1 %v7345_v54 }
0x1294   :  { %5100 = vmatprep.subr.bf16.mxu1 %v7407_v2 }
0x1297   :  { %5101 = vmatpush1.bf16.msra.mxu1 %v7346_v55  ;;  %v6215_v55 = vld [vmem:[%s9629_s7 + $0x70] sm:$0xff] }
0x1298   :  { %5102 = vmatprep.subr.bf16.mxu1 %v7407_v2 }
0x129b   :  { %5103 = vmatpush1.bf16.msra.mxu1 %v7347_v56  ;;  %v6216_v56 = vld [vmem:[%s9629_s7 + $0x78] sm:$0xff] }
0x129c   :  { %5104 = vmatprep.subr.bf16.mxu1 %v7407_v2 }
0x129f   :  { %5105 = vmatpush1.bf16.msra.mxu1 %v7348_v57  ;;  %v6217_v57 = vld [vmem:[%s9629_s7 + $0x80] sm:$0xff] }
0x12a0   :  { %5379 = vmatprep.subr.bf16.mxu1 %v7407_v2 }
0x12a2   :  { %5111 = vmatmul.mubr.bf16.vlgmr.msra.gmra.mrb[52].mxu1 %v9276_v32 }
0x12a3   :  { %6214 = vmatprep.mubr.msk.bf16.mxu1 %vm2194_vm5, %v9282_v28  ;;  %5380 = vmatpush1.bf16.msra.mxu1 %v7349_v60  ;;  %v6218_v60 = vld [vmem:[%s9629_s7 + $0x88] sm:$0xff] }
0x12a4   :  { %5381 = vmatprep.subr.bf16.mxu1 %v7407_v2 }
0x12a7   :  { %5382 = vmatpush1.bf16.msra.mxu1 %v7350_v62  ;;  %v6219_v62 = vld [vmem:[%s9629_s7 + $0x90] sm:$0xff] }
0x12a8   :  { %5383 = vmatprep.subr.bf16.mxu1 %v7407_v2 }
0x12aa   :  { %5119 = vmatmul.mubr.bf16.gmra.mrb[56].mxu1 %v9298_v46 }
0x12ab   :  { %5384 = vmatpush1.bf16.msra.mxu1 %v7351_v63  ;;  %6272 = vmatprep.mubr.msk.bf16.mxu1 %vm2194_vm5, %v9271_v31  ;;  %v6153_v31 = vld [vmem:[%s9629_s7 + $0x60] sm:$0xff]  ;;  %v6220_v63 = vld [vmem:[%s9629_s7 + $0x98] sm:$0xff] }
0x12ac   :  { %5385 = vmatprep.subr.bf16.mxu1 %v7407_v2 }
0x12af   :  { %5386 = vmatpush1.bf16.msra.mxu1 %v7352_v34  ;;  %v6221_v34 = vld [vmem:[%s9629_s7 + $0xa0] sm:$0xff] }
0x12b0   :  { %5387 = vmatprep.subr.bf16.mxu1 %v7407_v2 }
0x12b3   :  { %5388 = vmatpush1.bf16.msra.mxu1 %v7353_v3 }
0x12b4   :  { %5389 = vmatprep.subr.bf16.mxu1 %v7407_v2 }
0x12b7   :  { %5390 = vmatpush1.bf16.msra.mxu1 %v7354_v4 }
0x12b8   :  { %5391 = vmatprep.subr.bf16.mxu1 %v7407_v2 }
0x12bb   :  { %5392 = vmatpush1.bf16.msra.mxu1 %v7355_v5 }
0x12bc   :  { %5393 = vmatprep.subr.bf16.mxu1 %v7407_v2 }
0x12bf   :  { %5394 = vmatpush1.bf16.msra.mxu1 %v7356_v6 }
0x12c0   :  { %5395 = vmatprep.subr.bf16.mxu1 %v7407_v2 }
0x12c3   :  { %5396 = vmatpush1.bf16.msra.mxu1 %v7357_v11 }
0x12c4   :  { %5397 = vmatprep.subr.bf16.mxu1 %v7407_v2 }
0x12c7   :  { %5398 = vmatpush1.bf16.msra.mxu1 %v7358_v22 }
0x12c8   :  { %5399 = vmatprep.subr.bf16.mxu1 %v7407_v2 }
0x12cb   :  { %5400 = vmatpush1.bf16.msra.mxu1 %v7359_v12 }
0x12cc   :  { %5401 = vmatprep.subr.bf16.mxu1 %v7407_v2 }
0x12cf   :  { %5402 = vmatpush1.bf16.msra.mxu1 %v7360_v15 }
0x12d0   :  { %5403 = vmatprep.subr.bf16.mxu1 %v7407_v2 }
0x12d3   :  { %5404 = vmatpush1.bf16.msra.mxu1 %v7361_v17 }
0x12d4   :  { %5405 = vmatprep.subr.bf16.mxu1 %v7407_v2 }
0x12d7   :  { %5406 = vmatpush1.bf16.msra.mxu1 %v7362_v58 }
0x12da   :  { %5412 = vmatmul.mubr.bf16.vlgmr.msra.gmra.mrb[60].mxu1 %v9276_v32  ;;  %v4539_v32 = vld [vmem:[%s9629_s7] sm:$0xff] }
0x12db   :  { %6273 = vmatprep.mubr.msk.bf16.mxu1 %vm2194_vm5, %v9282_v28  ;;  %v4542_v28 = vld [vmem:[%s9629_s7 + $0x18] sm:$0xff] }
0x12e2   :  { %5420 = vmatmul.mubr.bf16.gmra.mrb[64].mxu1 %v9298_v46 }
0x133d   :  { %v4524_v59 = vpop.f32.mrb[40].mxu0  ;;  %v4693_v1 = vpop.f32.mrb[44].mxu1 }
0x133e   :  { %v4526_v7 = vpop.f32.mrb[41].mxu0  ;;  %v4695_v30 = vpop.f32.mrb[45].mxu1 }
0x133f   :  { %v4527_v8 = vpop.f32.mrb[42].mxu0  ;;  %v4696_v14 = vpop.f32.mrb[46].mxu1  ;;  %v6277_v7 = vld [vmem:[%s9629_s7 + $0xc0] sm:$0xff]  ;;  %v6278_v30 = vld [vmem:[%s9629_s7 + $0xc8] sm:$0xff] }
0x1340   :  { %v6839_v38 = vpack.c.bf16 %v4527_v8, %v4524_v59  ;;  %v6832_v19 = vpack.c.bf16 %v4696_v14, %v4693_v1  ;;  %v4529_v39 = vpop.f32.mrb[43].mxu0  ;;  %v4698_v21 = vpop.f32.mrb[47].mxu1  ;;  %v6274_v59 = vld [vmem:[%s9629_s7 + $0xa8] sm:$0xff]  ;;  %v6276_v1 = vld [vmem:[%s9629_s7 + $0xb8] sm:$0xff]  ;;  %v6279_v8 = vld [vmem:[%s9629_s7 + $0xd0] sm:$0xff] }
0x1341   :  { %v6280_v14 = vld [vmem:[%s9629_s7 + $0xd8] sm:$0xff] }
0x1342   :  { %6833 = vmatpush3.bf16.msra.mxu0 %v6832_v19 }
0x1343   :  { %6834 = vmatprep.subr.bf16.mxu0 %v7409_v16 }
0x1345   :  { %v4532_v2 = vpop.f32.mrb[44].mxu0  ;;  %v4701_v61 = vpop.f32.mrb[48].mxu1 }
0x1346   :  { %v4534_v10 = vpop.f32.mrb[45].mxu0  ;;  %v4703_v23 = vpop.f32.mrb[49].mxu1 }
0x1347   :  { %v4535_v18 = vpop.f32.mrb[46].mxu0  ;;  %v4704_v42 = vpop.f32.mrb[50].mxu1 }
0x1348   :  { %v6842_v43 = vpack.c.bf16 %v4535_v18, %v4532_v2  ;;  %v6835_v29 = vpack.c.bf16 %v4704_v42, %v4701_v61  ;;  %v4537_v44 = vpop.f32.mrb[47].mxu0  ;;  %v4706_v13 = vpop.f32.mrb[51].mxu1 }
0x134a   :  { %6837 = vmatpush3.bf16.msk.msra.mxu0 %vm9419_vm15, %v6835_v29 }
0x134b   :  { %6838 = vmatprep.subr.bf16.mxu0 %v7409_v16 }
0x134d   :  { %6412 = vmatmul.mubr.msk.f32.vlgmr.msra.gmra.mrb[38].mxu0 %vm4716_vm0, %v6148_v45 }
0x134e   :  { %6840 = vmatpush3.bf16.msra.mxu0 %v6839_v38  ;;  %6414 = vmatprep.mubr.msk.f32.mxu0 %vm7411_vm14, %v7408_v27 }
0x134f   :  { %6841 = vmatprep.subr.bf16.mxu0 %v7409_v16 }
0x1351   :  { %6415 = vmatmul.mubr.msk.f32.gmra.mrb[48].mxu0 %vm4716_vm0, %v6149_v20 }
0x1352   :  { %6844 = vmatpush3.bf16.msk.msra.mxu0 %vm9419_vm15, %v6842_v43  ;;  %6417 = vmatprep.mubr.msk.f32.mxu0 %vm7411_vm14, %v7408_v27 }
0x1353   :  { %6845 = vmatprep.subr.bf16.mxu0 %v7409_v16 }
0x1355   :  { %6418 = vmatmul.mubr.msk.f32.gmra.mrb[50].mxu0 %vm4716_vm0, %v6150_v40 }
0x1356   :  { %6420 = vmatprep.mubr.msk.f32.mxu0 %vm7411_vm14, %v7408_v27 }
0x1359   :  { %6421 = vmatmul.mubr.msk.f32.gmra.mrb[52].mxu0 %vm4716_vm0, %v6151_v9 }
0x135a   :  { %6423 = vmatprep.mubr.msk.f32.mxu0 %vm7411_vm14, %v7408_v27 }
0x135d   :  { %6424 = vmatmul.mubr.msk.f32.gmra.mrb[54].mxu0 %vm4716_vm0, %v6152_v41 }
0x135e   :  { %6426 = vmatprep.mubr.msk.f32.mxu0 %vm7411_vm14, %v7408_v27 }
0x1361   :  { %6427 = vmatmul.mubr.msk.f32.gmra.mrb[56].mxu0 %vm4716_vm0, %v6153_v31 }
0x1362   :  { %6429 = vmatprep.mubr.msk.f32.mxu0 %vm7411_vm14, %v7408_v27 }
0x1365   :  { %6430 = vmatmul.mubr.msk.f32.gmra.mrb[58].mxu0 %vm4716_vm0, %v6154_v24 }
0x1366   :  { %6440 = vmatprep.mubr.msk.f32.mxu0 %vm7411_vm14, %v7408_v27 }
0x1369   :  { %6441 = vmatmul.mubr.msk.f32.vlgmr.msra.gmra.mrb[38].mxu0 %vm4716_vm0, %v4539_v32 }
0x136a   :  { %6443 = vmatprep.mubr.msk.f32.mxu0 %vm7411_vm14, %v7408_v27 }
0x136d   :  { %6444 = vmatmul.mubr.msk.f32.gmra.mrb[48].mxu0 %vm4716_vm0, %v4540_v33 }
0x136e   :  { %6446 = vmatprep.mubr.msk.f32.mxu0 %vm7411_vm14, %v7408_v27 }
0x1371   :  { %6447 = vmatmul.mubr.msk.f32.gmra.mrb[50].mxu0 %vm4716_vm0, %v4541_v26 }
0x1372   :  { %6449 = vmatprep.mubr.msk.f32.mxu0 %vm7411_vm14, %v7408_v27 }
0x1375   :  { %v5112_v35 = vpop.f32.mrb[52].mxu1  ;;  %6450 = vmatmul.mubr.msk.f32.gmra.mrb[52].mxu0 %vm4716_vm0, %v4542_v28 }
0x1376   :  { %v5114_v25 = vpop.f32.mrb[53].mxu1  ;;  %6452 = vmatprep.mubr.msk.f32.mxu0 %vm7411_vm14, %v7408_v27 }
0x1377   :  { %v5115_v37 = vpop.f32.mrb[54].mxu1 }
0x1378   :  { %v6846_v46 = vpack.c.bf16 %v5115_v37, %v5112_v35  ;;  %v5117_v47 = vpop.f32.mrb[55].mxu1 }
0x1379   :  { %6453 = vmatmul.mubr.msk.f32.gmra.mrb[54].mxu0 %vm4716_vm0, %v4543_v36 }
0x137a   :  { %6847 = vmatpush3.bf16.msra.mxu0 %v6846_v46  ;;  %6455 = vmatprep.mubr.msk.f32.mxu0 %vm7411_vm14, %v7408_v27 }
0x137b   :  { %6848 = vmatprep.subr.bf16.mxu0 %v7409_v16 }
0x137d   :  { %v5120_v49 = vpop.f32.mrb[56].mxu1  ;;  %6456 = vmatmul.mubr.msk.f32.gmra.mrb[56].mxu0 %vm4716_vm0, %v4544_v48 }
0x137e   :  { %v5122_v50 = vpop.f32.mrb[57].mxu1  ;;  %6458 = vmatprep.mubr.msk.f32.mxu0 %vm7411_vm14, %v7408_v27 }
0x137f   :  { %v5123_v52 = vpop.f32.mrb[58].mxu1 }
0x1380   :  { %v6849_v53 = vpack.c.bf16 %v5123_v52, %v5120_v49  ;;  %v5125_v54 = vpop.f32.mrb[59].mxu1 }
0x1381   :  { %6459 = vmatmul.mubr.msk.f32.gmra.mrb[58].mxu0 %vm4716_vm0, %v4545_v51 }
0x1382   :  { %6851 = vmatpush3.bf16.msk.msra.mxu0 %vm9419_vm15, %v6849_v53  ;;  %6469 = vmatprep.mubr.msk.f32.mxu0 %vm7411_vm14, %v7408_v27 }
0x1383   :  { %6852 = vmatprep.subr.bf16.mxu0 %v7409_v16 }
0x1385   :  { %6470 = vmatmul.mubr.msk.f32.vlgmr.msra.gmra.mrb[38].mxu0 %vm4716_vm0, %v6215_v55 }
0x1386   :  { %6472 = vmatprep.mubr.msk.f32.mxu0 %vm7411_vm14, %v7408_v27 }
0x1389   :  { %6473 = vmatmul.mubr.msk.f32.gmra.mrb[48].mxu0 %vm4716_vm0, %v6216_v56 }
0x138a   :  { %6475 = vmatprep.mubr.msk.f32.mxu0 %vm7411_vm14, %v7408_v27 }
0x138d   :  { %6476 = vmatmul.mubr.msk.f32.gmra.mrb[50].mxu0 %vm4716_vm0, %v6217_v57 }
0x138e   :  { %6478 = vmatprep.mubr.msk.f32.mxu0 %vm7411_vm14, %v7408_v27 }
0x1391   :  { %6479 = vmatmul.mubr.msk.f32.gmra.mrb[52].mxu0 %vm4716_vm0, %v6218_v60 }
0x1392   :  { %6481 = vmatprep.mubr.msk.f32.mxu0 %vm7411_vm14, %v7408_v27 }
0x1395   :  { %6482 = vmatmul.mubr.msk.f32.gmra.mrb[54].mxu0 %vm4716_vm0, %v6219_v62 }
0x1396   :  { %6484 = vmatprep.mubr.msk.f32.mxu0 %vm7411_vm14, %v7408_v27 }
0x1399   :  { %6485 = vmatmul.mubr.msk.f32.gmra.mrb[56].mxu0 %vm4716_vm0, %v6220_v63 }
0x139a   :  { %6487 = vmatprep.mubr.msk.f32.mxu0 %vm7411_vm14, %v7408_v27 }
0x139d   :  { %6488 = vmatmul.mubr.msk.f32.gmra.mrb[58].mxu0 %vm4716_vm0, %v6221_v34 }
0x139e   :  { %6498 = vmatprep.mubr.msk.f32.mxu0 %vm7411_vm14, %v7408_v27 }
0x13ad   :  { %v5413_v3 = vpop.f32.mrb[60].mxu1 }
0x13ae   :  { %v5415_v4 = vpop.f32.mrb[61].mxu1 }
0x13af   :  { %v5416_v5 = vpop.f32.mrb[62].mxu1 }
0x13b0   :  { %v6853_v6 = vpack.c.bf16 %v5416_v5, %v5413_v3  ;;  %v5418_v11 = vpop.f32.mrb[63].mxu1 }
0x13b2   :  { %6854 = vmatpush3.bf16.msra.mxu0 %v6853_v6 }
0x13b3   :  { %6855 = vmatprep.subr.bf16.mxu0 %v7409_v16  ;;  %v6275_v16 = vld [vmem:[%s9629_s7 + $0xb0] sm:$0xff]  ;;  %s7412_s7 = smov [#allocation2]  }
0x13b4   :  { %s5586_s2 = sshll.u32 %s7412_s7, 4  ;;  %s5587_s2 = int_to_ptr.vmem [resolvable:$true] %s5586_s2 }
0x13b5   :  { %v5421_v22 = vpop.f32.mrb[64].mxu1  ;;  %s7383_s1 = scalar_lea.vmem %s5587_s2, 896  ;;  %p7388_p1 = scmp.lt.s32.totalorder %s5587_s2, %s5587_s2 }
0x13b6   :  { %v5423_v12 = vpop.f32.mrb[65].mxu1  ;;  %p7384_p0 = scmp.ne.s32.totalorder %s5587_s2, %s7383_s1  ;;  %p7389_p2 = scmp.lt.s32.totalorder %s7383_s1, %s7383_s1 }
0x13b7   :  { %v5424_v15 = vpop.f32.mrb[66].mxu1 }
0x13b8   :  { %v6856_v17 = vpack.c.bf16 %v5424_v15, %v5421_v22  ;;  %v5426_v58 = vpop.f32.mrb[67].mxu1  ;;  %p7390_p3 = por %p7389_p2, %p7388_p1 }
0x13ba   :  { %6858 = vmatpush3.bf16.msk.msra.mxu0 %vm9419_vm15, %v6856_v17  ;;  %p7391_p4 = pnand %p7390_p3, %p7384_p0 }
0x13bd   :  { %6499 = vmatmul.mubr.msk.f32.vlgmr.msra.gmra.mrb[38].mxu0 %vm4716_vm0, %v6274_v59 }
0x13be   :  { %6501 = vmatprep.mubr.msk.f32.mxu0 %vm7411_vm14, %v7408_v27 }
0x13c1   :  { %6502 = vmatmul.mubr.msk.f32.gmra.mrb[48].mxu0 %vm4716_vm0, %v6275_v16 }
0x13c2   :  { %6504 = vmatprep.mubr.msk.f32.mxu0 %vm7411_vm14, %v7408_v27 }
0x13c5   :  { %6505 = vmatmul.mubr.msk.f32.gmra.mrb[50].mxu0 %vm4716_vm0, %v6276_v1 }
0x13c6   :  { %6507 = vmatprep.mubr.msk.f32.mxu0 %vm7411_vm14, %v7408_v27 }
0x13c9   :  { %6508 = vmatmul.mubr.msk.f32.gmra.mrb[52].mxu0 %vm4716_vm0, %v6277_v7 }
0x13ca   :  { %6510 = vmatprep.mubr.msk.f32.mxu0 %vm7411_vm14, %v7408_v27 }
0x13cd   :  { %6511 = vmatmul.mubr.msk.f32.gmra.mrb[54].mxu0 %vm4716_vm0, %v6278_v30 }
0x13ce   :  { %6513 = vmatprep.mubr.msk.f32.mxu0 %vm7411_vm14, %v7408_v27 }
0x13d1   :  { %6514 = vmatmul.mubr.msk.f32.gmra.mrb[56].mxu0 %vm4716_vm0, %v6279_v8 }
0x13d2   :  { %6516 = vmatprep.mubr.msk.f32.mxu0 %vm7411_vm14, %v7408_v27 }
0x13d5   :  { %6517 = vmatmul.mubr.msk.f32.gmra.mrb[58].mxu0 %vm4716_vm0, %v6280_v14 }
0x1490   :  { %v5526_v38 = vpop.f32.mrb[38].mxu0 }
0x1491   :  { %7369 = vtanh.f32 %v5526_v38  ;;  %v6500_v19 = vpop.f32.mrb[39].mxu0 }
0x1494   :  { %v5531_v39 = vpop.f32.mrb[48].mxu0 }
0x1495   :  { %7371 = vtanh.f32 %v5531_v39  ;;  %v6503_v21 = vpop.f32.mrb[49].mxu0 }
0x1498   :  { %v5536_v2 = vpop.f32.mrb[50].mxu0 }
0x1499   :  { %7373 = vtanh.f32 %v5536_v2  ;;  %v6506_v61 = vpop.f32.mrb[51].mxu0 }
0x149b   :  { %v7370_v10 = vpop.eup %7369 }
0x149c   :  { %5574 = vst.msk [vmem:[#allocation2] sm:$0xff] %vm4716_vm0, %v7370_v10  ;;  %v5541_v23 = vpop.f32.mrb[52].mxu0 }
0x149d   :  { %7375 = vtanh.f32 %v5541_v23  ;;  %v6509_v27 = vpop.f32.mrb[53].mxu0 }
0x149f   :  { %v7372_v18 = vpop.eup %7371 }
0x14a0   :  { %5575 = vst.msk [vmem:[#allocation2 + $0x8] sm:$0xff] %vm4716_vm0, %v7372_v18  ;;  %v5546_v42 = vpop.f32.mrb[54].mxu0 }
0x14a1   :  { %7377 = vtanh.f32 %v5546_v42  ;;  %v6512_v0 = vpop.f32.mrb[55].mxu0 }
0x14a3   :  { %v7374_v43 = vpop.eup %7373 }
0x14a4   :  { %5576 = vst.msk [vmem:[#allocation2 + $0x10] sm:$0xff] %vm4716_vm0, %v7374_v43  ;;  %v5551_v29 = vpop.f32.mrb[56].mxu0 }
0x14a5   :  { %7379 = vtanh.f32 %v5551_v29  ;;  %v6515_v44 = vpop.f32.mrb[57].mxu0 }
0x14a7   :  { %v7376_v13 = vpop.eup %7375 }
0x14a8   :  { %5577 = vst.msk [vmem:[#allocation2 + $0x18] sm:$0xff] %vm4716_vm0, %v7376_v13  ;;  %v5556_v45 = vpop.f32.mrb[58].mxu0 }
0x14a9   :  { %7381 = vtanh.f32 %v5556_v45  ;;  %v6518_v20 = vpop.f32.mrb[59].mxu0 }
0x14ab   :  { %v7378_v40 = vpop.eup %7377 }
0x14ac   :  { %5578 = vst.msk [vmem:[#allocation2 + $0x20] sm:$0xff] %vm4716_vm0, %v7378_v40 }
0x14af   :  { %v7380_v9 = vpop.eup %7379 }
0x14b0   :  { %5579 = vst.msk [vmem:[#allocation2 + $0x28] sm:$0xff] %vm4716_vm0, %v7380_v9 }
0x14b3   :  { %v7382_v41 = vpop.eup %7381 }
0x14b4   :  { %5580 = vst.msk [vmem:[#allocation2 + $0x30] sm:$0xff] %vm4716_vm0, %v7382_v41 }
0x14b5   :  { %7394 = shalt.err (!%p7391_p4)
}
0x14b6   :  { %s7395_s20 = scalar_lea.hbm %s9643_s21, 896 }
0x14b7   :  { %p7396_p5 = scmp.ne.s32.totalorder %s9643_s21, %s7395_s20  ;;  %p7399_p6 = scmp.lt.u32.totalorder %s7395_s20, %s9643_s21 }
0x14b9   :  { %p7401_p7 = pnand %p7399_p6, %p7396_p5 }
0x14bb   :  { %7404 = shalt.err (!%p7401_p7)
}
0x14bc   :  { %s7413_s27 = smov 128   ;;  %s7414_s3 = smov 8  }
0x14bd   :  { %5592 = dma.vmem_to_hbm [thread:$0]  %s5587_s2, 896, %s9643_s21, [#allocation3], %s7413_s27, %s7413_s27, %s7414_s3  }
0x14be   :  { %7405 = dma.done.wait [#allocation3], 896  }
0x14bf   :  { %7406 = vsyncadd [#allocation3], 4294966400 }
0x14c0   :  { %5596 = vsyncpa [#allocation3], 1 }

</bundles_post_ra>
